<compile_context>
chip_gen: v7x
topology: tpu7x:2x2x1
jax: 0.10.0
libtpu: 0.0.40
codegen_flags: <defaults>
</compile_context>

<pallas_src>
import jax
import jax.numpy as jnp
from jax.experimental import pallas as pl
from jax.experimental.pallas import tpu as pltpu

IMG_CHANNELS = 1
IMG_SIZE = 28
Z_DIM = 100
HID = (256, 512, 1024)
OUT_DIM = IMG_SIZE * IMG_SIZE      # 784 (written unpadded by the kernel)

# Lane-aligned padded latent dim (zero padding -> result unchanged).
Z_PAD = 128                        # 100 -> 128


def _round_up(x, m):
    return (x + m - 1) // m * m


def _generator_kernel(z_ref,
                      w1_ref, b1_ref,
                      w2_ref, b2_ref,
                      w3_ref, b3_ref,
                      w4_ref, b4_ref,
                      o_ref):
    """Fused 4-layer MLP on one batch tile.

    Weights arrive as bf16; activations are cast to bf16 right before each
    MXU matmul, accumulation is f32 (preferred_element_type), and the
    bias-add / ReLU are done in f32.  The final store is the true 784-wide
    output tile (no lane padding).
    """
    x = z_ref[...].astype(jnp.bfloat16)
    h = jnp.dot(x, w1_ref[...], preferred_element_type=jnp.float32)
    h = jnp.maximum(h + b1_ref[...], 0.0)

    h = jnp.dot(h.astype(jnp.bfloat16), w2_ref[...],
                preferred_element_type=jnp.float32)
    h = jnp.maximum(h + b2_ref[...], 0.0)

    h = jnp.dot(h.astype(jnp.bfloat16), w3_ref[...],
                preferred_element_type=jnp.float32)
    h = jnp.maximum(h + b3_ref[...], 0.0)

    h = jnp.dot(h.astype(jnp.bfloat16), w4_ref[...],
                preferred_element_type=jnp.float32)
    o_ref[...] = (h + b4_ref[...]).astype(o_ref.dtype)


def init_params(key):
    """f32 params matching nn.Linear default init: U[-1/sqrt(fan_in), +]."""
    dims = (Z_DIM,) + HID + (OUT_DIM,)
    params = []
    keys = jax.random.split(key, 2 * (len(dims) - 1))
    for i in range(len(dims) - 1):
        fan_in, fan_out = dims[i], dims[i + 1]
        bound = 1.0 / (fan_in ** 0.5)
        w = jax.random.uniform(keys[2 * i], (fan_in, fan_out),
                               minval=-bound, maxval=bound, dtype=jnp.float32)
        b = jax.random.uniform(keys[2 * i + 1], (1, fan_out),
                               minval=-bound, maxval=bound, dtype=jnp.float32)
        params.append((w, b))
    return params


def prepare_params(params):
    """Zero-pad only the first layer's input dim (100 -> 128) and cast
    weights to bf16.  Biases stay f32 (bias-add / ReLU run in f32 inside the
    kernel).  The last layer keeps its true 784 output columns so the kernel
    writes an unpadded output."""
    prepped = []
    for i, (w, b) in enumerate(params):
        if i == 0:
            w = jnp.pad(w, ((0, Z_PAD - Z_DIM), (0, 0)))
        prepped.append((w.astype(jnp.bfloat16), b.astype(jnp.float32)))
    return prepped


def generator_forward(z, prepped_params, *, block_b=512):
    """z: (B, Z_DIM) f32 -> (B, IMG_CHANNELS, IMG_SIZE, IMG_SIZE) f32.

    block_b: batch tile per grid step.  It does NOT need to match the MXU
    width; 256-512 is a good default on v5e/v6e/v7x alike (larger tiles just
    amortize the ~0.35 us/step pipeline overhead).  The tile is capped at
    ceil(B/2) so the batch grid has >= 2 steps whenever B > 8, letting
    dimension_semantics=("parallel",) keep both v7x TensorCores busy.  Only
    v7x's 64 MiB/TC VMEM really caps the tile: tb=512 uses ~14 MiB, tb=1024
    ~26 MiB (the scoped-VMEM limit is raised automatically above tb=512).
    """
    B = z.shape[0]
    tb = max(8, min(block_b, _round_up(pl.cdiv(B, 2), 8)))
    b_pad = _round_up(B, tb)
    nb = b_pad // tb

    z_p = jnp.pad(z.astype(jnp.float32),
                  ((0, b_pad - B), (0, Z_PAD - Z_DIM)))

    flat_args = [z_p]
    for w, b in prepped_params:
        flat_args.extend([w, b])

    def resident_spec(a):
        # Constant index map: the block is identical across the batch grid,
        # so weights/biases are fetched once and stay resident in VMEM
        # (not re-DMA'd per grid step) while z-in / out-writeback DMAs
        # pipeline under the matmuls.
        return pl.BlockSpec(a.shape, lambda i: (0,) * a.ndim)

    in_specs = [pl.BlockSpec((tb, Z_PAD), lambda i: (i, 0))]
    in_specs += [resident_spec(a) for a in flat_args[1:]]

    # Advisory cost estimate so XLA schedules surrounding ops sensibly.
    flops = 2 * b_pad * (Z_PAD * HID[0] + HID[0] * HID[1]
                         + HID[1] * HID[2] + HID[2] * OUT_DIM)
    param_bytes = sum(int(a.size) * a.dtype.itemsize for a in flat_args[1:])
    bytes_accessed = (int(z_p.size) * 4 + param_bytes + b_pad * OUT_DIM * 4)

    out_flat = pl.pallas_call(
        _generator_kernel,
        out_shape=jax.ShapeDtypeStruct((b_pad, OUT_DIM), jnp.float32),
        grid=(nb,),
        in_specs=in_specs,
        out_specs=pl.BlockSpec((tb, OUT_DIM), lambda i: (i, 0)),
        compiler_params=pltpu.CompilerParams(
            dimension_semantics=("parallel",),   # v7x: shard batch over 2 TCs
            vmem_limit_bytes=(64 * 1024 * 1024 if tb > 512 else None)),
        cost_estimate=pl.CostEstimate(
            flops=flops, transcendentals=0, bytes_accessed=bytes_accessed),
    )(*flat_args)

    # Output is already 784-wide; only drop batch padding (no-op if aligned).
    out = out_flat if b_pad == B else out_flat[:B]
    return out.reshape(-1, IMG_CHANNELS, IMG_SIZE, IMG_SIZE)


def _reference_forward(z, params, *, quantize_weights=True):
    """Plain-JAX reference; optionally applies the same bf16 weight quant."""
    h = z
    for i, (w, b) in enumerate(params):
        if quantize_weights:
            w = w.astype(jnp.bfloat16).astype(jnp.float32)
        h = h @ w + b
        if i < len(params) - 1:
            h = jnp.maximum(h, 0.0)
    return h.reshape(-1, IMG_CHANNELS, IMG_SIZE, IMG_SIZE)


if __name__ == "__main__":
    key = jax.random.PRNGKey(0)
    k_params, k_z = jax.random.split(key)

    params = init_params(k_params)
    prepped = prepare_params(params)

    B = 8
    z = jax.random.normal(k_z, (B, Z_DIM), dtype=jnp.float32)

    out = generator_forward(z, prepped)
    out = jax.block_until_ready(out)

    assert out.shape == (B, IMG_CHANNELS, IMG_SIZE, IMG_SIZE), out.shape

    # Tight check vs a reference that uses the same bf16 weight quantization.
    ref_q = _reference_forward(z, params, quantize_weights=True)
    err_q = float(jnp.max(jnp.abs(out - ref_q)))
    assert jnp.allclose(out, ref_q, atol=5e-2, rtol=5e-2), (
        f"mismatch vs bf16-weight reference (max abs err {err_q})")

    # Looser check vs the true f32 PyTorch-equivalent model (covers the
    # bf16 weight quantization error explicitly).
    ref_f32 = _reference_forward(z, params, quantize_weights=False)
    err_f = float(jnp.max(jnp.abs(out - ref_f32)))
    assert jnp.allclose(out, ref_f32, atol=1e-1, rtol=1e-1), (
        f"mismatch vs f32 reference (max abs err {err_f})")

    print("KERNEL_OK")
</pallas_src>

<mosaic_0001>
module attributes {stable_mosaic.version = 11 : i64} {
  func.func @_generator_kernel(%arg0: i32, %arg1: memref<8x128xf32, #tpu.memory_space<vmem>>, %arg2: memref<128x256xbf16, #tpu.memory_space<vmem>>, %arg3: memref<1x256xf32, #tpu.memory_space<vmem>>, %arg4: memref<256x512xbf16, #tpu.memory_space<vmem>>, %arg5: memref<1x512xf32, #tpu.memory_space<vmem>>, %arg6: memref<512x1024xbf16, #tpu.memory_space<vmem>>, %arg7: memref<1x1024xf32, #tpu.memory_space<vmem>>, %arg8: memref<1024x784xbf16, #tpu.memory_space<vmem>>, %arg9: memref<1x784xf32, #tpu.memory_space<vmem>>, %arg10: memref<8x784xf32, #tpu.memory_space<vmem>>) attributes {dimension_semantics = [#tpu.dimension_semantics<parallel>], iteration_bounds = array<i64: 1>, scalar_prefetch = 0 : i64, scratch_operands = 0 : i64, tpu.core_type = #tpu.core_type<tc>, window_params = [{transform_indices = @transform_0, window_bounds = array<i64: 8, 128>}, {pipeline_mode = #tpu.pipeline_mode<synchronous>, transform_indices = @transform_1, window_bounds = array<i64: 128, 256>}, {pipeline_mode = #tpu.pipeline_mode<synchronous>, transform_indices = @transform_2, window_bounds = array<i64: 1, 256>}, {pipeline_mode = #tpu.pipeline_mode<synchronous>, transform_indices = @transform_3, window_bounds = array<i64: 256, 512>}, {pipeline_mode = #tpu.pipeline_mode<synchronous>, transform_indices = @transform_4, window_bounds = array<i64: 1, 512>}, {pipeline_mode = #tpu.pipeline_mode<synchronous>, transform_indices = @transform_5, window_bounds = array<i64: 512, 1024>}, {pipeline_mode = #tpu.pipeline_mode<synchronous>, transform_indices = @transform_6, window_bounds = array<i64: 1, 1024>}, {pipeline_mode = #tpu.pipeline_mode<synchronous>, transform_indices = @transform_7, window_bounds = array<i64: 1024, 784>}, {pipeline_mode = #tpu.pipeline_mode<synchronous>, transform_indices = @transform_8, window_bounds = array<i64: 1, 784>}, {transform_indices = @transform_9, window_bounds = array<i64: 8, 784>}]} {
    %c0 = arith.constant 0 : index
    %c0_0 = arith.constant 0 : index
    %0 = vector.load %arg1[%c0, %c0_0] : memref<8x128xf32, #tpu.memory_space<vmem>>, vector<8x128xf32>
    %1 = arith.truncf %0 : vector<8x128xf32> to vector<8x128xbf16>
    %c0_1 = arith.constant 0 : index
    %c0_2 = arith.constant 0 : index
    %2 = vector.load %arg2[%c0_1, %c0_2] : memref<128x256xbf16, #tpu.memory_space<vmem>>, vector<128x256xbf16>
    %cst = arith.constant dense<0.000000e+00> : vector<8x256xf32>
    %3 = tpu.matmul %1, %2, %cst {dimension_numbers = #tpu.dot_dimension_numbers<[1], [0], [0], [1], [0, 0, 1, 1], [], []>} : vector<8x128xbf16>, vector<128x256xbf16>, vector<8x256xf32> -> vector<8x256xf32>
    %c0_3 = arith.constant 0 : index
    %c0_4 = arith.constant 0 : index
    %4 = vector.load %arg3[%c0_3, %c0_4] : memref<1x256xf32, #tpu.memory_space<vmem>>, vector<1x256xf32>
    %5 = vector.broadcast %4 : vector<1x256xf32> to vector<8x256xf32>
    %6 = arith.addf %3, %5 : vector<8x256xf32>
    %cst_5 = arith.constant 0.000000e+00 : f32
    %7 = vector.broadcast %cst_5 : f32 to vector<8x256xf32>
    %8 = arith.maximumf %6, %7 : vector<8x256xf32>
    %9 = arith.truncf %8 : vector<8x256xf32> to vector<8x256xbf16>
    %c0_6 = arith.constant 0 : index
    %c0_7 = arith.constant 0 : index
    %10 = vector.load %arg4[%c0_6, %c0_7] : memref<256x512xbf16, #tpu.memory_space<vmem>>, vector<256x512xbf16>
    %cst_8 = arith.constant dense<0.000000e+00> : vector<8x512xf32>
    %11 = tpu.matmul %9, %10, %cst_8 {dimension_numbers = #tpu.dot_dimension_numbers<[1], [0], [0], [1], [0, 0, 1, 1], [], []>} : vector<8x256xbf16>, vector<256x512xbf16>, vector<8x512xf32> -> vector<8x512xf32>
    %c0_9 = arith.constant 0 : index
    %c0_10 = arith.constant 0 : index
    %12 = vector.load %arg5[%c0_9, %c0_10] : memref<1x512xf32, #tpu.memory_space<vmem>>, vector<1x512xf32>
    %13 = vector.broadcast %12 : vector<1x512xf32> to vector<8x512xf32>
    %14 = arith.addf %11, %13 : vector<8x512xf32>
    %cst_11 = arith.constant 0.000000e+00 : f32
    %15 = vector.broadcast %cst_11 : f32 to vector<8x512xf32>
    %16 = arith.maximumf %14, %15 : vector<8x512xf32>
    %17 = arith.truncf %16 : vector<8x512xf32> to vector<8x512xbf16>
    %c0_12 = arith.constant 0 : index
    %c0_13 = arith.constant 0 : index
    %18 = vector.load %arg6[%c0_12, %c0_13] : memref<512x1024xbf16, #tpu.memory_space<vmem>>, vector<512x1024xbf16>
    %cst_14 = arith.constant dense<0.000000e+00> : vector<8x1024xf32>
    %19 = tpu.matmul %17, %18, %cst_14 {dimension_numbers = #tpu.dot_dimension_numbers<[1], [0], [0], [1], [0, 0, 1, 1], [], []>} : vector<8x512xbf16>, vector<512x1024xbf16>, vector<8x1024xf32> -> vector<8x1024xf32>
    %c0_15 = arith.constant 0 : index
    %c0_16 = arith.constant 0 : index
    %20 = vector.load %arg7[%c0_15, %c0_16] : memref<1x1024xf32, #tpu.memory_space<vmem>>, vector<1x1024xf32>
    %21 = vector.broadcast %20 : vector<1x1024xf32> to vector<8x1024xf32>
    %22 = arith.addf %19, %21 : vector<8x1024xf32>
    %cst_17 = arith.constant 0.000000e+00 : f32
    %23 = vector.broadcast %cst_17 : f32 to vector<8x1024xf32>
    %24 = arith.maximumf %22, %23 : vector<8x1024xf32>
    %25 = arith.truncf %24 : vector<8x1024xf32> to vector<8x1024xbf16>
    %c0_18 = arith.constant 0 : index
    %c0_19 = arith.constant 0 : index
    %26 = vector.load %arg8[%c0_18, %c0_19] : memref<1024x784xbf16, #tpu.memory_space<vmem>>, vector<1024x784xbf16>
    %cst_20 = arith.constant dense<0.000000e+00> : vector<8x784xf32>
    %27 = tpu.matmul %25, %26, %cst_20 {dimension_numbers = #tpu.dot_dimension_numbers<[1], [0], [0], [1], [0, 0, 1, 1], [], []>} : vector<8x1024xbf16>, vector<1024x784xbf16>, vector<8x784xf32> -> vector<8x784xf32>
    %c0_21 = arith.constant 0 : index
    %c0_22 = arith.constant 0 : index
    %28 = vector.load %arg9[%c0_21, %c0_22] : memref<1x784xf32, #tpu.memory_space<vmem>>, vector<1x784xf32>
    %29 = vector.broadcast %28 : vector<1x784xf32> to vector<8x784xf32>
    %30 = arith.addf %27, %29 : vector<8x784xf32>
    %c0_23 = arith.constant 0 : index
    %c0_24 = arith.constant 0 : index
    %31 = vector.load %arg10[%c0_23, %c0_24] : memref<8x784xf32, #tpu.memory_space<vmem>>, vector<8x784xf32>
    tpu.vector_store %arg10[%c0_23, %c0_24], %30 {strides = array<i32>} : memref<8x784xf32, #tpu.memory_space<vmem>>, vector<8x784xf32>,
    return
  }
  func.func @transform_0(%arg0: i32) -> (i32, i32) {
    %c0_i32 = arith.constant 0 : i32
    %c0_i32_0 = arith.constant 0 : i32
    return %arg0, %c0_i32 : i32, i32
  }
  func.func @transform_1(%arg0: i32) -> (i32, i32) {
    %c0_i32 = arith.constant 0 : i32
    %c0_i32_0 = arith.constant 0 : i32
    %c0_i32_1 = arith.constant 0 : i32
    return %c0_i32, %c0_i32_0 : i32, i32
  }
  func.func @transform_2(%arg0: i32) -> (i32, i32) {
    %c0_i32 = arith.constant 0 : i32
    %c0_i32_0 = arith.constant 0 : i32
    %c0_i32_1 = arith.constant 0 : i32
    return %c0_i32, %c0_i32_0 : i32, i32
  }
  func.func @transform_3(%arg0: i32) -> (i32, i32) {
    %c0_i32 = arith.constant 0 : i32
    %c0_i32_0 = arith.constant 0 : i32
    %c0_i32_1 = arith.constant 0 : i32
    return %c0_i32, %c0_i32_0 : i32, i32
  }
  func.func @transform_4(%arg0: i32) -> (i32, i32) {
    %c0_i32 = arith.constant 0 : i32
    %c0_i32_0 = arith.constant 0 : i32
    %c0_i32_1 = arith.constant 0 : i32
    return %c0_i32, %c0_i32_0 : i32, i32
  }
  func.func @transform_5(%arg0: i32) -> (i32, i32) {
    %c0_i32 = arith.constant 0 : i32
    %c0_i32_0 = arith.constant 0 : i32
    %c0_i32_1 = arith.constant 0 : i32
    return %c0_i32, %c0_i32_0 : i32, i32
  }
  func.func @transform_6(%arg0: i32) -> (i32, i32) {
    %c0_i32 = arith.constant 0 : i32
    %c0_i32_0 = arith.constant 0 : i32
    %c0_i32_1 = arith.constant 0 : i32
    return %c0_i32, %c0_i32_0 : i32, i32
  }
  func.func @transform_7(%arg0: i32) -> (i32, i32) {
    %c0_i32 = arith.constant 0 : i32
    %c0_i32_0 = arith.constant 0 : i32
    %c0_i32_1 = arith.constant 0 : i32
    return %c0_i32, %c0_i32_0 : i32, i32
  }
  func.func @transform_8(%arg0: i32) -> (i32, i32) {
    %c0_i32 = arith.constant 0 : i32
    %c0_i32_0 = arith.constant 0 : i32
    %c0_i32_1 = arith.constant 0 : i32
    return %c0_i32, %c0_i32_0 : i32, i32
  }
  func.func @transform_9(%arg0: i32) -> (i32, i32) {
    %c0_i32 = arith.constant 0 : i32
    %c0_i32_0 = arith.constant 0 : i32
    return %arg0, %c0_i32 : i32, i32
  }
}

</mosaic_0001>

<bundles_post_ra>
// kernel: tpu_custom_call.1
= control target key start
LH: loop header
LB: loop body
LE: loop exit
PB: predicated region body
PF: predicated region fallthrough
CT: control target
= control target key end

     0   :  { %v7858_v2 = vmov 0   ;;  %s10462_s0 = inlined_call_operand.vmem [shape: f32[8,128], index: 0, kind: input, shape index: {}]   ;;  %s10463_s1 = inlined_call_operand.vmem [shape: bf16[128,256], index: 1, kind: input, shape index: {}]   ;;  %s10464_s2 = inlined_call_operand.vmem [shape: f32[1,256], index: 2, kind: input, shape index: {}]   ;;  %s10465_s3 = inlined_call_operand.vmem [shape: bf16[256,512], index: 3, kind: input, shape index: {}]   ;;  %s10466_s4 = inlined_call_operand.vmem [shape: f32[1,512], index: 4, kind: input, shape index: {}]   ;;  %s10467_s5 = inlined_call_operand.vmem [shape: bf16[512,1024], index: 5, kind: input, shape index: {}]   ;;  %s10468_s6 = inlined_call_operand.vmem [shape: f32[1,1024], index: 6, kind: input, shape index: {}]   ;;  %s10469_s7 = inlined_call_operand.vmem [shape: bf16[1024,784], index: 7, kind: input, shape index: {}]   ;;  %s10470_s8 = inlined_call_operand.vmem [shape: f32[1,784], index: 8, kind: input, shape index: {}]   ;;  %s10471_s9 = inlined_call_operand.hbm [shape: f32[8,784], index: 9, kind: output, shape index: {}]  }
   0x1   :  { %v7074_v0 = vld [vmem:[%s10463_s1 + $0x4] ss:$8 sps:$4 sm:$0xff]   ;;  %v7076_v1 = vld [vmem:[%s10463_s1] ss:$8 sps:$4 sm:$0xff]   ;;  %176 = vmatprep.mubr.bf16.mxu0 %v7858_v2  ;;  %v7077_v3 = vld [vmem:[%s10463_s1 + $0x14] ss:$8 sps:$4 sm:$0xff]  }
   0x2   :  { %144 = vmatprep.subr.bf16.mxu0 %v7074_v0  ;;  %v7079_v4 = vld [vmem:[%s10463_s1 + $0x10] ss:$8 sps:$4 sm:$0xff]   ;;  %v7080_v5 = vld [vmem:[%s10463_s1 + $0x24] ss:$8 sps:$4 sm:$0xff]   ;;  %v7082_v6 = vld [vmem:[%s10463_s1 + $0x20] ss:$8 sps:$4 sm:$0xff]  }
   0x3   :  { %145 = vmatpush1.bf16.msra.mxu0 %v7076_v1  ;;  %v7083_v7 = vld [vmem:[%s10463_s1 + $0x34] ss:$8 sps:$4 sm:$0xff]   ;;  %v7085_v8 = vld [vmem:[%s10463_s1 + $0x30] ss:$8 sps:$4 sm:$0xff]   ;;  %v7086_v9 = vld [vmem:[%s10463_s1 + $0x44] ss:$8 sps:$4 sm:$0xff]  }
   0x4   :  { %146 = vmatprep.subr.bf16.mxu0 %v7077_v3  ;;  %v7088_v10 = vld [vmem:[%s10463_s1 + $0x40] ss:$8 sps:$4 sm:$0xff]   ;;  %v7089_v11 = vld [vmem:[%s10463_s1 + $0x54] ss:$8 sps:$4 sm:$0xff]   ;;  %v7091_v12 = vld [vmem:[%s10463_s1 + $0x50] ss:$8 sps:$4 sm:$0xff]  }
   0x5   :  { %v7092_v13 = vld [vmem:[%s10463_s1 + $0x64] ss:$8 sps:$4 sm:$0xff]   ;;  %v7094_v14 = vld [vmem:[%s10463_s1 + $0x60] ss:$8 sps:$4 sm:$0xff]   ;;  %v7095_v15 = vld [vmem:[%s10463_s1 + $0x74] ss:$8 sps:$4 sm:$0xff]  }
   0x6   :  { %v7097_v16 = vld [vmem:[%s10463_s1 + $0x70] ss:$8 sps:$4 sm:$0xff]   ;;  %v34_v17 = vld [vmem:[%s10462_s0] sm:$0xff]  ;;  %v7148_v51 = vld [vmem:[%s10465_s3 + $0xc] ss:$16 sps:$4 sm:$0xff]  }
   0x7   :  { %147 = vmatpush1.bf16.msra.mxu0 %v7079_v4  ;;  %v7100_v18 = vld [vmem:[%s10465_s3 + $0x4] ss:$16 sps:$4 sm:$0xff]   ;;  %v7098_v19 = vld [vmem:[%s10465_s3] ss:$16 sps:$4 sm:$0xff]   ;;  %v35_v20 = vpack.c.bf16 %v34_v17, %v34_v17 }
   0x8   :  { %148 = vmatprep.subr.bf16.mxu0 %v7080_v5  ;;  %v7103_v21 = vld [vmem:[%s10465_s3 + $0x24] ss:$16 sps:$4 sm:$0xff]   ;;  %v7101_v22 = vld [vmem:[%s10465_s3 + $0x20] ss:$16 sps:$4 sm:$0xff]  }
   0x9   :  { %v7106_v23 = vld [vmem:[%s10465_s3 + $0x44] ss:$16 sps:$4 sm:$0xff]   ;;  %v7104_v24 = vld [vmem:[%s10465_s3 + $0x40] ss:$16 sps:$4 sm:$0xff]  }
   0xa   :  { %v7109_v25 = vld [vmem:[%s10465_s3 + $0x64] ss:$16 sps:$4 sm:$0xff]   ;;  %v7107_v26 = vld [vmem:[%s10465_s3 + $0x60] ss:$16 sps:$4 sm:$0xff]  }
   0xb   :  { %149 = vmatpush1.bf16.msra.mxu0 %v7082_v6  ;;  %v7112_v27 = vld [vmem:[%s10465_s3 + $0x84] ss:$16 sps:$4 sm:$0xff]   ;;  %v7110_v28 = vld [vmem:[%s10465_s3 + $0x80] ss:$16 sps:$4 sm:$0xff]  }
   0xc   :  { %150 = vmatprep.subr.bf16.mxu0 %v7083_v7  ;;  %v7115_v29 = vld [vmem:[%s10465_s3 + $0xa4] ss:$16 sps:$4 sm:$0xff]   ;;  %v7113_v30 = vld [vmem:[%s10465_s3 + $0xa0] ss:$16 sps:$4 sm:$0xff]  }
   0xd   :  { %v7118_v31 = vld [vmem:[%s10465_s3 + $0xc4] ss:$16 sps:$4 sm:$0xff]   ;;  %v7116_v32 = vld [vmem:[%s10465_s3 + $0xc0] ss:$16 sps:$4 sm:$0xff]  }
   0xe   :  { %v7121_v33 = vld [vmem:[%s10465_s3 + $0xe4] ss:$16 sps:$4 sm:$0xff]   ;;  %v7119_v34 = vld [vmem:[%s10465_s3 + $0xe0] ss:$16 sps:$4 sm:$0xff]  }
   0xf   :  { %151 = vmatpush1.bf16.msra.mxu0 %v7085_v8  ;;  %v7124_v35 = vld [vmem:[%s10465_s3 + $0x104] ss:$16 sps:$4 sm:$0xff]   ;;  %v7122_v36 = vld [vmem:[%s10465_s3 + $0x100] ss:$16 sps:$4 sm:$0xff]  }
  0x10   :  { %152 = vmatprep.subr.bf16.mxu0 %v7086_v9  ;;  %v7127_v37 = vld [vmem:[%s10465_s3 + $0x124] ss:$16 sps:$4 sm:$0xff]   ;;  %v7125_v38 = vld [vmem:[%s10465_s3 + $0x120] ss:$16 sps:$4 sm:$0xff]  }
  0x11   :  { %v7130_v39 = vld [vmem:[%s10465_s3 + $0x144] ss:$16 sps:$4 sm:$0xff]   ;;  %v7128_v40 = vld [vmem:[%s10465_s3 + $0x140] ss:$16 sps:$4 sm:$0xff]  }
  0x12   :  { %v7133_v41 = vld [vmem:[%s10465_s3 + $0x164] ss:$16 sps:$4 sm:$0xff]   ;;  %v7131_v42 = vld [vmem:[%s10465_s3 + $0x160] ss:$16 sps:$4 sm:$0xff]  }
  0x13   :  { %153 = vmatpush1.bf16.msra.mxu0 %v7088_v10  ;;  %v7136_v43 = vld [vmem:[%s10465_s3 + $0x184] ss:$16 sps:$4 sm:$0xff]   ;;  %v7134_v44 = vld [vmem:[%s10465_s3 + $0x180] ss:$16 sps:$4 sm:$0xff]  }
  0x14   :  { %154 = vmatprep.subr.bf16.mxu0 %v7089_v11  ;;  %v7139_v45 = vld [vmem:[%s10465_s3 + $0x1a4] ss:$16 sps:$4 sm:$0xff]   ;;  %v7137_v46 = vld [vmem:[%s10465_s3 + $0x1a0] ss:$16 sps:$4 sm:$0xff]  }
  0x15   :  { %v7142_v47 = vld [vmem:[%s10465_s3 + $0x1c4] ss:$16 sps:$4 sm:$0xff]   ;;  %v7140_v48 = vld [vmem:[%s10465_s3 + $0x1c0] ss:$16 sps:$4 sm:$0xff]  }
  0x16   :  { %v7145_v49 = vld [vmem:[%s10465_s3 + $0x1e4] ss:$16 sps:$4 sm:$0xff]   ;;  %v7143_v50 = vld [vmem:[%s10465_s3 + $0x1e0] ss:$16 sps:$4 sm:$0xff]  }
  0x17   :  { %155 = vmatpush1.bf16.msra.mxu0 %v7091_v12  ;;  %v685_v52 = vld [vmem:[%s10467_s5] sm:$0xff] }
  0x18   :  { %156 = vmatprep.subr.bf16.mxu0 %v7092_v13  ;;  %v689_v53 = vld [vmem:[%s10467_s5 + $0x20] sm:$0xff] }
  0x19   :  { %v6215_v54 = vcombine.high %v685_v52, %v689_v53  ;;  %v6214_v55 = vcombine.low %v685_v52, %v689_v53  ;;  %v693_v56 = vld [vmem:[%s10467_s5 + $0x40] sm:$0xff] }
  0x1a   :  { %v697_v57 = vld [vmem:[%s10467_s5 + $0x60] sm:$0xff] }
  0x1b   :  { %157 = vmatpush1.bf16.msra.mxu0 %v7094_v14  ;;  %v6223_v58 = vcombine.high %v693_v56, %v697_v57  ;;  %2263 = vmatprep.subr.bf16.mxu1 %v6215_v54  ;;  %v6222_v59 = vcombine.low %v693_v56, %v697_v57  ;;  %v701_v60 = vld [vmem:[%s10467_s5 + $0x80] sm:$0xff] }
  0x1c   :  { %158 = vmatprep.subr.bf16.mxu0 %v7095_v15  ;;  %2264 = vmatpush1.bf16.msra.mxu1 %v6214_v55  ;;  %v705_v61 = vld [vmem:[%s10467_s5 + $0xa0] sm:$0xff] }
  0x1d   :  { %2265 = vmatprep.subr.bf16.mxu1 %v6223_v58  ;;  %v6231_v62 = vcombine.high %v701_v60, %v705_v61  ;;  %v6230_v63 = vcombine.low %v701_v60, %v705_v61  ;;  %v709_v0 = vld [vmem:[%s10467_s5 + $0xc0] sm:$0xff] }
  0x1e   :  { %v713_v1 = vld [vmem:[%s10467_s5 + $0xe0] sm:$0xff] }
  0x1f   :  { %159 = vmatpush1.bf16.msra.mxu0 %v7097_v16  ;;  %v6239_v2 = vcombine.high %v709_v0, %v713_v1  ;;  %v6238_v3 = vcombine.low %v709_v0, %v713_v1  ;;  %v717_v4 = vld [vmem:[%s10467_s5 + $0x100] sm:$0xff] }
  0x20   :  { %595 = vmatprep.subr.bf16.mxu0 %v7100_v18  ;;  %2266 = vmatpush1.bf16.msra.mxu1 %v6222_v59  ;;  %v721_v5 = vld [vmem:[%s10467_s5 + $0x120] sm:$0xff] }
  0x21   :  { %2267 = vmatprep.subr.bf16.mxu1 %v6231_v62  ;;  %v6247_v6 = vcombine.high %v717_v4, %v721_v5  ;;  %v6246_v7 = vcombine.low %v717_v4, %v721_v5  ;;  %v725_v8 = vld [vmem:[%s10467_s5 + $0x140] sm:$0xff] }
  0x22   :  { %177 = vmatmul.mubr.bf16.vlgmr.msra.gmra.mrb[0].mxu0 %v35_v20  ;;  %v729_v9 = vld [vmem:[%s10467_s5 + $0x160] sm:$0xff] }
  0x23   :  { %596 = vmatpush1.bf16.msra.mxu0 %v7098_v19  ;;  %v6255_v10 = vcombine.high %v725_v8, %v729_v9  ;;  %v6254_v11 = vcombine.low %v725_v8, %v729_v9  ;;  %v733_v12 = vld [vmem:[%s10467_s5 + $0x180] sm:$0xff] }
  0x24   :  { %597 = vmatprep.subr.bf16.mxu0 %v7103_v21  ;;  %2268 = vmatpush1.bf16.msra.mxu1 %v6230_v63  ;;  %v737_v13 = vld [vmem:[%s10467_s5 + $0x1a0] sm:$0xff] }
  0x25   :  { %2269 = vmatprep.subr.bf16.mxu1 %v6239_v2  ;;  %v6263_v14 = vcombine.high %v733_v12, %v737_v13  ;;  %v6262_v15 = vcombine.low %v733_v12, %v737_v13  ;;  %v741_v16 = vld [vmem:[%s10467_s5 + $0x1c0] sm:$0xff] }
  0x26   :  { %v745_v17 = vld [vmem:[%s10467_s5 + $0x1e0] sm:$0xff] }
  0x27   :  { %598 = vmatpush1.bf16.msra.mxu0 %v7101_v22  ;;  %v6271_v18 = vcombine.high %v741_v16, %v745_v17  ;;  %v6270_v19 = vcombine.low %v741_v16, %v745_v17  ;;  %v749_v20 = vld [vmem:[%s10467_s5 + $0x200] sm:$0xff] }
  0x28   :  { %599 = vmatprep.subr.bf16.mxu0 %v7106_v23  ;;  %2270 = vmatpush1.bf16.msra.mxu1 %v6238_v3  ;;  %v753_v21 = vld [vmem:[%s10467_s5 + $0x220] sm:$0xff] }
  0x29   :  { %2271 = vmatprep.subr.bf16.mxu1 %v6247_v6  ;;  %v6279_v22 = vcombine.high %v749_v20, %v753_v21  ;;  %v6278_v23 = vcombine.low %v749_v20, %v753_v21 }
  0x2b   :  { %600 = vmatpush1.bf16.msra.mxu0 %v7104_v24  ;;  %v757_v24 = vld [vmem:[%s10467_s5 + $0x240] sm:$0xff] }
  0x2c   :  { %601 = vmatprep.subr.bf16.mxu0 %v7109_v25  ;;  %2272 = vmatpush1.bf16.msra.mxu1 %v6246_v7  ;;  %v761_v25 = vld [vmem:[%s10467_s5 + $0x260] sm:$0xff] }
  0x2d   :  { %2273 = vmatprep.subr.bf16.mxu1 %v6255_v10 }
  0x2f   :  { %602 = vmatpush1.bf16.msra.mxu0 %v7107_v26  ;;  %v6287_v26 = vcombine.high %v757_v24, %v761_v25 }
  0x30   :  { %603 = vmatprep.subr.bf16.mxu0 %v7112_v27  ;;  %2274 = vmatpush1.bf16.msra.mxu1 %v6254_v11  ;;  %v6286_v27 = vcombine.low %v757_v24, %v761_v25 }
  0x31   :  { %2275 = vmatprep.subr.bf16.mxu1 %v6263_v14 }
  0x33   :  { %604 = vmatpush1.bf16.msra.mxu0 %v7110_v28  ;;  %v765_v28 = vld [vmem:[%s10467_s5 + $0x280] sm:$0xff] }
  0x34   :  { %605 = vmatprep.subr.bf16.mxu0 %v7115_v29  ;;  %2276 = vmatpush1.bf16.msra.mxu1 %v6262_v15  ;;  %v769_v29 = vld [vmem:[%s10467_s5 + $0x2a0] sm:$0xff] }
  0x35   :  { %2277 = vmatprep.subr.bf16.mxu1 %v6271_v18 }
  0x37   :  { %606 = vmatpush1.bf16.msra.mxu0 %v7113_v30  ;;  %v6295_v30 = vcombine.high %v765_v28, %v769_v29 }
  0x38   :  { %607 = vmatprep.subr.bf16.mxu0 %v7118_v31  ;;  %2278 = vmatpush1.bf16.msra.mxu1 %v6270_v19  ;;  %v54_v31 = vlaneseq }
  0x39   :  { %2279 = vmatprep.subr.bf16.mxu1 %v6279_v22 }
  0x3b   :  { %608 = vmatpush1.bf16.msra.mxu0 %v7116_v32  ;;  %v6294_v32 = vcombine.low %v765_v28, %v769_v29 }
  0x3c   :  { %609 = vmatprep.subr.bf16.mxu0 %v7121_v33  ;;  %2280 = vmatpush1.bf16.msra.mxu1 %v6278_v23  ;;  %v773_v33 = vld [vmem:[%s10467_s5 + $0x2c0] sm:$0xff] }
  0x3d   :  { %2281 = vmatprep.subr.bf16.mxu1 %v6287_v26 }
  0x3f   :  { %610 = vmatpush1.bf16.msra.mxu0 %v7119_v34  ;;  %v777_v34 = vld [vmem:[%s10467_s5 + $0x2e0] sm:$0xff] }
  0x40   :  { %611 = vmatprep.subr.bf16.mxu0 %v7124_v35  ;;  %2282 = vmatpush1.bf16.msra.mxu1 %v6286_v27  ;;  %v6303_v35 = vcombine.high %v773_v33, %v777_v34 }
  0x41   :  { %2283 = vmatprep.subr.bf16.mxu1 %v6295_v30 }
  0x43   :  { %612 = vmatpush1.bf16.msra.mxu0 %v7122_v36  ;;  %v8132_v36 = vshrl.u32 %v54_v31, 7 }
  0x44   :  { %613 = vmatprep.subr.bf16.mxu0 %v7127_v37  ;;  %2284 = vmatpush1.bf16.msra.mxu1 %v6294_v32  ;;  %v6302_v37 = vcombine.low %v773_v33, %v777_v34 }
  0x45   :  { %2285 = vmatprep.subr.bf16.mxu1 %v6303_v35 }
  0x47   :  { %614 = vmatpush1.bf16.msra.mxu0 %v7125_v38  ;;  %v781_v38 = vld [vmem:[%s10467_s5 + $0x300] sm:$0xff] }
  0x48   :  { %615 = vmatprep.subr.bf16.mxu0 %v7130_v39  ;;  %v785_v39 = vld [vmem:[%s10467_s5 + $0x320] sm:$0xff]  ;;  %2286 = vmatpush1.bf16.msra.mxu1 %v6302_v37 }
  0x4b   :  { %616 = vmatpush1.bf16.msra.mxu0 %v7128_v40  ;;  %v6311_v40 = vcombine.high %v781_v38, %v785_v39 }
  0x4c   :  { %617 = vmatprep.subr.bf16.mxu0 %v7133_v41  ;;  %v8141_v41 = vsub.s32 0, %v8132_v36 }
  0x4d   :  { %2287 = vmatprep.subr.bf16.mxu1 %v6311_v40 }
  0x4f   :  { %618 = vmatpush1.bf16.msra.mxu0 %v7131_v42  ;;  %v6310_v42 = vcombine.low %v781_v38, %v785_v39 }
  0x50   :  { %619 = vmatprep.subr.bf16.mxu0 %v7136_v43  ;;  %v52_v43 = vld [vmem:[%s10464_s2] sm:$0x3] }
  0x51   :  { %2288 = vmatpush1.bf16.msra.mxu1 %v6310_v42 }
  0x53   :  { %620 = vmatpush1.bf16.msra.mxu0 %v7134_v44  ;;  %v8147_v44 = vsub.s32 1, %v8132_v36 }
  0x54   :  { %621 = vmatprep.subr.bf16.mxu0 %v7139_v45  ;;  %v789_v45 = vld [vmem:[%s10467_s5 + $0x340] sm:$0xff] }
  0x57   :  { %622 = vmatpush1.bf16.msra.mxu0 %v7137_v46  ;;  %v793_v46 = vld [vmem:[%s10467_s5 + $0x360] sm:$0xff] }
  0x58   :  { %623 = vmatprep.subr.bf16.mxu0 %v7142_v47  ;;  %v6319_v47 = vcombine.high %v789_v45, %v793_v46 }
  0x5a   :  { %2289 = vmatprep.subr.bf16.mxu1 %v6319_v47 }
  0x5b   :  { %624 = vmatpush1.bf16.msra.mxu0 %v7140_v48  ;;  %v57_v48 = vrot.slane %v52_v43, %v8141_v41 }
  0x5c   :  { %625 = vmatprep.subr.bf16.mxu0 %v7145_v49  ;;  %v6318_v49 = vcombine.low %v789_v45, %v793_v46 }
  0x5f   :  { %626 = vmatpush1.bf16.msra.mxu0 %v7143_v50  ;;  %v61_v50 = vrot.slane %v52_v43, %v8147_v44 }
  0x60   :  { %636 = vmatprep.subr.bf16.mxu0 %v7148_v51 }
  0x61   :  { %14 = vsyncpa [#allocation3], 0  ;;  %2290 = vmatpush1.bf16.msra.mxu1 %v6318_v49  ;;  %v7146_v60 = vld [vmem:[%s10465_s3 + $0x8] ss:$16 sps:$4 sm:$0xff]   ;;  %v7151_v62 = vld [vmem:[%s10465_s3 + $0x2c] ss:$16 sps:$4 sm:$0xff]  }
  0x62   :  { %v7149_v63 = vld [vmem:[%s10465_s3 + $0x28] ss:$16 sps:$4 sm:$0xff]   ;;  %v7154_v0 = vld [vmem:[%s10465_s3 + $0x4c] ss:$16 sps:$4 sm:$0xff]   ;;  %vm6118_vm0 = vcmask 130048  }
  0x63   :  { %v7152_v1 = vld [vmem:[%s10465_s3 + $0x48] ss:$16 sps:$4 sm:$0xff]   ;;  %v7157_v2 = vld [vmem:[%s10465_s3 + $0x6c] ss:$16 sps:$4 sm:$0xff]  }
  0x64   :  { %v7155_v3 = vld [vmem:[%s10465_s3 + $0x68] ss:$16 sps:$4 sm:$0xff]   ;;  %v7160_v4 = vld [vmem:[%s10465_s3 + $0x8c] ss:$16 sps:$4 sm:$0xff]  }
  0x65   :  { %v7158_v5 = vld [vmem:[%s10465_s3 + $0x88] ss:$16 sps:$4 sm:$0xff]   ;;  %v7163_v6 = vld [vmem:[%s10465_s3 + $0xac] ss:$16 sps:$4 sm:$0xff]  }
  0x66   :  { %v7161_v7 = vld [vmem:[%s10465_s3 + $0xa8] ss:$16 sps:$4 sm:$0xff]   ;;  %v7166_v8 = vld [vmem:[%s10465_s3 + $0xcc] ss:$16 sps:$4 sm:$0xff]  }
  0x67   :  { %v7164_v9 = vld [vmem:[%s10465_s3 + $0xc8] ss:$16 sps:$4 sm:$0xff]   ;;  %v7169_v10 = vld [vmem:[%s10465_s3 + $0xec] ss:$16 sps:$4 sm:$0xff]  }
  0x68   :  { %v7167_v11 = vld [vmem:[%s10465_s3 + $0xe8] ss:$16 sps:$4 sm:$0xff]   ;;  %v7172_v12 = vld [vmem:[%s10465_s3 + $0x10c] ss:$16 sps:$4 sm:$0xff]  }
  0x69   :  { %v7170_v13 = vld [vmem:[%s10465_s3 + $0x108] ss:$16 sps:$4 sm:$0xff]   ;;  %v7175_v14 = vld [vmem:[%s10465_s3 + $0x12c] ss:$16 sps:$4 sm:$0xff]  }
  0x6a   :  { %v7173_v15 = vld [vmem:[%s10465_s3 + $0x128] ss:$16 sps:$4 sm:$0xff]   ;;  %v7178_v16 = vld [vmem:[%s10465_s3 + $0x14c] ss:$16 sps:$4 sm:$0xff]  }
  0x6b   :  { %v7176_v17 = vld [vmem:[%s10465_s3 + $0x148] ss:$16 sps:$4 sm:$0xff]   ;;  %v7181_v18 = vld [vmem:[%s10465_s3 + $0x16c] ss:$16 sps:$4 sm:$0xff]  }
  0x6c   :  { %v7179_v19 = vld [vmem:[%s10465_s3 + $0x168] ss:$16 sps:$4 sm:$0xff]   ;;  %v7184_v20 = vld [vmem:[%s10465_s3 + $0x18c] ss:$16 sps:$4 sm:$0xff]  }
  0x6d   :  { %v7182_v21 = vld [vmem:[%s10465_s3 + $0x188] ss:$16 sps:$4 sm:$0xff]   ;;  %v7187_v22 = vld [vmem:[%s10465_s3 + $0x1ac] ss:$16 sps:$4 sm:$0xff]  }
  0x6e   :  { %v7185_v23 = vld [vmem:[%s10465_s3 + $0x1a8] ss:$16 sps:$4 sm:$0xff]   ;;  %v7190_v24 = vld [vmem:[%s10465_s3 + $0x1cc] ss:$16 sps:$4 sm:$0xff]  }
  0x6f   :  { %v7188_v25 = vld [vmem:[%s10465_s3 + $0x1c8] ss:$16 sps:$4 sm:$0xff]   ;;  %v7193_v26 = vld [vmem:[%s10465_s3 + $0x1ec] ss:$16 sps:$4 sm:$0xff]  }
  0x70   :  { %v686_v27 = vld [vmem:[%s10467_s5 + $0x8] sm:$0xff] }
  0x71   :  { %v690_v28 = vld [vmem:[%s10467_s5 + $0x28] sm:$0xff] }
  0x72   :  { %v7191_v29 = vld [vmem:[%s10465_s3 + $0x1e8] ss:$16 sps:$4 sm:$0xff]   ;;  %v6217_v30 = vcombine.high %v686_v27, %v690_v28  ;;  %v6216_v33 = vcombine.low %v686_v27, %v690_v28 }
  0x73   :  { %v694_v31 = vld [vmem:[%s10467_s5 + $0x48] sm:$0xff] }
  0x74   :  { %v698_v32 = vld [vmem:[%s10467_s5 + $0x68] sm:$0xff] }
  0x75   :  { %v6225_v34 = vcombine.high %v694_v31, %v698_v32  ;;  %v702_v35 = vld [vmem:[%s10467_s5 + $0x88] sm:$0xff]  ;;  %v6224_v38 = vcombine.low %v694_v31, %v698_v32 }
  0x76   :  { %v706_v37 = vld [vmem:[%s10467_s5 + $0xa8] sm:$0xff] }
  0x77   :  { %v6233_v39 = vcombine.high %v702_v35, %v706_v37  ;;  %v710_v40 = vld [vmem:[%s10467_s5 + $0xc8] sm:$0xff]  ;;  %v6232_v43 = vcombine.low %v702_v35, %v706_v37 }
  0x78   :  { %v714_v42 = vld [vmem:[%s10467_s5 + $0xe8] sm:$0xff] }
  0x79   :  { %v6241_v45 = vcombine.high %v710_v40, %v714_v42  ;;  %v718_v46 = vld [vmem:[%s10467_s5 + $0x108] sm:$0xff] }
  0x7a   :  { %v722_v47 = vld [vmem:[%s10467_s5 + $0x128] sm:$0xff] }
  0x7b   :  { %v6249_v49 = vcombine.high %v718_v46, %v722_v47 }
  0xf5   :  { %v178_v51 = vpop.f32.mrb[0].mxu0 }
  0xf6   :  { %v179_v52 = vadd.f32 %v178_v51, %v57_v48  ;;  %v180_v53 = vpop.f32.mrb[1].mxu0  ;;  %v6240_v48 = vcombine.low %v710_v40, %v714_v42  ;;  %v730_v51 = vld [vmem:[%s10467_s5 + $0x168] sm:$0xff] }
  0xf7   :  { %v181_v54 = vadd.f32 %v180_v53, %v61_v50  ;;  %v182_v55 = vpop.f32.mrb[2].mxu0  ;;  %v726_v50 = vld [vmem:[%s10467_s5 + $0x148] sm:$0xff] }
  0xf8   :  { %v185_v56 = vmax.f32 %v179_v52, 0.0  ;;  %v183_v57 = vpop.f32.mrb[3].mxu0  ;;  %v6248_v52 = vcombine.low %v718_v46, %v722_v47  ;;  %v6257_v53 = vcombine.high %v726_v50, %v730_v51  ;;  %v738_v55 = vld [vmem:[%s10467_s5 + $0x1a8] sm:$0xff] }
  0xf9   :  { %v186_v58 = vmax.f32 %v181_v54, 0.0  ;;  %v734_v54 = vld [vmem:[%s10467_s5 + $0x188] sm:$0xff]  ;;  %v797_v57 = vld [vmem:[%s10467_s5 + $0x380] sm:$0xff] }
  0xfa   :  { %v8160_v61 = vpack.c.bf16 %v185_v56, %v185_v56  ;;  %v6256_v56 = vcombine.low %v726_v50, %v730_v51  ;;  %v8393_v50 = vld [vmem:[%s10466_s4] sm:$0xf] }
  0xfb   :  { %v188_v59 = vpack.c.bf16 %v186_v58, %v186_v58  ;;  %v801_v58 = vld [vmem:[%s10467_s5 + $0x3a0] sm:$0xff]  ;;  %v258_v51 = vrot.slane %v8393_v50, %v8141_v41 }
  0xfd   :  { %627 = vmatprep.mubr.bf16.mxu0 %v188_v59 }
  0xfe   :  { %628 = vmatmul.mubr.bf16.vlgmr.msra.gmra.mrb[4].mxu0 %v8160_v61 }
  0xff   :  { %637 = vmatpush1.bf16.msra.mxu0 %v7146_v60  ;;  %668 = vmatprep.mubr.bf16.mxu0 %v188_v59  ;;  %v6265_v59 = vcombine.high %v734_v54, %v738_v55  ;;  %v6327_v60 = vcombine.high %v797_v57, %v801_v58 }
 0x100   :  { %638 = vmatprep.subr.bf16.mxu0 %v7151_v62  ;;  %v746_v62 = vld [vmem:[%s10467_s5 + $0x1e8] sm:$0xff] }
 0x101   :  { %2291 = vmatprep.subr.bf16.mxu1 %v6327_v60  ;;  %v821_v60 = vld [vmem:[%s10467_s5 + $0x440] sm:$0xff] }
 0x103   :  { %639 = vmatpush1.bf16.msra.mxu0 %v7149_v63  ;;  %v6326_v63 = vcombine.low %v797_v57, %v801_v58 }
 0x104   :  { %640 = vmatprep.subr.bf16.mxu0 %v7154_v0  ;;  %v6264_v0 = vcombine.low %v734_v54, %v738_v55 }
 0x105   :  { %2292 = vmatpush1.bf16.msra.mxu1 %v6326_v63  ;;  %v822_v63 = vld [vmem:[%s10467_s5 + $0x448] sm:$0xff] }
 0x107   :  { %641 = vmatpush1.bf16.msra.mxu0 %v7152_v1  ;;  %v805_v1 = vld [vmem:[%s10467_s5 + $0x3c0] sm:$0xff] }
 0x108   :  { %642 = vmatprep.subr.bf16.mxu0 %v7157_v2  ;;  %v809_v2 = vld [vmem:[%s10467_s5 + $0x3e0] sm:$0xff] }
 0x10b   :  { %643 = vmatpush1.bf16.msra.mxu0 %v7155_v3 }
 0x10c   :  { %644 = vmatprep.subr.bf16.mxu0 %v7160_v4  ;;  %v6335_v4 = vcombine.high %v805_v1, %v809_v2 }
 0x10e   :  { %2293 = vmatprep.subr.bf16.mxu1 %v6335_v4 }
 0x10f   :  { %645 = vmatpush1.bf16.msra.mxu0 %v7158_v5  ;;  %v750_v5 = vld [vmem:[%s10467_s5 + $0x208] sm:$0xff] }
 0x110   :  { %646 = vmatprep.subr.bf16.mxu0 %v7163_v6  ;;  %v754_v6 = vld [vmem:[%s10467_s5 + $0x228] sm:$0xff] }
 0x113   :  { %647 = vmatpush1.bf16.msra.mxu0 %v7161_v7  ;;  %v6334_v7 = vcombine.low %v805_v1, %v809_v2 }
 0x114   :  { %648 = vmatprep.subr.bf16.mxu0 %v7166_v8 }
 0x115   :  { %2294 = vmatpush1.bf16.msra.mxu1 %v6334_v7  ;;  %v830_v7 = vld [vmem:[%s10467_s5 + $0x488] sm:$0xff] }
 0x117   :  { %649 = vmatpush1.bf16.msra.mxu0 %v7164_v9  ;;  %v8323_v9 = vld [vmem:[%s10467_s5 + $0x400] sm:$0xff] }
 0x118   :  { %650 = vmatprep.subr.bf16.mxu0 %v7169_v10  ;;  %v8328_v10 = vld [vmem:[%s10467_s5 + $0x420] sm:$0xff] }
 0x11b   :  { %651 = vmatpush1.bf16.msra.mxu0 %v7167_v11  ;;  %v8333_v11 = vld [vmem:[%s10467_s5 + $0x408] sm:$0xff] }
 0x11c   :  { %652 = vmatprep.subr.bf16.mxu0 %v7172_v12  ;;  %v6281_v12 = vcombine.high %v750_v5, %v754_v6 }
 0x11f   :  { %653 = vmatpush1.bf16.msra.mxu0 %v7170_v13  ;;  %v6343_v13 = vcombine.high %v8323_v9, %v8328_v10 }
 0x120   :  { %654 = vmatprep.subr.bf16.mxu0 %v7175_v14  ;;  %v8340_v14 = vld [vmem:[%s10467_s5 + $0x428] sm:$0xff] }
 0x121   :  { %2304 = vmatprep.subr.bf16.mxu1 %v6343_v13 }
 0x123   :  { %655 = vmatpush1.bf16.msra.mxu0 %v7173_v15  ;;  %v758_v15 = vld [vmem:[%s10467_s5 + $0x248] sm:$0xff] }
 0x124   :  { %656 = vmatprep.subr.bf16.mxu0 %v7178_v16  ;;  %v762_v16 = vld [vmem:[%s10467_s5 + $0x268] sm:$0xff] }
 0x127   :  { %657 = vmatpush1.bf16.msra.mxu0 %v7176_v17  ;;  %v6342_v17 = vcombine.low %v8323_v9, %v8328_v10  ;;  %v838_v9 = vld [vmem:[%s10467_s5 + $0x4c8] sm:$0xff] }
 0x128   :  { %658 = vmatprep.subr.bf16.mxu0 %v7181_v18  ;;  %v6344_v18 = vcombine.low %v8333_v11, %v8340_v14  ;;  %v842_v10 = vld [vmem:[%s10467_s5 + $0x4e8] sm:$0xff] }
 0x12b   :  { %659 = vmatpush1.bf16.msra.mxu0 %v7179_v19  ;;  %v6280_v19 = vcombine.low %v750_v5, %v754_v6  ;;  %v829_v5 = vld [vmem:[%s10467_s5 + $0x480] sm:$0xff] }
 0x12c   :  { %660 = vmatprep.subr.bf16.mxu0 %v7184_v20  ;;  %v6289_v20 = vcombine.high %v758_v15, %v762_v16  ;;  %v833_v6 = vld [vmem:[%s10467_s5 + $0x4a0] sm:$0xff] }
 0x12f   :  { %661 = vmatpush1.bf16.msra.mxu0 %v7182_v21  ;;  %v766_v21 = vld [vmem:[%s10467_s5 + $0x288] sm:$0xff] }
 0x130   :  { %662 = vmatprep.subr.bf16.mxu0 %v7187_v22  ;;  %v770_v22 = vld [vmem:[%s10467_s5 + $0x2a8] sm:$0xff] }
 0x131   :  { %v6296_v27 = vcombine.low %v766_v21, %v770_v22 }
 0x133   :  { %663 = vmatpush1.bf16.msra.mxu0 %v7185_v23  ;;  %v6288_v23 = vcombine.low %v758_v15, %v762_v16  ;;  %v6359_v15 = vcombine.high %v829_v5, %v833_v6 }
 0x134   :  { %664 = vmatprep.subr.bf16.mxu0 %v7190_v24  ;;  %v6297_v24 = vcombine.high %v766_v21, %v770_v22  ;;  %v845_v21 = vld [vmem:[%s10467_s5 + $0x500] sm:$0xff] }
 0x135   :  { %v849_v22 = vld [vmem:[%s10467_s5 + $0x520] sm:$0xff] }
 0x137   :  { %665 = vmatpush1.bf16.msra.mxu0 %v7188_v25  ;;  %v774_v25 = vld [vmem:[%s10467_s5 + $0x2c8] sm:$0xff] }
 0x138   :  { %666 = vmatprep.subr.bf16.mxu0 %v7193_v26  ;;  %v778_v26 = vld [vmem:[%s10467_s5 + $0x2e8] sm:$0xff] }
 0x139   :  { %v6305_v28 = vcombine.high %v774_v25, %v778_v26  ;;  %v6304_v31 = vcombine.low %v774_v25, %v778_v26  ;;  %v6368_v26 = vcombine.low %v838_v9, %v842_v10 }
 0x13b   :  { %667 = vmatpush1.bf16.msra.mxu0 %v7191_v29  ;;  %v782_v29 = vld [vmem:[%s10467_s5 + $0x308] sm:$0xff] }
 0x13c   :  { %2345 = vmatprep.subr.bf16.mxu0 %v6217_v30  ;;  %v786_v30 = vld [vmem:[%s10467_s5 + $0x328] sm:$0xff] }
 0x13d   :  { %v6313_v32 = vcombine.high %v782_v29, %v786_v30  ;;  %v6312_v35 = vcombine.low %v782_v29, %v786_v30  ;;  %v853_v29 = vld [vmem:[%s10467_s5 + $0x540] sm:$0xff] }
 0x13e   :  { %669 = vmatmul.mubr.bf16.vlgmr.msra.gmra.mrb[8].mxu0 %v8160_v61  ;;  %v742_v61 = vld [vmem:[%s10467_s5 + $0x1c8] sm:$0xff]  ;;  %v857_v30 = vld [vmem:[%s10467_s5 + $0x560] sm:$0xff] }
 0x13f   :  { %2346 = vmatpush1.bf16.msra.mxu0 %v6216_v33  ;;  %v6273_v3 = vcombine.high %v742_v61, %v746_v62  ;;  %v6272_v8 = vcombine.low %v742_v61, %v746_v62  ;;  %v790_v33 = vld [vmem:[%s10467_s5 + $0x348] sm:$0xff]  ;;  %v825_v62 = vld [vmem:[%s10467_s5 + $0x460] sm:$0xff] }
 0x140   :  { %2347 = vmatprep.subr.bf16.mxu0 %v6225_v34  ;;  %v794_v34 = vld [vmem:[%s10467_s5 + $0x368] sm:$0xff] }
 0x141   :  { %v6321_v37 = vcombine.high %v790_v33, %v794_v34  ;;  %v6320_v40 = vcombine.low %v790_v33, %v794_v34  ;;  %v6374_v33 = vcombine.low %v845_v21, %v849_v22 }
 0x143   :  { %2348 = vmatpush1.bf16.msra.mxu0 %v6224_v38  ;;  %v798_v38 = vld [vmem:[%s10467_s5 + $0x388] sm:$0xff] }
 0x144   :  { %2349 = vmatprep.subr.bf16.mxu0 %v6233_v39  ;;  %v802_v39 = vld [vmem:[%s10467_s5 + $0x3a8] sm:$0xff] }
 0x145   :  { %v6329_v42 = vcombine.high %v798_v38, %v802_v39  ;;  %v6328_v46 = vcombine.low %v798_v38, %v802_v39  ;;  %v861_v38 = vld [vmem:[%s10467_s5 + $0x580] sm:$0xff] }
 0x146   :  { %v865_v39 = vld [vmem:[%s10467_s5 + $0x5a0] sm:$0xff] }
 0x147   :  { %2350 = vmatpush1.bf16.msra.mxu0 %v6232_v43  ;;  %v806_v43 = vld [vmem:[%s10467_s5 + $0x3c8] sm:$0xff] }
 0x148   :  { %2351 = vmatprep.subr.bf16.mxu0 %v6241_v45  ;;  %v810_v45 = vld [vmem:[%s10467_s5 + $0x3e8] sm:$0xff] }
 0x149   :  { %v6337_v47 = vcombine.high %v806_v43, %v810_v45 }
 0x14b   :  { %2352 = vmatpush1.bf16.msra.mxu0 %v6240_v48  ;;  %v6336_v48 = vcombine.low %v806_v43, %v810_v45  ;;  %v6382_v43 = vcombine.low %v853_v29, %v857_v30 }
 0x14c   :  { %2353 = vmatprep.subr.bf16.mxu0 %v6249_v49  ;;  %v6345_v49 = vcombine.high %v8333_v11, %v8340_v14  ;;  %v6358_v11 = vcombine.low %v829_v5, %v833_v6  ;;  %v886_v5 = vld [vmem:[%s10467_s5 + $0x648] sm:$0xff] }
 0x14d   :  { %v890_v6 = vld [vmem:[%s10467_s5 + $0x668] sm:$0xff] }
 0x14f   :  { %2354 = vmatpush1.bf16.msra.mxu0 %v6248_v52  ;;  %v262_v52 = vrot.slane %v8393_v50, %v8147_v44 }
 0x150   :  { %2355 = vmatprep.subr.bf16.mxu0 %v6257_v53 }
 0x153   :  { %2356 = vmatpush1.bf16.msra.mxu0 %v6256_v56 }
 0x154   :  { %2357 = vmatprep.subr.bf16.mxu0 %v6265_v59 }
 0x157   :  { %2358 = vmatpush1.bf16.msra.mxu0 %v6264_v0  ;;  %v826_v0 = vld [vmem:[%s10467_s5 + $0x468] sm:$0xff] }
 0x158   :  { %2359 = vmatprep.subr.bf16.mxu0 %v6273_v3  ;;  %v6351_v3 = vcombine.high %v821_v60, %v825_v62  ;;  %v6353_v4 = vcombine.high %v822_v63, %v826_v0  ;;  %v6352_v13 = vcombine.low %v822_v63, %v826_v0 }
 0x15b   :  { %2360 = vmatpush1.bf16.msra.mxu0 %v6272_v8  ;;  %v834_v8 = vld [vmem:[%s10467_s5 + $0x4a8] sm:$0xff] }
 0x15c   :  { %2361 = vmatprep.subr.bf16.mxu0 %v6281_v12  ;;  %v6350_v12 = vcombine.low %v821_v60, %v825_v62  ;;  %v6361_v16 = vcombine.high %v830_v7, %v834_v8  ;;  %v6360_v14 = vcombine.low %v830_v7, %v834_v8  ;;  %v882_v60 = vld [vmem:[%s10467_s5 + $0x628] sm:$0xff] }
 0x15f   :  { %2362 = vmatpush1.bf16.msra.mxu0 %v6280_v19  ;;  %v837_v19 = vld [vmem:[%s10467_s5 + $0x4c0] sm:$0xff] }
 0x160   :  { %2363 = vmatprep.subr.bf16.mxu0 %v6289_v20  ;;  %v841_v20 = vld [vmem:[%s10467_s5 + $0x4e0] sm:$0xff] }
 0x161   :  { %v6366_v25 = vcombine.low %v837_v19, %v841_v20 }
 0x163   :  { %2364 = vmatpush1.bf16.msra.mxu0 %v6288_v23  ;;  %v846_v23 = vld [vmem:[%s10467_s5 + $0x508] sm:$0xff] }
 0x164   :  { %2365 = vmatprep.subr.bf16.mxu0 %v6297_v24  ;;  %v850_v24 = vld [vmem:[%s10467_s5 + $0x528] sm:$0xff] }
 0x165   :  { %v6376_v34 = vcombine.low %v846_v23, %v850_v24 }
 0x167   :  { %2366 = vmatpush1.bf16.msra.mxu0 %v6296_v27  ;;  %v6375_v27 = vcombine.high %v845_v21, %v849_v22  ;;  %v902_v21 = vld [vmem:[%s10467_s5 + $0x6c8] sm:$0xff] }
 0x168   :  { %2367 = vmatprep.subr.bf16.mxu0 %v6305_v28  ;;  %v6377_v28 = vcombine.high %v846_v23, %v850_v24  ;;  %v906_v22 = vld [vmem:[%s10467_s5 + $0x6e8] sm:$0xff] }
 0x16b   :  { %2368 = vmatpush1.bf16.msra.mxu0 %v6304_v31  ;;  %v854_v31 = vld [vmem:[%s10467_s5 + $0x548] sm:$0xff] }
 0x16c   :  { %2369 = vmatprep.subr.bf16.mxu0 %v6313_v32  ;;  %v858_v32 = vld [vmem:[%s10467_s5 + $0x568] sm:$0xff] }
 0x16d   :  { %v6384_v45 = vcombine.low %v854_v31, %v858_v32 }
 0x16f   :  { %2370 = vmatpush1.bf16.msra.mxu0 %v6312_v35  ;;  %v6383_v35 = vcombine.high %v853_v29, %v857_v30  ;;  %v910_v29 = vld [vmem:[%s10467_s5 + $0x708] sm:$0xff] }
 0x170   :  { %2371 = vmatprep.subr.bf16.mxu0 %v6321_v37  ;;  %v6385_v37 = vcombine.high %v854_v31, %v858_v32  ;;  %v914_v30 = vld [vmem:[%s10467_s5 + $0x728] sm:$0xff]  ;;  %v6432_v32 = vcombine.low %v902_v21, %v906_v22 }
 0x173   :  { %2372 = vmatpush1.bf16.msra.mxu0 %v6320_v40  ;;  %v862_v40 = vld [vmem:[%s10467_s5 + $0x588] sm:$0xff] }
 0x174   :  { %2373 = vmatprep.subr.bf16.mxu0 %v6329_v42  ;;  %v866_v42 = vld [vmem:[%s10467_s5 + $0x5a8] sm:$0xff] }
 0x177   :  { %2374 = vmatpush1.bf16.msra.mxu0 %v6328_v46  ;;  %v6391_v46 = vcombine.high %v861_v38, %v865_v39 }
 0x178   :  { %2375 = vmatprep.subr.bf16.mxu0 %v6337_v47  ;;  %v6393_v47 = vcombine.high %v862_v40, %v866_v42 }
 0x17b   :  { %2376 = vmatpush1.bf16.msra.mxu0 %v6336_v48  ;;  %v869_v48 = vld [vmem:[%s10467_s5 + $0x5c0] sm:$0xff] }
 0x17c   :  { %2386 = vmatprep.subr.bf16.mxu0 %v6345_v49  ;;  %v873_v49 = vld [vmem:[%s10467_s5 + $0x5e0] sm:$0xff] }
 0x1d1   :  { %v629_v53 = vpop.f32.mrb[4].mxu0 }
 0x1d2   :  { %v630_v54 = vadd.f32 %v629_v53, %v258_v51  ;;  %v631_v55 = vpop.f32.mrb[5].mxu0  ;;  %v870_v51 = vld [vmem:[%s10467_s5 + $0x5c8] sm:$0xff]  ;;  %v6390_v53 = vcombine.low %v861_v38, %v865_v39 }
 0x1d3   :  { %v632_v56 = vadd.f32 %v631_v55, %v262_v52  ;;  %v633_v57 = vpop.f32.mrb[6].mxu0  ;;  %v874_v52 = vld [vmem:[%s10467_s5 + $0x5e8] sm:$0xff]  ;;  %v6399_v55 = vcombine.high %v869_v48, %v873_v49 }
 0x1d4   :  { %v677_v58 = vmax.f32 %v630_v54, 0.0  ;;  %v634_v59 = vpop.f32.mrb[7].mxu0  ;;  %v6392_v54 = vcombine.low %v862_v40, %v866_v42  ;;  %v877_v57 = vld [vmem:[%s10467_s5 + $0x600] sm:$0xff]  ;;  %v6400_v62 = vcombine.low %v870_v51, %v874_v52  ;;  %v918_v38 = vld [vmem:[%s10467_s5 + $0x748] sm:$0xff]  ;;  %v6440_v42 = vcombine.low %v910_v29, %v914_v30 }
 0x1d5   :  { %v678_v61 = vmax.f32 %v632_v56, 0.0  ;;  %v6401_v56 = vcombine.high %v870_v51, %v874_v52  ;;  %v878_v59 = vld [vmem:[%s10467_s5 + $0x608] sm:$0xff]  ;;  %v8582_v51 = vsub.s32 2, %v8132_v36 }
 0x1d6   :  { %v8413_v2 = vpack.c.bf16 %v677_v58, %v677_v58  ;;  %v881_v58 = vld [vmem:[%s10467_s5 + $0x620] sm:$0xff]  ;;  %v6409_v0 = vcombine.high %v878_v59, %v882_v60  ;;  %v6408_v8 = vcombine.low %v878_v59, %v882_v60  ;;  %v922_v39 = vld [vmem:[%s10467_s5 + $0x768] sm:$0xff] }
 0x1d7   :  { %v8411_v1 = vpack.c.bf16 %v678_v61, %v678_v61  ;;  %v6398_v61 = vcombine.low %v869_v48, %v873_v49  ;;  %v6407_v63 = vcombine.high %v877_v57, %v881_v58  ;;  %v6406_v7 = vcombine.low %v877_v57, %v881_v58  ;;  %v926_v48 = vld [vmem:[%s10467_s5 + $0x788] sm:$0xff]  ;;  %v933_v57 = vld [vmem:[%s10467_s5 + $0x7c0] sm:$0xff] }
 0x1d8   :  { %v930_v49 = vld [vmem:[%s10467_s5 + $0x7a8] sm:$0xff]  ;;  %v937_v58 = vld [vmem:[%s10467_s5 + $0x7e0] sm:$0xff] }
 0x1d9   :  { %2295 = vmatprep.mubr.bf16.mxu1 %v8411_v1  ;;  %2377 = vmatprep.mubr.bf16.mxu0 %v8411_v1  ;;  %v934_v59 = vld [vmem:[%s10467_s5 + $0x7c8] sm:$0xff] }
 0x1da   :  { %2296 = vmatmul.mubr.bf16.vlgmr.msra.gmra.mrb[0].mxu1 %v8413_v2  ;;  %2378 = vmatmul.mubr.bf16.vlgmr.msra.gmra.mrb[12].mxu0 %v8413_v2  ;;  %v938_v60 = vld [vmem:[%s10467_s5 + $0x7e8] sm:$0xff] }
 0x1db   :  { %2305 = vmatpush1.bf16.msra.mxu1 %v6342_v17  ;;  %2387 = vmatpush1.bf16.msra.mxu0 %v6344_v18  ;;  %v6367_v17 = vcombine.high %v837_v19, %v841_v20  ;;  %v6369_v18 = vcombine.high %v838_v9, %v842_v10  ;;  %v894_v19 = vld [vmem:[%s10467_s5 + $0x688] sm:$0xff]  ;;  %v6416_v10 = vcombine.low %v886_v5, %v890_v6 }
 0x1dc   :  { %2306 = vmatprep.subr.bf16.mxu1 %v6351_v3  ;;  %2388 = vmatprep.subr.bf16.mxu0 %v6353_v4  ;;  %v885_v3 = vld [vmem:[%s10467_s5 + $0x640] sm:$0xff]  ;;  %v898_v20 = vld [vmem:[%s10467_s5 + $0x6a8] sm:$0xff] }
 0x1dd   :  { %v889_v4 = vld [vmem:[%s10467_s5 + $0x660] sm:$0xff]  ;;  %v6424_v24 = vcombine.low %v894_v19, %v898_v20 }
 0x1de   :  { %v6414_v9 = vcombine.low %v885_v3, %v889_v4 }
 0x1df   :  { %2307 = vmatpush1.bf16.msra.mxu1 %v6350_v12  ;;  %2389 = vmatpush1.bf16.msra.mxu0 %v6352_v13  ;;  %v6415_v12 = vcombine.high %v885_v3, %v889_v4  ;;  %v6417_v13 = vcombine.high %v886_v5, %v890_v6  ;;  %v6463_v3 = vcombine.high %v933_v57, %v937_v58  ;;  %v687_v5 = vld [vmem:[%s10467_s5 + $0x10] sm:$0xff] }
 0x1e0   :  { %2308 = vmatprep.subr.bf16.mxu1 %v6359_v15  ;;  %2390 = vmatprep.subr.bf16.mxu0 %v6361_v16  ;;  %v893_v15 = vld [vmem:[%s10467_s5 + $0x680] sm:$0xff]  ;;  %v6465_v4 = vcombine.high %v934_v59, %v938_v60 }
 0x1e1   :  { %v897_v16 = vld [vmem:[%s10467_s5 + $0x6a0] sm:$0xff] }
 0x1e2   :  { %v6422_v23 = vcombine.low %v893_v15, %v897_v16 }
 0x1e3   :  { %2309 = vmatpush1.bf16.msra.mxu1 %v6358_v11  ;;  %2391 = vmatpush1.bf16.msra.mxu0 %v6360_v14  ;;  %v6423_v11 = vcombine.high %v893_v15, %v897_v16  ;;  %v6425_v14 = vcombine.high %v894_v19, %v898_v20  ;;  %v6462_v19 = vcombine.low %v933_v57, %v937_v58 }
 0x1e4   :  { %2310 = vmatprep.subr.bf16.mxu1 %v6367_v17  ;;  %2392 = vmatprep.subr.bf16.mxu0 %v6369_v18  ;;  %v901_v17 = vld [vmem:[%s10467_s5 + $0x6c0] sm:$0xff]  ;;  %v6464_v20 = vcombine.low %v934_v59, %v938_v60  ;;  %v727_v59 = vld [vmem:[%s10467_s5 + $0x150] sm:$0xff] }
 0x1e5   :  { %v905_v18 = vld [vmem:[%s10467_s5 + $0x6e0] sm:$0xff]  ;;  %v731_v60 = vld [vmem:[%s10467_s5 + $0x170] sm:$0xff] }
 0x1e6   :  { %v6430_v31 = vcombine.low %v901_v17, %v905_v18 }
 0x1e7   :  { %2311 = vmatpush1.bf16.msra.mxu1 %v6366_v25  ;;  %2393 = vmatpush1.bf16.msra.mxu0 %v6368_v26  ;;  %v6431_v25 = vcombine.high %v901_v17, %v905_v18  ;;  %v6433_v26 = vcombine.high %v902_v21, %v906_v22  ;;  %v695_v18 = vld [vmem:[%s10467_s5 + $0x50] sm:$0xff]  ;;  %v696_v22 = vld [vmem:[%s10467_s5 + $0x58] sm:$0xff] }
 0x1e8   :  { %2312 = vmatprep.subr.bf16.mxu1 %v6375_v27  ;;  %2394 = vmatprep.subr.bf16.mxu0 %v6377_v28  ;;  %v909_v27 = vld [vmem:[%s10467_s5 + $0x700] sm:$0xff]  ;;  %v699_v21 = vld [vmem:[%s10467_s5 + $0x70] sm:$0xff] }
 0x1e9   :  { %v913_v28 = vld [vmem:[%s10467_s5 + $0x720] sm:$0xff] }
 0x1ea   :  { %v6438_v40 = vcombine.low %v909_v27, %v913_v28 }
 0x1eb   :  { %2313 = vmatpush1.bf16.msra.mxu1 %v6374_v33  ;;  %2395 = vmatpush1.bf16.msra.mxu0 %v6376_v34  ;;  %v6439_v33 = vcombine.high %v909_v27, %v913_v28  ;;  %v6441_v34 = vcombine.high %v910_v29, %v914_v30  ;;  %v6227_v28 = vcombine.high %v695_v18, %v699_v21  ;;  %v703_v30 = vld [vmem:[%s10467_s5 + $0x90] sm:$0xff] }
 0x1ec   :  { %2314 = vmatprep.subr.bf16.mxu1 %v6383_v35  ;;  %2396 = vmatprep.subr.bf16.mxu0 %v6385_v37  ;;  %v917_v35 = vld [vmem:[%s10467_s5 + $0x740] sm:$0xff] }
 0x1ed   :  { %v921_v37 = vld [vmem:[%s10467_s5 + $0x760] sm:$0xff] }
 0x1ee   :  { %v6446_v52 = vcombine.low %v917_v35, %v921_v37 }
 0x1ef   :  { %2315 = vmatpush1.bf16.msra.mxu1 %v6382_v43  ;;  %2397 = vmatpush1.bf16.msra.mxu0 %v6384_v45  ;;  %v6447_v43 = vcombine.high %v917_v35, %v921_v37  ;;  %v6449_v45 = vcombine.high %v918_v38, %v922_v39 }
 0x1f0   :  { %2316 = vmatprep.subr.bf16.mxu1 %v6391_v46  ;;  %2398 = vmatprep.subr.bf16.mxu0 %v6393_v47  ;;  %v925_v46 = vld [vmem:[%s10467_s5 + $0x780] sm:$0xff] }
 0x1f1   :  { %v929_v47 = vld [vmem:[%s10467_s5 + $0x7a0] sm:$0xff] }
 0x1f3   :  { %2317 = vmatpush1.bf16.msra.mxu1 %v6390_v53  ;;  %2399 = vmatpush1.bf16.msra.mxu0 %v6392_v54  ;;  %v6448_v53 = vcombine.low %v918_v38, %v922_v39  ;;  %v8585_v54 = vsub.s32 3, %v8132_v36  ;;  %v711_v39 = vld [vmem:[%s10467_s5 + $0xd0] sm:$0xff] }
 0x1f4   :  { %2318 = vmatprep.subr.bf16.mxu1 %v6399_v55  ;;  %2400 = vmatprep.subr.bf16.mxu0 %v6401_v56  ;;  %v6455_v55 = vcombine.high %v925_v46, %v929_v47  ;;  %v6457_v56 = vcombine.high %v926_v48, %v930_v49 }
 0x1f7   :  { %2319 = vmatpush1.bf16.msra.mxu1 %v6398_v61  ;;  %2401 = vmatpush1.bf16.msra.mxu0 %v6400_v62  ;;  %v266_v61 = vrot.slane %v8393_v50, %v8582_v51  ;;  %v270_v62 = vrot.slane %v8393_v50, %v8585_v54  ;;  %v692_v50 = vld [vmem:[%s10467_s5 + $0x38] sm:$0xff] }
 0x1f8   :  { %2320 = vmatprep.subr.bf16.mxu1 %v6407_v63  ;;  %2402 = vmatprep.subr.bf16.mxu0 %v6409_v0  ;;  %v6454_v63 = vcombine.low %v925_v46, %v929_v47  ;;  %v6456_v0 = vcombine.low %v926_v48, %v930_v49  ;;  %v719_v48 = vld [vmem:[%s10467_s5 + $0x110] sm:$0xff] }
 0x1f9   :  { %v723_v49 = vld [vmem:[%s10467_s5 + $0x130] sm:$0xff] }
 0x1fa   :  { %v6251_v57 = vcombine.high %v719_v48, %v723_v49 }
 0x1fb   :  { %2321 = vmatpush1.bf16.msra.mxu1 %v6406_v7  ;;  %2403 = vmatpush1.bf16.msra.mxu0 %v6408_v8  ;;  %v691_v7 = vld [vmem:[%s10467_s5 + $0x30] sm:$0xff]  ;;  %v688_v8 = vld [vmem:[%s10467_s5 + $0x18] sm:$0xff] }
 0x1fc   :  { %2322 = vmatprep.subr.bf16.mxu1 %v6415_v12  ;;  %2404 = vmatprep.subr.bf16.mxu0 %v6417_v13  ;;  %v6220_v27 = vcombine.low %v688_v8, %v692_v50 }
 0x1ff   :  { %2323 = vmatpush1.bf16.msra.mxu1 %v6414_v9  ;;  %2405 = vmatpush1.bf16.msra.mxu0 %v6416_v10 }
 0x200   :  { %2324 = vmatprep.subr.bf16.mxu1 %v6423_v11  ;;  %2406 = vmatprep.subr.bf16.mxu0 %v6425_v14  ;;  %v6219_v11 = vcombine.high %v687_v5, %v691_v7  ;;  %v6221_v14 = vcombine.high %v688_v8, %v692_v50  ;;  %v740_v8 = vld [vmem:[%s10467_s5 + $0x1b8] sm:$0xff]  ;;  %v6258_v50 = vcombine.low %v727_v59, %v731_v60 }
 0x203   :  { %2325 = vmatpush1.bf16.msra.mxu1 %v6422_v23  ;;  %2407 = vmatpush1.bf16.msra.mxu0 %v6424_v24  ;;  %v700_v23 = vld [vmem:[%s10467_s5 + $0x78] sm:$0xff] }
 0x204   :  { %2326 = vmatprep.subr.bf16.mxu1 %v6431_v25  ;;  %2408 = vmatprep.subr.bf16.mxu0 %v6433_v26  ;;  %v6218_v25 = vcombine.low %v687_v5, %v691_v7  ;;  %v6229_v29 = vcombine.high %v696_v22, %v700_v23  ;;  %v6228_v35 = vcombine.low %v696_v22, %v700_v23  ;;  %v735_v5 = vld [vmem:[%s10467_s5 + $0x190] sm:$0xff]  ;;  %v736_v7 = vld [vmem:[%s10467_s5 + $0x198] sm:$0xff] }
 0x205   :  { %v752_v22 = vld [vmem:[%s10467_s5 + $0x218] sm:$0xff] }
 0x206   :  { %v756_v23 = vld [vmem:[%s10467_s5 + $0x238] sm:$0xff] }
 0x207   :  { %2327 = vmatpush1.bf16.msra.mxu1 %v6430_v31  ;;  %2409 = vmatpush1.bf16.msra.mxu0 %v6432_v32  ;;  %v707_v31 = vld [vmem:[%s10467_s5 + $0xb0] sm:$0xff]  ;;  %v704_v32 = vld [vmem:[%s10467_s5 + $0x98] sm:$0xff] }
 0x208   :  { %2328 = vmatprep.subr.bf16.mxu1 %v6439_v33  ;;  %2410 = vmatprep.subr.bf16.mxu0 %v6441_v34  ;;  %v708_v33 = vld [vmem:[%s10467_s5 + $0xb8] sm:$0xff]  ;;  %v6226_v34 = vcombine.low %v695_v18, %v699_v21  ;;  %v6235_v37 = vcombine.high %v703_v30, %v707_v31  ;;  %v751_v18 = vld [vmem:[%s10467_s5 + $0x210] sm:$0xff] }
 0x209   :  { %v6237_v38 = vcombine.high %v704_v32, %v708_v33  ;;  %v755_v21 = vld [vmem:[%s10467_s5 + $0x230] sm:$0xff] }
 0x20b   :  { %2329 = vmatpush1.bf16.msra.mxu1 %v6438_v40  ;;  %2411 = vmatpush1.bf16.msra.mxu0 %v6440_v42  ;;  %v715_v40 = vld [vmem:[%s10467_s5 + $0xf0] sm:$0xff]  ;;  %v712_v42 = vld [vmem:[%s10467_s5 + $0xd8] sm:$0xff] }
 0x20c   :  { %2330 = vmatprep.subr.bf16.mxu1 %v6447_v43  ;;  %2412 = vmatprep.subr.bf16.mxu0 %v6449_v45  ;;  %v6234_v43 = vcombine.low %v703_v30, %v707_v31  ;;  %v6236_v45 = vcombine.low %v704_v32, %v708_v33  ;;  %v6243_v46 = vcombine.high %v711_v39, %v715_v40  ;;  %v759_v30 = vld [vmem:[%s10467_s5 + $0x250] sm:$0xff]  ;;  %v760_v32 = vld [vmem:[%s10467_s5 + $0x258] sm:$0xff] }
 0x20d   :  { %v763_v31 = vld [vmem:[%s10467_s5 + $0x270] sm:$0xff]  ;;  %v764_v33 = vld [vmem:[%s10467_s5 + $0x278] sm:$0xff] }
 0x20f   :  { %2331 = vmatpush1.bf16.msra.mxu1 %v6446_v52  ;;  %2413 = vmatpush1.bf16.msra.mxu0 %v6448_v53  ;;  %v720_v52 = vld [vmem:[%s10467_s5 + $0x118] sm:$0xff] }
 0x210   :  { %2332 = vmatprep.subr.bf16.mxu1 %v6455_v55  ;;  %2414 = vmatprep.subr.bf16.mxu0 %v6457_v56  ;;  %v724_v53 = vld [vmem:[%s10467_s5 + $0x138] sm:$0xff]  ;;  %v6242_v55 = vcombine.low %v711_v39, %v715_v40  ;;  %v767_v39 = vld [vmem:[%s10467_s5 + $0x290] sm:$0xff] }
 0x211   :  { %v670_v6 = vpop.f32.mrb[8].mxu0  ;;  %v6253_v58 = vcombine.high %v720_v52, %v724_v53  ;;  %v771_v40 = vld [vmem:[%s10467_s5 + $0x2b0] sm:$0xff] }
 0x212   :  { %v671_v12 = vadd.f32 %v670_v6, %v266_v61  ;;  %v672_v13 = vpop.f32.mrb[9].mxu0  ;;  %v728_v61 = vld [vmem:[%s10467_s5 + $0x158] sm:$0xff]  ;;  %v739_v6 = vld [vmem:[%s10467_s5 + $0x1b0] sm:$0xff] }
 0x213   :  { %v673_v15 = vadd.f32 %v672_v13, %v270_v62  ;;  %v674_v16 = vpop.f32.mrb[10].mxu0  ;;  %2333 = vmatpush1.bf16.msra.mxu1 %v6454_v63  ;;  %2415 = vmatpush1.bf16.msra.mxu0 %v6456_v0  ;;  %v732_v62 = vld [vmem:[%s10467_s5 + $0x178] sm:$0xff]  ;;  %v6250_v63 = vcombine.low %v719_v48, %v723_v49  ;;  %v6252_v0 = vcombine.low %v720_v52, %v724_v53  ;;  %v775_v48 = vld [vmem:[%s10467_s5 + $0x2d0] sm:$0xff] }
 0x214   :  { %v679_v9 = vmax.f32 %v671_v12, 0.0  ;;  %v675_v10 = vpop.f32.mrb[11].mxu0  ;;  %2334 = vmatprep.subr.bf16.mxu1 %v6463_v3  ;;  %2416 = vmatprep.subr.bf16.mxu0 %v6465_v4  ;;  %v6259_v3 = vcombine.high %v727_v59, %v731_v60  ;;  %v6261_v4 = vcombine.high %v728_v61, %v732_v62  ;;  %v6260_v12 = vcombine.low %v728_v61, %v732_v62  ;;  %v743_v16 = vld [vmem:[%s10467_s5 + $0x1d0] sm:$0xff]  ;;  %v776_v52 = vld [vmem:[%s10467_s5 + $0x2d8] sm:$0xff] }
 0x215   :  { %v680_v17 = vmax.f32 %v673_v15, 0.0  ;;  %v6267_v13 = vcombine.high %v735_v5, %v739_v6  ;;  %v6269_v15 = vcombine.high %v736_v7, %v740_v8  ;;  %v6266_v10 = vcombine.low %v735_v5, %v739_v6  ;;  %v779_v49 = vld [vmem:[%s10467_s5 + $0x2f0] sm:$0xff]  ;;  %v780_v53 = vld [vmem:[%s10467_s5 + $0x2f8] sm:$0xff] }
 0x216   :  { %v8629_v26 = vpack.c.bf16 %v679_v9, %v679_v9  ;;  %v748_v9 = vld [vmem:[%s10467_s5 + $0x1f8] sm:$0xff]  ;;  %v783_v59 = vld [vmem:[%s10467_s5 + $0x310] sm:$0xff] }
 0x217   :  { %v8627_v24 = vpack.c.bf16 %v680_v17, %v680_v17  ;;  %2335 = vmatpush1.bf16.msra.mxu1 %v6462_v19  ;;  %2417 = vmatpush1.bf16.msra.mxu0 %v6464_v20  ;;  %v747_v19 = vld [vmem:[%s10467_s5 + $0x1f0] sm:$0xff]  ;;  %v744_v20 = vld [vmem:[%s10467_s5 + $0x1d8] sm:$0xff] }
 0x218   :  { %2427 = vmatprep.subr.bf16.mxu1 %v6219_v11  ;;  %2509 = vmatprep.subr.bf16.mxu0 %v6221_v14  ;;  %v6268_v11 = vcombine.low %v736_v7, %v740_v8  ;;  %v6275_v14 = vcombine.high %v743_v16, %v747_v19  ;;  %v6277_v17 = vcombine.high %v744_v20, %v748_v9  ;;  %v787_v60 = vld [vmem:[%s10467_s5 + $0x330] sm:$0xff]  ;;  %v784_v61 = vld [vmem:[%s10467_s5 + $0x318] sm:$0xff] }
 0x219   :  { %2336 = vmatprep.mubr.bf16.mxu1 %v8627_v24  ;;  %2418 = vmatprep.mubr.bf16.mxu0 %v8627_v24  ;;  %v788_v62 = vld [vmem:[%s10467_s5 + $0x338] sm:$0xff]  ;;  %v791_v5 = vld [vmem:[%s10467_s5 + $0x350] sm:$0xff] }
 0x21a   :  { %2337 = vmatmul.mubr.bf16.vlgmr.msra.gmra.mrb[0].mxu1 %v8629_v26  ;;  %2419 = vmatmul.mubr.bf16.vlgmr.msra.gmra.mrb[12].mxu0 %v8629_v26  ;;  %v795_v6 = vld [vmem:[%s10467_s5 + $0x370] sm:$0xff]  ;;  %v792_v7 = vld [vmem:[%s10467_s5 + $0x358] sm:$0xff] }
 0x21b   :  { %2428 = vmatpush1.bf16.msra.mxu1 %v6218_v25  ;;  %2459 = vmatprep.mubr.bf16.mxu1 %v8411_v1  ;;  %v6274_v25 = vcombine.low %v743_v16, %v747_v19  ;;  %v796_v8 = vld [vmem:[%s10467_s5 + $0x378] sm:$0xff]  ;;  %v799_v16 = vld [vmem:[%s10467_s5 + $0x390] sm:$0xff] }
 0x21c   :  { %2510 = vmatpush1.bf16.msra.mxu0 %v6220_v27  ;;  %2541 = vmatprep.mubr.bf16.mxu0 %v8411_v1  ;;  %v716_v1 = vld [vmem:[%s10467_s5 + $0xf8] sm:$0xff]  ;;  %v6276_v27 = vcombine.low %v744_v20, %v748_v9  ;;  %v803_v19 = vld [vmem:[%s10467_s5 + $0x3b0] sm:$0xff] }
 0x21d   :  { %2429 = vmatprep.subr.bf16.mxu1 %v6227_v28  ;;  %2511 = vmatprep.subr.bf16.mxu0 %v6229_v29  ;;  %v6245_v47 = vcombine.high %v712_v42, %v716_v1  ;;  %v6244_v56 = vcombine.low %v712_v42, %v716_v1  ;;  %v6283_v28 = vcombine.high %v751_v18, %v755_v21  ;;  %v768_v42 = vld [vmem:[%s10467_s5 + $0x298] sm:$0xff] }
 0x21e   :  { %v6285_v29 = vcombine.high %v752_v22, %v756_v23  ;;  %v772_v1 = vld [vmem:[%s10467_s5 + $0x2b8] sm:$0xff] }
 0x21f   :  { %2430 = vmatpush1.bf16.msra.mxu1 %v6226_v34  ;;  %v6282_v34 = vcombine.low %v751_v18, %v755_v21  ;;  %v800_v20 = vld [vmem:[%s10467_s5 + $0x398] sm:$0xff]  ;;  %v807_v18 = vld [vmem:[%s10467_s5 + $0x3d0] sm:$0xff] }
 0x220   :  { %2512 = vmatpush1.bf16.msra.mxu0 %v6228_v35  ;;  %2431 = vmatprep.subr.bf16.mxu1 %v6235_v37  ;;  %v6284_v35 = vcombine.low %v752_v22, %v756_v23  ;;  %v6291_v37 = vcombine.high %v759_v30, %v763_v31  ;;  %v804_v9 = vld [vmem:[%s10467_s5 + $0x3b8] sm:$0xff]  ;;  %v811_v21 = vld [vmem:[%s10467_s5 + $0x3f0] sm:$0xff] }
 0x221   :  { %2513 = vmatprep.subr.bf16.mxu0 %v6237_v38  ;;  %v6293_v38 = vcombine.high %v760_v32, %v764_v33  ;;  %v808_v22 = vld [vmem:[%s10467_s5 + $0x3d8] sm:$0xff] }
 0x222   :  { %v812_v23 = vld [vmem:[%s10467_s5 + $0x3f8] sm:$0xff] }
 0x223   :  { %2432 = vmatpush1.bf16.msra.mxu1 %v6234_v43  ;;  %v6290_v43 = vcombine.low %v759_v30, %v763_v31  ;;  %v815_v30 = vld [vmem:[%s10467_s5 + $0x410] sm:$0xff] }
 0x224   :  { %2514 = vmatpush1.bf16.msra.mxu0 %v6236_v45  ;;  %2433 = vmatprep.subr.bf16.mxu1 %v6243_v46  ;;  %v6292_v45 = vcombine.low %v760_v32, %v764_v33  ;;  %v6299_v46 = vcombine.high %v767_v39, %v771_v40  ;;  %v819_v31 = vld [vmem:[%s10467_s5 + $0x430] sm:$0xff]  ;;  %v816_v32 = vld [vmem:[%s10467_s5 + $0x418] sm:$0xff] }
 0x225   :  { %2515 = vmatprep.subr.bf16.mxu0 %v6245_v47  ;;  %v6301_v47 = vcombine.high %v768_v42, %v772_v1  ;;  %v820_v33 = vld [vmem:[%s10467_s5 + $0x438] sm:$0xff] }
 0x227   :  { %2434 = vmatpush1.bf16.msra.mxu1 %v6242_v55  ;;  %v6298_v55 = vcombine.low %v767_v39, %v771_v40  ;;  %v823_v39 = vld [vmem:[%s10467_s5 + $0x450] sm:$0xff] }
 0x228   :  { %2516 = vmatpush1.bf16.msra.mxu0 %v6244_v56  ;;  %2435 = vmatprep.subr.bf16.mxu1 %v6251_v57  ;;  %v6300_v56 = vcombine.low %v768_v42, %v772_v1  ;;  %v6307_v57 = vcombine.high %v775_v48, %v779_v49  ;;  %v827_v40 = vld [vmem:[%s10467_s5 + $0x470] sm:$0xff]  ;;  %v6346_v42 = vcombine.low %v815_v30, %v819_v31  ;;  %v824_v1 = vld [vmem:[%s10467_s5 + $0x458] sm:$0xff] }
 0x229   :  { %2517 = vmatprep.subr.bf16.mxu0 %v6253_v58  ;;  %v6309_v58 = vcombine.high %v776_v52, %v780_v53 }
 0x22b   :  { %2436 = vmatpush1.bf16.msra.mxu1 %v6250_v63  ;;  %v6306_v63 = vcombine.low %v775_v48, %v779_v49  ;;  %v835_v48 = vld [vmem:[%s10467_s5 + $0x4b0] sm:$0xff] }
 0x22c   :  { %2518 = vmatpush1.bf16.msra.mxu0 %v6252_v0  ;;  %2437 = vmatprep.subr.bf16.mxu1 %v6259_v3  ;;  %v6308_v0 = vcombine.low %v776_v52, %v780_v53  ;;  %v6315_v3 = vcombine.high %v783_v59, %v787_v60  ;;  %v832_v52 = vld [vmem:[%s10467_s5 + $0x498] sm:$0xff] }
 0x22d   :  { %2519 = vmatprep.subr.bf16.mxu0 %v6261_v4  ;;  %v6317_v4 = vcombine.high %v784_v61, %v788_v62  ;;  %v836_v53 = vld [vmem:[%s10467_s5 + $0x4b8] sm:$0xff] }
 0x22f   :  { %2438 = vmatpush1.bf16.msra.mxu1 %v6258_v50  ;;  %v6314_v50 = vcombine.low %v783_v59, %v787_v60  ;;  %v839_v59 = vld [vmem:[%s10467_s5 + $0x4d0] sm:$0xff] }
 0x230   :  { %2520 = vmatpush1.bf16.msra.mxu0 %v6260_v12  ;;  %2439 = vmatprep.subr.bf16.mxu1 %v6267_v13  ;;  %v6316_v12 = vcombine.low %v784_v61, %v788_v62  ;;  %v6323_v13 = vcombine.high %v791_v5, %v795_v6  ;;  %v843_v60 = vld [vmem:[%s10467_s5 + $0x4f0] sm:$0xff]  ;;  %v844_v61 = vld [vmem:[%s10467_s5 + $0x4f8] sm:$0xff]  ;;  %v6364_v62 = vcombine.low %v832_v52, %v836_v53 }
 0x231   :  { %2521 = vmatprep.subr.bf16.mxu0 %v6269_v15  ;;  %v6325_v15 = vcombine.high %v792_v7, %v796_v8 }
 0x233   :  { %2440 = vmatpush1.bf16.msra.mxu1 %v6266_v10  ;;  %v6322_v10 = vcombine.low %v791_v5, %v795_v6  ;;  %v848_v5 = vld [vmem:[%s10467_s5 + $0x518] sm:$0xff] }
 0x234   :  { %2522 = vmatpush1.bf16.msra.mxu0 %v6268_v11  ;;  %2441 = vmatprep.subr.bf16.mxu1 %v6275_v14  ;;  %v6324_v11 = vcombine.low %v792_v7, %v796_v8  ;;  %v6331_v14 = vcombine.high %v799_v16, %v803_v19  ;;  %v852_v6 = vld [vmem:[%s10467_s5 + $0x538] sm:$0xff]  ;;  %v6370_v7 = vcombine.low %v839_v59, %v843_v60 }
 0x235   :  { %2523 = vmatprep.subr.bf16.mxu0 %v6277_v17  ;;  %v6333_v17 = vcombine.high %v800_v20, %v804_v9 }
 0x237   :  { %2442 = vmatpush1.bf16.msra.mxu1 %v6274_v25  ;;  %v6330_v25 = vcombine.low %v799_v16, %v803_v19  ;;  %v856_v16 = vld [vmem:[%s10467_s5 + $0x558] sm:$0xff] }
 0x238   :  { %2524 = vmatpush1.bf16.msra.mxu0 %v6276_v27  ;;  %2443 = vmatprep.subr.bf16.mxu1 %v6283_v28  ;;  %v6332_v27 = vcombine.low %v800_v20, %v804_v9  ;;  %v6339_v28 = vcombine.high %v807_v18, %v811_v21  ;;  %v860_v19 = vld [vmem:[%s10467_s5 + $0x578] sm:$0xff]  ;;  %v6380_v9 = vcombine.low %v848_v5, %v852_v6 }
 0x239   :  { %2525 = vmatprep.subr.bf16.mxu0 %v6285_v29  ;;  %v6341_v29 = vcombine.high %v808_v22, %v812_v23 }
 0x23b   :  { %2444 = vmatpush1.bf16.msra.mxu1 %v6282_v34  ;;  %v6338_v34 = vcombine.low %v807_v18, %v811_v21  ;;  %v864_v18 = vld [vmem:[%s10467_s5 + $0x598] sm:$0xff] }
 0x23c   :  { %2526 = vmatpush1.bf16.msra.mxu0 %v6284_v35  ;;  %2445 = vmatprep.subr.bf16.mxu1 %v6291_v37  ;;  %v6340_v35 = vcombine.low %v808_v22, %v812_v23  ;;  %v6347_v37 = vcombine.high %v815_v30, %v819_v31  ;;  %v868_v21 = vld [vmem:[%s10467_s5 + $0x5b8] sm:$0xff]  ;;  %v6388_v23 = vcombine.low %v856_v16, %v860_v19 }
 0x23d   :  { %2527 = vmatprep.subr.bf16.mxu0 %v6293_v38  ;;  %v6349_v38 = vcombine.high %v816_v32, %v820_v33  ;;  %v872_v30 = vld [vmem:[%s10467_s5 + $0x5d8] sm:$0xff] }
 0x23e   :  { %v876_v31 = vld [vmem:[%s10467_s5 + $0x5f8] sm:$0xff] }
 0x23f   :  { %2446 = vmatpush1.bf16.msra.mxu1 %v6290_v43  ;;  %v828_v43 = vld [vmem:[%s10467_s5 + $0x478] sm:$0xff] }
 0x240   :  { %2528 = vmatpush1.bf16.msra.mxu0 %v6292_v45  ;;  %2447 = vmatprep.subr.bf16.mxu1 %v6299_v46  ;;  %v6348_v45 = vcombine.low %v816_v32, %v820_v33  ;;  %v6355_v46 = vcombine.high %v823_v39, %v827_v40  ;;  %v6357_v49 = vcombine.high %v824_v1, %v828_v43 }
 0x241   :  { %2529 = vmatprep.subr.bf16.mxu0 %v6301_v47  ;;  %v831_v47 = vld [vmem:[%s10467_s5 + $0x490] sm:$0xff]  ;;  %v6396_v33 = vcombine.low %v864_v18, %v868_v21 }
 0x243   :  { %2448 = vmatpush1.bf16.msra.mxu1 %v6298_v55  ;;  %v6354_v55 = vcombine.low %v823_v39, %v827_v40  ;;  %v880_v39 = vld [vmem:[%s10467_s5 + $0x618] sm:$0xff] }
 0x244   :  { %2530 = vmatpush1.bf16.msra.mxu0 %v6300_v56  ;;  %2449 = vmatprep.subr.bf16.mxu1 %v6307_v57  ;;  %v6356_v56 = vcombine.low %v824_v1, %v828_v43  ;;  %v6363_v57 = vcombine.high %v831_v47, %v835_v48  ;;  %v884_v40 = vld [vmem:[%s10467_s5 + $0x638] sm:$0xff]  ;;  %v6404_v1 = vcombine.low %v872_v30, %v876_v31 }
 0x245   :  { %2531 = vmatprep.subr.bf16.mxu0 %v6309_v58  ;;  %v6365_v58 = vcombine.high %v832_v52, %v836_v53  ;;  %v6412_v53 = vcombine.low %v880_v39, %v884_v40 }
 0x247   :  { %2450 = vmatpush1.bf16.msra.mxu1 %v6306_v63  ;;  %v6371_v63 = vcombine.high %v839_v59, %v843_v60  ;;  %v896_v59 = vld [vmem:[%s10467_s5 + $0x698] sm:$0xff] }
 0x248   :  { %2532 = vmatpush1.bf16.msra.mxu0 %v6308_v0  ;;  %2451 = vmatprep.subr.bf16.mxu1 %v6315_v3  ;;  %v847_v3 = vld [vmem:[%s10467_s5 + $0x510] sm:$0xff]  ;;  %v900_v60 = vld [vmem:[%s10467_s5 + $0x6b8] sm:$0xff] }
 0x249   :  { %2533 = vmatprep.subr.bf16.mxu0 %v6317_v4  ;;  %v851_v4 = vld [vmem:[%s10467_s5 + $0x530] sm:$0xff] }
 0x24a   :  { %v6378_v20 = vcombine.low %v847_v3, %v851_v4 }
 0x24b   :  { %2452 = vmatpush1.bf16.msra.mxu1 %v6314_v50  ;;  %v6379_v50 = vcombine.high %v847_v3, %v851_v4  ;;  %v904_v3 = vld [vmem:[%s10467_s5 + $0x6d8] sm:$0xff] }
 0x24c   :  { %2534 = vmatpush1.bf16.msra.mxu0 %v6316_v12  ;;  %2453 = vmatprep.subr.bf16.mxu1 %v6323_v13  ;;  %v6381_v12 = vcombine.high %v848_v5, %v852_v6  ;;  %v855_v13 = vld [vmem:[%s10467_s5 + $0x550] sm:$0xff]  ;;  %v908_v4 = vld [vmem:[%s10467_s5 + $0x6f8] sm:$0xff]  ;;  %v6428_v6 = vcombine.low %v896_v59, %v900_v60 }
 0x24d   :  { %2535 = vmatprep.subr.bf16.mxu0 %v6325_v15  ;;  %v859_v15 = vld [vmem:[%s10467_s5 + $0x570] sm:$0xff] }
 0x24e   :  { %v6386_v22 = vcombine.low %v855_v13, %v859_v15 }
 0x24f   :  { %2454 = vmatpush1.bf16.msra.mxu1 %v6322_v10  ;;  %v6387_v10 = vcombine.high %v855_v13, %v859_v15  ;;  %v912_v13 = vld [vmem:[%s10467_s5 + $0x718] sm:$0xff] }
 0x250   :  { %2536 = vmatpush1.bf16.msra.mxu0 %v6324_v11  ;;  %2455 = vmatprep.subr.bf16.mxu1 %v6331_v14  ;;  %v6389_v11 = vcombine.high %v856_v16, %v860_v19  ;;  %v863_v14 = vld [vmem:[%s10467_s5 + $0x590] sm:$0xff]  ;;  %v916_v15 = vld [vmem:[%s10467_s5 + $0x738] sm:$0xff]  ;;  %v6436_v19 = vcombine.low %v904_v3, %v908_v4 }
 0x251   :  { %2537 = vmatprep.subr.bf16.mxu0 %v6333_v17  ;;  %v867_v17 = vld [vmem:[%s10467_s5 + $0x5b0] sm:$0xff] }
 0x252   :  { %v6394_v32 = vcombine.low %v863_v14, %v867_v17 }
 0x253   :  { %2456 = vmatpush1.bf16.msra.mxu1 %v6330_v25  ;;  %v6395_v25 = vcombine.high %v863_v14, %v867_v17  ;;  %v920_v14 = vld [vmem:[%s10467_s5 + $0x758] sm:$0xff] }
 0x254   :  { %2538 = vmatpush1.bf16.msra.mxu0 %v6332_v27  ;;  %2457 = vmatprep.subr.bf16.mxu1 %v6339_v28  ;;  %v6397_v27 = vcombine.high %v864_v18, %v868_v21  ;;  %v871_v28 = vld [vmem:[%s10467_s5 + $0x5d0] sm:$0xff]  ;;  %v924_v17 = vld [vmem:[%s10467_s5 + $0x778] sm:$0xff]  ;;  %v6444_v21 = vcombine.low %v912_v13, %v916_v15 }
 0x255   :  { %2539 = vmatprep.subr.bf16.mxu0 %v6341_v29  ;;  %v875_v29 = vld [vmem:[%s10467_s5 + $0x5f0] sm:$0xff] }
 0x257   :  { %2458 = vmatpush1.bf16.msra.mxu1 %v6338_v34  ;;  %v6403_v34 = vcombine.high %v871_v28, %v875_v29 }
 0x258   :  { %2540 = vmatpush1.bf16.msra.mxu0 %v6340_v35  ;;  %2468 = vmatprep.subr.bf16.mxu1 %v6347_v37  ;;  %v6405_v35 = vcombine.high %v872_v30, %v876_v31  ;;  %v879_v37 = vld [vmem:[%s10467_s5 + $0x610] sm:$0xff]  ;;  %v6452_v31 = vcombine.low %v920_v14, %v924_v17 }
 0x259   :  { %2550 = vmatprep.subr.bf16.mxu0 %v6349_v38  ;;  %v883_v38 = vld [vmem:[%s10467_s5 + $0x630] sm:$0xff] }
 0x25a   :  { %2460 = vmatmul.mubr.bf16.vlgmr.msra.gmra.mrb[4].mxu1 %v8413_v2  ;;  %v6411_v43 = vcombine.high %v879_v37, %v883_v38  ;;  %v6410_v52 = vcombine.low %v879_v37, %v883_v38  ;;  %v936_v37 = vld [vmem:[%s10467_s5 + $0x7d8] sm:$0xff] }
 0x25b   :  { %2542 = vmatmul.mubr.bf16.vlgmr.msra.gmra.mrb[16].mxu0 %v8413_v2  ;;  %2469 = vmatpush1.bf16.msra.mxu1 %v6346_v42  ;;  %v840_v2 = vld [vmem:[%s10467_s5 + $0x4d8] sm:$0xff]  ;;  %v6402_v42 = vcombine.low %v871_v28, %v875_v29 }
 0x25c   :  { %2500 = vmatprep.mubr.bf16.mxu1 %v8627_v24  ;;  %2551 = vmatpush1.bf16.msra.mxu0 %v6348_v45  ;;  %v6373_v0 = vcombine.high %v840_v2, %v844_v61  ;;  %v6372_v8 = vcombine.low %v840_v2, %v844_v61  ;;  %v6413_v45 = vcombine.high %v880_v39, %v884_v40  ;;  %v928_v28 = vld [vmem:[%s10467_s5 + $0x798] sm:$0xff] }
 0x25d   :  { %2582 = vmatprep.mubr.bf16.mxu0 %v8627_v24  ;;  %2470 = vmatprep.subr.bf16.mxu1 %v6355_v46  ;;  %v6362_v24 = vcombine.low %v831_v47, %v835_v48  ;;  %v887_v46 = vld [vmem:[%s10467_s5 + $0x650] sm:$0xff]  ;;  %v888_v48 = vld [vmem:[%s10467_s5 + $0x658] sm:$0xff] }
 0x25e   :  { %2552 = vmatprep.subr.bf16.mxu0 %v6357_v49  ;;  %v891_v47 = vld [vmem:[%s10467_s5 + $0x670] sm:$0xff]  ;;  %v892_v49 = vld [vmem:[%s10467_s5 + $0x678] sm:$0xff] }
 0x25f   :  { %2471 = vmatpush1.bf16.msra.mxu1 %v6354_v55  ;;  %v6419_v55 = vcombine.high %v887_v46, %v891_v47  ;;  %v6418_v2 = vcombine.low %v887_v46, %v891_v47  ;;  %v6420_v61 = vcombine.low %v888_v48, %v892_v49  ;;  %v932_v29 = vld [vmem:[%s10467_s5 + $0x7b8] sm:$0xff]  ;;  %v7196_v46 = vld [vmem:[%s10469_s7 + $0x4] ss:$28 sps:$4 sm:$0xff]   ;;  %v7199_v47 = vld [vmem:[%s10469_s7 + $0xc] ss:$28 sps:$4 sm:$0xff]  }
 0x260   :  { %2553 = vmatpush1.bf16.msra.mxu0 %v6356_v56  ;;  %2472 = vmatprep.subr.bf16.mxu1 %v6363_v57  ;;  %v6421_v56 = vcombine.high %v888_v48, %v892_v49  ;;  %v895_v57 = vld [vmem:[%s10467_s5 + $0x690] sm:$0xff]  ;;  %v940_v38 = vld [vmem:[%s10467_s5 + $0x7f8] sm:$0xff]  ;;  %v6460_v40 = vcombine.low %v928_v28, %v932_v29  ;;  %v7197_v49 = vld [vmem:[%s10469_s7 + $0x8] ss:$28 sps:$4 sm:$0xff]  }
 0x261   :  { %2554 = vmatprep.subr.bf16.mxu0 %v6365_v58  ;;  %v899_v58 = vld [vmem:[%s10467_s5 + $0x6b0] sm:$0xff]  ;;  %v7194_v48 = vld [vmem:[%s10469_s7] ss:$28 sps:$4 sm:$0xff]  }
 0x262   :  { %v6426_v5 = vcombine.low %v895_v57, %v899_v58 }
 0x263   :  { %2473 = vmatpush1.bf16.msra.mxu1 %v6362_v24  ;;  %v6427_v24 = vcombine.high %v895_v57, %v899_v58  ;;  %v7208_v57 = vld [vmem:[%s10469_s7 + $0x74] ss:$28 sps:$4 sm:$0xff]  }
 0x264   :  { %2555 = vmatpush1.bf16.msra.mxu0 %v6364_v62  ;;  %2474 = vmatprep.subr.bf16.mxu1 %v6371_v63  ;;  %v6429_v62 = vcombine.high %v896_v59, %v900_v60  ;;  %v903_v63 = vld [vmem:[%s10467_s5 + $0x6d0] sm:$0xff]  ;;  %v7214_v60 = vld [vmem:[%s10469_s7 + $0xac] ss:$28 sps:$4 sm:$0xff]  }
 0x265   :  { %2556 = vmatprep.subr.bf16.mxu0 %v6373_v0  ;;  %v907_v0 = vld [vmem:[%s10467_s5 + $0x6f0] sm:$0xff] }
 0x266   :  { %v6434_v16 = vcombine.low %v903_v63, %v907_v0  ;;  %v7206_v58 = vld [vmem:[%s10469_s7 + $0x70] ss:$28 sps:$4 sm:$0xff]   ;;  %v7209_v59 = vld [vmem:[%s10469_s7 + $0x78] ss:$28 sps:$4 sm:$0xff]  }
 0x267   :  { %2475 = vmatpush1.bf16.msra.mxu1 %v6370_v7  ;;  %v6435_v7 = vcombine.high %v903_v63, %v907_v0  ;;  %v7223_v63 = vld [vmem:[%s10469_s7 + $0xec] ss:$28 sps:$4 sm:$0xff]   ;;  %v7218_v0 = vld [vmem:[%s10469_s7 + $0xe0] ss:$28 sps:$4 sm:$0xff]  }
 0x268   :  { %2557 = vmatpush1.bf16.msra.mxu0 %v6372_v8  ;;  %2476 = vmatprep.subr.bf16.mxu1 %v6379_v50  ;;  %v6437_v8 = vcombine.high %v904_v3, %v908_v4  ;;  %v911_v50 = vld [vmem:[%s10467_s5 + $0x710] sm:$0xff]  ;;  %v7221_v3 = vld [vmem:[%s10469_s7 + $0xe8] ss:$28 sps:$4 sm:$0xff]   ;;  %v7226_v4 = vld [vmem:[%s10469_s7 + $0x11c] ss:$28 sps:$4 sm:$0xff]  }
 0x269   :  { %2558 = vmatprep.subr.bf16.mxu0 %v6381_v12  ;;  %v915_v12 = vld [vmem:[%s10467_s5 + $0x730] sm:$0xff] }
 0x26a   :  { %v6442_v18 = vcombine.low %v911_v50, %v915_v12 }
 0x26b   :  { %2477 = vmatpush1.bf16.msra.mxu1 %v6378_v20  ;;  %v6443_v20 = vcombine.high %v911_v50, %v915_v12  ;;  %v7235_v50 = vld [vmem:[%s10469_s7 + $0x15c] ss:$28 sps:$4 sm:$0xff]   ;;  %v7230_v12 = vld [vmem:[%s10469_s7 + $0x150] ss:$28 sps:$4 sm:$0xff]  }
 0x26c   :  { %2559 = vmatpush1.bf16.msra.mxu0 %v6380_v9  ;;  %2478 = vmatprep.subr.bf16.mxu1 %v6387_v10  ;;  %v6445_v9 = vcombine.high %v912_v13, %v916_v15  ;;  %v919_v10 = vld [vmem:[%s10467_s5 + $0x750] sm:$0xff]  ;;  %v7238_v15 = vld [vmem:[%s10469_s7 + $0x18c] ss:$28 sps:$4 sm:$0xff]  }
 0x26d   :  { %2560 = vmatprep.subr.bf16.mxu0 %v6389_v11  ;;  %v923_v11 = vld [vmem:[%s10467_s5 + $0x770] sm:$0xff] }
 0x26e   :  { %v6450_v30 = vcombine.low %v919_v10, %v923_v11  ;;  %v7233_v13 = vld [vmem:[%s10469_s7 + $0x158] ss:$28 sps:$4 sm:$0xff]  }
 0x26f   :  { %2479 = vmatpush1.bf16.msra.mxu1 %v6386_v22  ;;  %v6451_v22 = vcombine.high %v919_v10, %v923_v11  ;;  %v7247_v10 = vld [vmem:[%s10469_s7 + $0x1cc] ss:$28 sps:$4 sm:$0xff]   ;;  %v7242_v11 = vld [vmem:[%s10469_s7 + $0x1c0] ss:$28 sps:$4 sm:$0xff]  }
 0x270   :  { %2561 = vmatpush1.bf16.msra.mxu0 %v6388_v23  ;;  %2480 = vmatprep.subr.bf16.mxu1 %v6395_v25  ;;  %v6453_v23 = vcombine.high %v920_v14, %v924_v17  ;;  %v927_v25 = vld [vmem:[%s10467_s5 + $0x790] sm:$0xff]  ;;  %v7245_v14 = vld [vmem:[%s10469_s7 + $0x1c8] ss:$28 sps:$4 sm:$0xff]   ;;  %v7250_v17 = vld [vmem:[%s10469_s7 + $0x1fc] ss:$28 sps:$4 sm:$0xff]  }
 0x271   :  { %2562 = vmatprep.subr.bf16.mxu0 %v6397_v27  ;;  %v931_v27 = vld [vmem:[%s10467_s5 + $0x7b0] sm:$0xff] }
 0x272   :  { %v6458_v39 = vcombine.low %v927_v25, %v931_v27 }
 0x273   :  { %2481 = vmatpush1.bf16.msra.mxu1 %v6394_v32  ;;  %v6459_v32 = vcombine.high %v927_v25, %v931_v27  ;;  %v7259_v25 = vld [vmem:[%s10469_s7 + $0x23c] ss:$28 sps:$4 sm:$0xff]   ;;  %v7254_v27 = vld [vmem:[%s10469_s7 + $0x230] ss:$28 sps:$4 sm:$0xff]  }
 0x274   :  { %2563 = vmatpush1.bf16.msra.mxu0 %v6396_v33  ;;  %2482 = vmatprep.subr.bf16.mxu1 %v6403_v34  ;;  %v6461_v33 = vcombine.high %v928_v28, %v932_v29  ;;  %v935_v34 = vld [vmem:[%s10467_s5 + $0x7d0] sm:$0xff]  ;;  %v7262_v29 = vld [vmem:[%s10469_s7 + $0x26c] ss:$28 sps:$4 sm:$0xff]  }
 0x275   :  { %2564 = vmatprep.subr.bf16.mxu0 %v6405_v35  ;;  %v939_v35 = vld [vmem:[%s10467_s5 + $0x7f0] sm:$0xff] }
 0x276   :  { %v7257_v28 = vld [vmem:[%s10469_s7 + $0x238] ss:$28 sps:$4 sm:$0xff]  }
 0x277   :  { %2483 = vmatpush1.bf16.msra.mxu1 %v6402_v42  ;;  %v6467_v42 = vcombine.high %v935_v34, %v939_v35 }
 0x278   :  { %2565 = vmatpush1.bf16.msra.mxu0 %v6404_v1  ;;  %2484 = vmatprep.subr.bf16.mxu1 %v6411_v43  ;;  %v6469_v1 = vcombine.high %v936_v37, %v940_v38  ;;  %v6466_v43 = vcombine.low %v935_v34, %v939_v35  ;;  %v7271_v34 = vld [vmem:[%s10469_s7 + $0x2ac] ss:$28 sps:$4 sm:$0xff]   ;;  %v7266_v35 = vld [vmem:[%s10469_s7 + $0x2a0] ss:$28 sps:$4 sm:$0xff]  }
 0x279   :  { %2566 = vmatprep.subr.bf16.mxu0 %v6413_v45  ;;  %v6468_v45 = vcombine.low %v936_v37, %v940_v38  ;;  %v7269_v37 = vld [vmem:[%s10469_s7 + $0x2a8] ss:$28 sps:$4 sm:$0xff]   ;;  %v7274_v38 = vld [vmem:[%s10469_s7 + $0x2dc] ss:$28 sps:$4 sm:$0xff]  }
 0x27b   :  { %2485 = vmatpush1.bf16.msra.mxu1 %v6410_v52  ;;  %v7202_v52 = vld [vmem:[%s10469_s7 + $0x3c] ss:$28 sps:$4 sm:$0xff]  }
 0x27c   :  { %2567 = vmatpush1.bf16.msra.mxu0 %v6412_v53  ;;  %2486 = vmatprep.subr.bf16.mxu1 %v6419_v55  ;;  %v7205_v53 = vld [vmem:[%s10469_s7 + $0x44] ss:$28 sps:$4 sm:$0xff]   ;;  %v7200_v55 = vld [vmem:[%s10469_s7 + $0x38] ss:$28 sps:$4 sm:$0xff]  }
 0x27d   :  { %2568 = vmatprep.subr.bf16.mxu0 %v6421_v56  ;;  %v7203_v56 = vld [vmem:[%s10469_s7 + $0x40] ss:$28 sps:$4 sm:$0xff]  }
 0x27f   :  { %2487 = vmatpush1.bf16.msra.mxu1 %v6418_v2  ;;  %v7217_v2 = vld [vmem:[%s10469_s7 + $0xb4] ss:$28 sps:$4 sm:$0xff]  }
 0x280   :  { %2569 = vmatpush1.bf16.msra.mxu0 %v6420_v61  ;;  %2488 = vmatprep.subr.bf16.mxu1 %v6427_v24  ;;  %v7212_v61 = vld [vmem:[%s10469_s7 + $0xa8] ss:$28 sps:$4 sm:$0xff]   ;;  %v7215_v24 = vld [vmem:[%s10469_s7 + $0xb0] ss:$28 sps:$4 sm:$0xff]  }
 0x281   :  { %2570 = vmatprep.subr.bf16.mxu0 %v6429_v62  ;;  %v7220_v62 = vld [vmem:[%s10469_s7 + $0xe4] ss:$28 sps:$4 sm:$0xff]  }
 0x283   :  { %2489 = vmatpush1.bf16.msra.mxu1 %v6426_v5  ;;  %v7229_v5 = vld [vmem:[%s10469_s7 + $0x124] ss:$28 sps:$4 sm:$0xff]  }
 0x284   :  { %2571 = vmatpush1.bf16.msra.mxu0 %v6428_v6  ;;  %2490 = vmatprep.subr.bf16.mxu1 %v6435_v7  ;;  %v7224_v6 = vld [vmem:[%s10469_s7 + $0x118] ss:$28 sps:$4 sm:$0xff]   ;;  %v7227_v7 = vld [vmem:[%s10469_s7 + $0x120] ss:$28 sps:$4 sm:$0xff]  }
 0x285   :  { %2572 = vmatprep.subr.bf16.mxu0 %v6437_v8  ;;  %v7232_v8 = vld [vmem:[%s10469_s7 + $0x154] ss:$28 sps:$4 sm:$0xff]  }
 0x287   :  { %2491 = vmatpush1.bf16.msra.mxu1 %v6434_v16  ;;  %v7241_v16 = vld [vmem:[%s10469_s7 + $0x194] ss:$28 sps:$4 sm:$0xff]  }
 0x288   :  { %2573 = vmatpush1.bf16.msra.mxu0 %v6436_v19  ;;  %2492 = vmatprep.subr.bf16.mxu1 %v6443_v20  ;;  %v7236_v19 = vld [vmem:[%s10469_s7 + $0x188] ss:$28 sps:$4 sm:$0xff]   ;;  %v7239_v20 = vld [vmem:[%s10469_s7 + $0x190] ss:$28 sps:$4 sm:$0xff]  }
 0x289   :  { %2574 = vmatprep.subr.bf16.mxu0 %v6445_v9  ;;  %v7244_v9 = vld [vmem:[%s10469_s7 + $0x1c4] ss:$28 sps:$4 sm:$0xff]  }
 0x28b   :  { %2493 = vmatpush1.bf16.msra.mxu1 %v6442_v18  ;;  %v7253_v18 = vld [vmem:[%s10469_s7 + $0x204] ss:$28 sps:$4 sm:$0xff]  }
 0x28c   :  { %2575 = vmatpush1.bf16.msra.mxu0 %v6444_v21  ;;  %2494 = vmatprep.subr.bf16.mxu1 %v6451_v22  ;;  %v7248_v21 = vld [vmem:[%s10469_s7 + $0x1f8] ss:$28 sps:$4 sm:$0xff]   ;;  %v7251_v22 = vld [vmem:[%s10469_s7 + $0x200] ss:$28 sps:$4 sm:$0xff]  }
 0x28d   :  { %2576 = vmatprep.subr.bf16.mxu0 %v6453_v23  ;;  %v7256_v23 = vld [vmem:[%s10469_s7 + $0x234] ss:$28 sps:$4 sm:$0xff]  }
 0x28f   :  { %2495 = vmatpush1.bf16.msra.mxu1 %v6450_v30  ;;  %v7265_v30 = vld [vmem:[%s10469_s7 + $0x274] ss:$28 sps:$4 sm:$0xff]  }
 0x290   :  { %2577 = vmatpush1.bf16.msra.mxu0 %v6452_v31  ;;  %2496 = vmatprep.subr.bf16.mxu1 %v6459_v32  ;;  %v7260_v31 = vld [vmem:[%s10469_s7 + $0x268] ss:$28 sps:$4 sm:$0xff]   ;;  %v7263_v32 = vld [vmem:[%s10469_s7 + $0x270] ss:$28 sps:$4 sm:$0xff]  }
 0x291   :  { %2578 = vmatprep.subr.bf16.mxu0 %v6461_v33  ;;  %v7268_v33 = vld [vmem:[%s10469_s7 + $0x2a4] ss:$28 sps:$4 sm:$0xff]  }
 0x293   :  { %2497 = vmatpush1.bf16.msra.mxu1 %v6458_v39  ;;  %v7277_v39 = vld [vmem:[%s10469_s7 + $0x2e4] ss:$28 sps:$4 sm:$0xff]  }
 0x294   :  { %2579 = vmatpush1.bf16.msra.mxu0 %v6460_v40  ;;  %2498 = vmatprep.subr.bf16.mxu1 %v6467_v42  ;;  %v7272_v40 = vld [vmem:[%s10469_s7 + $0x2d8] ss:$28 sps:$4 sm:$0xff]   ;;  %v7275_v42 = vld [vmem:[%s10469_s7 + $0x2e0] ss:$28 sps:$4 sm:$0xff]  }
 0x295   :  { %2580 = vmatprep.subr.bf16.mxu0 %v6469_v1  ;;  %v7280_v1 = vld [vmem:[%s10469_s7 + $0x314] ss:$28 sps:$4 sm:$0xff]  }
 0x297   :  { %2499 = vmatpush1.bf16.msra.mxu1 %v6466_v43  ;;  %v7283_v43 = vld [vmem:[%s10469_s7 + $0x31c] ss:$28 sps:$4 sm:$0xff]  }
 0x298   :  { %2581 = vmatpush1.bf16.msra.mxu0 %v6468_v45  ;;  %5460 = vmatprep.subr.bf16.mxu1 %v7196_v46  ;;  %v7278_v45 = vld [vmem:[%s10469_s7 + $0x310] ss:$28 sps:$4 sm:$0xff]   ;;  %v7281_v46 = vld [vmem:[%s10469_s7 + $0x318] ss:$28 sps:$4 sm:$0xff]  }
 0x299   :  { %5624 = vmatprep.subr.bf16.mxu0 %v7199_v47  ;;  %v7286_v47 = vld [vmem:[%s10469_s7 + $0x34c] ss:$28 sps:$4 sm:$0xff]  }
 0x29a   :  { %2501 = vmatmul.mubr.bf16.vlgmr.msra.gmra.mrb[4].mxu1 %v8629_v26 }
 0x29b   :  { %2583 = vmatmul.mubr.bf16.vlgmr.msra.gmra.mrb[16].mxu0 %v8629_v26  ;;  %5461 = vmatpush1.bf16.msra.mxu1 %v7194_v48  ;;  %v7211_v26 = vld [vmem:[%s10469_s7 + $0x7c] ss:$28 sps:$4 sm:$0xff]   ;;  %v7289_v48 = vld [vmem:[%s10469_s7 + $0x354] ss:$28 sps:$4 sm:$0xff]  }
 0x29c   :  { %5625 = vmatpush1.bf16.msra.mxu0 %v7197_v49  ;;  %5462 = vmatprep.subr.bf16.mxu1 %v7202_v52  ;;  %v7284_v49 = vld [vmem:[%s10469_s7 + $0x348] ss:$28 sps:$4 sm:$0xff]   ;;  %v7287_v52 = vld [vmem:[%s10469_s7 + $0x350] ss:$28 sps:$4 sm:$0xff]  }
 0x29d   :  { %5626 = vmatprep.subr.bf16.mxu0 %v7205_v53  ;;  %v7292_v53 = vld [vmem:[%s10469_s7 + $0x384] ss:$28 sps:$4 sm:$0xff]  }
 0x29f   :  { %5463 = vmatpush1.bf16.msra.mxu1 %v7200_v55  ;;  %v7295_v55 = vld [vmem:[%s10469_s7 + $0x38c] ss:$28 sps:$4 sm:$0xff]  }
 0x2a0   :  { %5627 = vmatpush1.bf16.msra.mxu0 %v7203_v56  ;;  %5464 = vmatprep.subr.bf16.mxu1 %v7208_v57  ;;  %v9204_v56 = vld [vmem:[%s10468_s6] sm:$0xff] }
 0x2a1   :  { %5628 = vmatprep.subr.bf16.mxu0 %v7211_v26  ;;  %v946_v57 = vrot.slane %v9204_v56, %v8141_v41  ;;  %v950_v26 = vrot.slane %v9204_v56, %v8147_v44 }
 0x2a3   :  { %5465 = vmatpush1.bf16.msra.mxu1 %v7206_v58  ;;  %v958_v58 = vrot.slane %v9204_v56, %v8585_v54 }
 0x2a4   :  { %5629 = vmatpush1.bf16.msra.mxu0 %v7209_v59  ;;  %5466 = vmatprep.subr.bf16.mxu1 %v7214_v60 }
 0x2a5   :  { %5630 = vmatprep.subr.bf16.mxu0 %v7217_v2 }
 0x2a7   :  { %5467 = vmatpush1.bf16.msra.mxu1 %v7212_v61 }
 0x2a8   :  { %5631 = vmatpush1.bf16.msra.mxu0 %v7215_v24  ;;  %5468 = vmatprep.subr.bf16.mxu1 %v7220_v62 }
 0x2a9   :  { %5632 = vmatprep.subr.bf16.mxu0 %v7223_v63 }
 0x2ab   :  { %5469 = vmatpush1.bf16.msra.mxu1 %v7218_v0 }
 0x2ac   :  { %5633 = vmatpush1.bf16.msra.mxu0 %v7221_v3  ;;  %5470 = vmatprep.subr.bf16.mxu1 %v7226_v4 }
 0x2ad   :  { %5634 = vmatprep.subr.bf16.mxu0 %v7229_v5 }
 0x2af   :  { %5471 = vmatpush1.bf16.msra.mxu1 %v7224_v6 }
 0x2b0   :  { %5635 = vmatpush1.bf16.msra.mxu0 %v7227_v7  ;;  %5472 = vmatprep.subr.bf16.mxu1 %v7232_v8 }
 0x2b1   :  { %5636 = vmatprep.subr.bf16.mxu0 %v7235_v50 }
 0x2b3   :  { %5473 = vmatpush1.bf16.msra.mxu1 %v7230_v12  ;;  %v7290_v12 = vld [vmem:[%s10469_s7 + $0x380] ss:$28 sps:$4 sm:$0xff]  }
 0x2b4   :  { %5637 = vmatpush1.bf16.msra.mxu0 %v7233_v13  ;;  %5474 = vmatprep.subr.bf16.mxu1 %v7238_v15  ;;  %v7293_v13 = vld [vmem:[%s10469_s7 + $0x388] ss:$28 sps:$4 sm:$0xff]  }
 0x2b5   :  { %5638 = vmatprep.subr.bf16.mxu0 %v7241_v16  ;;  %v7298_v16 = vld [vmem:[%s10469_s7 + $0x3bc] ss:$28 sps:$4 sm:$0xff]  }
 0x2b7   :  { %5475 = vmatpush1.bf16.msra.mxu1 %v7236_v19  ;;  %v7301_v19 = vld [vmem:[%s10469_s7 + $0x3c4] ss:$28 sps:$4 sm:$0xff]  }
 0x2b8   :  { %5639 = vmatpush1.bf16.msra.mxu0 %v7239_v20  ;;  %5476 = vmatprep.subr.bf16.mxu1 %v7244_v9  ;;  %v7296_v9 = vld [vmem:[%s10469_s7 + $0x3b8] ss:$28 sps:$4 sm:$0xff]  }
 0x2b9   :  { %5640 = vmatprep.subr.bf16.mxu0 %v7247_v10  ;;  %v7299_v10 = vld [vmem:[%s10469_s7 + $0x3c0] ss:$28 sps:$4 sm:$0xff]  }
 0x2bb   :  { %5477 = vmatpush1.bf16.msra.mxu1 %v7242_v11  ;;  %v7304_v11 = vld [vmem:[%s10469_s7 + $0x3f4] ss:$28 sps:$4 sm:$0xff]  }
 0x2bc   :  { %5641 = vmatpush1.bf16.msra.mxu0 %v7245_v14  ;;  %5478 = vmatprep.subr.bf16.mxu1 %v7250_v17  ;;  %v7307_v14 = vld [vmem:[%s10469_s7 + $0x3fc] ss:$28 sps:$4 sm:$0xff]   ;;  %v7302_v17 = vld [vmem:[%s10469_s7 + $0x3f0] ss:$28 sps:$4 sm:$0xff]  }
 0x2bd   :  { %5642 = vmatprep.subr.bf16.mxu0 %v7253_v18  ;;  %v7305_v18 = vld [vmem:[%s10469_s7 + $0x3f8] ss:$28 sps:$4 sm:$0xff]  }
 0x2bf   :  { %5479 = vmatpush1.bf16.msra.mxu1 %v7248_v21  ;;  %v7310_v21 = vld [vmem:[%s10469_s7 + $0x42c] ss:$28 sps:$4 sm:$0xff]  }
 0x2c0   :  { %5643 = vmatpush1.bf16.msra.mxu0 %v7251_v22  ;;  %5480 = vmatprep.subr.bf16.mxu1 %v7256_v23  ;;  %v7313_v22 = vld [vmem:[%s10469_s7 + $0x434] ss:$28 sps:$4 sm:$0xff]   ;;  %v7308_v23 = vld [vmem:[%s10469_s7 + $0x428] ss:$28 sps:$4 sm:$0xff]  }
 0x2c1   :  { %5644 = vmatprep.subr.bf16.mxu0 %v7259_v25  ;;  %v7311_v25 = vld [vmem:[%s10469_s7 + $0x430] ss:$28 sps:$4 sm:$0xff]  }
 0x2c3   :  { %5481 = vmatpush1.bf16.msra.mxu1 %v7254_v27  ;;  %v7316_v27 = vld [vmem:[%s10469_s7 + $0x464] ss:$28 sps:$4 sm:$0xff]  }
 0x2c4   :  { %5645 = vmatpush1.bf16.msra.mxu0 %v7257_v28  ;;  %5482 = vmatprep.subr.bf16.mxu1 %v7262_v29  ;;  %v7319_v28 = vld [vmem:[%s10469_s7 + $0x46c] ss:$28 sps:$4 sm:$0xff]   ;;  %v7314_v29 = vld [vmem:[%s10469_s7 + $0x460] ss:$28 sps:$4 sm:$0xff]  }
 0x2c5   :  { %5646 = vmatprep.subr.bf16.mxu0 %v7265_v30  ;;  %v7317_v30 = vld [vmem:[%s10469_s7 + $0x468] ss:$28 sps:$4 sm:$0xff]  }
 0x2c7   :  { %5483 = vmatpush1.bf16.msra.mxu1 %v7260_v31  ;;  %v7322_v31 = vld [vmem:[%s10469_s7 + $0x49c] ss:$28 sps:$4 sm:$0xff]  }
 0x2c8   :  { %5647 = vmatpush1.bf16.msra.mxu0 %v7263_v32  ;;  %5484 = vmatprep.subr.bf16.mxu1 %v7268_v33  ;;  %v7325_v32 = vld [vmem:[%s10469_s7 + $0x4a4] ss:$28 sps:$4 sm:$0xff]   ;;  %v7320_v33 = vld [vmem:[%s10469_s7 + $0x498] ss:$28 sps:$4 sm:$0xff]  }
 0x2c9   :  { %5648 = vmatprep.subr.bf16.mxu0 %v7271_v34  ;;  %v7323_v34 = vld [vmem:[%s10469_s7 + $0x4a0] ss:$28 sps:$4 sm:$0xff]  }
 0x2cb   :  { %5485 = vmatpush1.bf16.msra.mxu1 %v7266_v35  ;;  %v7328_v35 = vld [vmem:[%s10469_s7 + $0x4d4] ss:$28 sps:$4 sm:$0xff]  }
 0x2cc   :  { %5649 = vmatpush1.bf16.msra.mxu0 %v7269_v37  ;;  %5486 = vmatprep.subr.bf16.mxu1 %v7274_v38  ;;  %v7331_v37 = vld [vmem:[%s10469_s7 + $0x4dc] ss:$28 sps:$4 sm:$0xff]   ;;  %v7326_v38 = vld [vmem:[%s10469_s7 + $0x4d0] ss:$28 sps:$4 sm:$0xff]  }
 0x2cd   :  { %5650 = vmatprep.subr.bf16.mxu0 %v7277_v39  ;;  %v7329_v39 = vld [vmem:[%s10469_s7 + $0x4d8] ss:$28 sps:$4 sm:$0xff]  }
 0x2cf   :  { %5487 = vmatpush1.bf16.msra.mxu1 %v7272_v40  ;;  %v7334_v40 = vld [vmem:[%s10469_s7 + $0x50c] ss:$28 sps:$4 sm:$0xff]  }
 0x2d0   :  { %5651 = vmatpush1.bf16.msra.mxu0 %v7275_v42  ;;  %5488 = vmatprep.subr.bf16.mxu1 %v7280_v1  ;;  %v7337_v42 = vld [vmem:[%s10469_s7 + $0x514] ss:$28 sps:$4 sm:$0xff]   ;;  %v7332_v1 = vld [vmem:[%s10469_s7 + $0x508] ss:$28 sps:$4 sm:$0xff]  }
 0x2d1   :  { %5652 = vmatprep.subr.bf16.mxu0 %v7283_v43  ;;  %v7335_v43 = vld [vmem:[%s10469_s7 + $0x510] ss:$28 sps:$4 sm:$0xff]  }
 0x2d3   :  { %5489 = vmatpush1.bf16.msra.mxu1 %v7278_v45  ;;  %v7340_v45 = vld [vmem:[%s10469_s7 + $0x544] ss:$28 sps:$4 sm:$0xff]  }
 0x2d4   :  { %5653 = vmatpush1.bf16.msra.mxu0 %v7281_v46  ;;  %5490 = vmatprep.subr.bf16.mxu1 %v7286_v47  ;;  %v7343_v46 = vld [vmem:[%s10469_s7 + $0x54c] ss:$28 sps:$4 sm:$0xff]   ;;  %v7338_v47 = vld [vmem:[%s10469_s7 + $0x540] ss:$28 sps:$4 sm:$0xff]  }
 0x2d5   :  { %5654 = vmatprep.subr.bf16.mxu0 %v7289_v48  ;;  %v7341_v48 = vld [vmem:[%s10469_s7 + $0x548] ss:$28 sps:$4 sm:$0xff]  }
 0x2d7   :  { %5491 = vmatpush1.bf16.msra.mxu1 %v7284_v49  ;;  %v7346_v49 = vld [vmem:[%s10469_s7 + $0x57c] ss:$28 sps:$4 sm:$0xff]  }
 0x2d8   :  { %5655 = vmatpush1.bf16.msra.mxu0 %v7287_v52  ;;  %5501 = vmatprep.subr.bf16.mxu1 %v7292_v53  ;;  %v7349_v52 = vld [vmem:[%s10469_s7 + $0x584] ss:$28 sps:$4 sm:$0xff]   ;;  %v7344_v53 = vld [vmem:[%s10469_s7 + $0x578] ss:$28 sps:$4 sm:$0xff]  }
 0x2d9   :  { %5665 = vmatprep.subr.bf16.mxu0 %v7295_v55  ;;  %v7347_v55 = vld [vmem:[%s10469_s7 + $0x580] ss:$28 sps:$4 sm:$0xff]  }
 0x2ed   :  { %v2338_v59 = vpop.f32.mrb[0].mxu1  ;;  %v9212_v60 = vpop.f32.mrb[12].mxu0 }
 0x2ee   :  { %v7006_v2 = vadd.f32 %v2338_v59, %v946_v57  ;;  %v2340_v61 = vpop.f32.mrb[1].mxu1  ;;  %v2422_v24 = vpop.f32.mrb[13].mxu0  ;;  %v7352_v57 = vld [vmem:[%s10469_s7 + $0x5b4] ss:$28 sps:$4 sm:$0xff]  }
 0x2ef   :  { %v7007_v62 = vadd.f32 %v2340_v61, %v950_v26  ;;  %v7009_v63 = vadd.f32 %v2422_v24, %v958_v58  ;;  %v2342_v0 = vpop.f32.mrb[2].mxu1  ;;  %v2424_v3 = vpop.f32.mrb[14].mxu0  ;;  %v7355_v26 = vld [vmem:[%s10469_s7 + $0x5bc] ss:$28 sps:$4 sm:$0xff]   ;;  %v7350_v58 = vld [vmem:[%s10469_s7 + $0x5b0] ss:$28 sps:$4 sm:$0xff]  }
 0x2f0   :  { %v2591_v4 = vmax.f32 %v7006_v2, 0.0  ;;  %v2343_v5 = vpop.f32.mrb[3].mxu1  ;;  %v2425_v6 = vpop.f32.mrb[15].mxu0  ;;  %v7353_v59 = vld [vmem:[%s10469_s7 + $0x5b8] ss:$28 sps:$4 sm:$0xff]  }
 0x2f1   :  { %v2592_v7 = vmax.f32 %v7007_v62, 0.0  ;;  %v2594_v8 = vmax.f32 %v7009_v63, 0.0  ;;  %v7358_v2 = vld [vmem:[%s10469_s7 + $0x5ec] ss:$28 sps:$4 sm:$0xff]   ;;  %v7361_v61 = vld [vmem:[%s10469_s7 + $0x5f4] ss:$28 sps:$4 sm:$0xff]  }
 0x2f2   :  { %v9222_v15 = vpack.c.bf16 %v2591_v4, %v2591_v4  ;;  %v7356_v24 = vld [vmem:[%s10469_s7 + $0x5e8] ss:$28 sps:$4 sm:$0xff]   ;;  %v7359_v62 = vld [vmem:[%s10469_s7 + $0x5f0] ss:$28 sps:$4 sm:$0xff]   ;;  %v7362_v3 = vld [vmem:[%s10469_s7 + $0x620] ss:$28 sps:$4 sm:$0xff]  }
 0x2f3   :  { %v9214_v50 = vpack.c.bf16 %v2592_v7, %v2592_v7  ;;  %v9232_v20 = vpack.c.bf16 %v2594_v8, %v2594_v8  ;;  %v7364_v63 = vld [vmem:[%s10469_s7 + $0x624] ss:$28 sps:$4 sm:$0xff]   ;;  %v7367_v0 = vld [vmem:[%s10469_s7 + $0x62c] ss:$28 sps:$4 sm:$0xff]   ;;  %v7370_v5 = vld [vmem:[%s10469_s7 + $0x65c] ss:$28 sps:$4 sm:$0xff]  }
 0x2f4   :  { %v7365_v4 = vld [vmem:[%s10469_s7 + $0x628] ss:$28 sps:$4 sm:$0xff]   ;;  %v7368_v7 = vld [vmem:[%s10469_s7 + $0x658] ss:$28 sps:$4 sm:$0xff]   ;;  %v7371_v8 = vld [vmem:[%s10469_s7 + $0x660] ss:$28 sps:$4 sm:$0xff]  }
 0x2f5   :  { %5492 = vmatprep.mubr.bf16.mxu1 %v9214_v50  ;;  %5656 = vmatprep.mubr.bf16.mxu0 %v9214_v50  ;;  %v7373_v6 = vld [vmem:[%s10469_s7 + $0x664] ss:$28 sps:$4 sm:$0xff]  }
 0x2f6   :  { %5493 = vmatmul.mubr.bf16.vlgmr.msra.gmra.mrb[8].mxu1 %v9222_v15  ;;  %5657 = vmatmul.mubr.bf16.vlgmr.msra.gmra.mrb[20].mxu0 %v9222_v15 }
 0x2f7   :  { %5502 = vmatpush1.bf16.msra.mxu1 %v7290_v12  ;;  %5666 = vmatpush1.bf16.msra.mxu0 %v7293_v13  ;;  %v954_v12 = vrot.slane %v9204_v56, %v8582_v51  ;;  %v7376_v13 = vld [vmem:[%s10469_s7 + $0x694] ss:$28 sps:$4 sm:$0xff]  }
 0x2f8   :  { %5533 = vmatprep.mubr.bf16.mxu1 %v9232_v20  ;;  %5697 = vmatprep.mubr.bf16.mxu0 %v9232_v20 }
 0x2f9   :  { %5503 = vmatprep.subr.bf16.mxu1 %v7298_v16  ;;  %5667 = vmatprep.subr.bf16.mxu0 %v7301_v19  ;;  %v7379_v16 = vld [vmem:[%s10469_s7 + $0x69c] ss:$28 sps:$4 sm:$0xff]   ;;  %v7374_v19 = vld [vmem:[%s10469_s7 + $0x690] ss:$28 sps:$4 sm:$0xff]  }
 0x2fb   :  { %5504 = vmatpush1.bf16.msra.mxu1 %v7296_v9  ;;  %5668 = vmatpush1.bf16.msra.mxu0 %v7299_v10  ;;  %v7377_v9 = vld [vmem:[%s10469_s7 + $0x698] ss:$28 sps:$4 sm:$0xff]   ;;  %v7008_v10 = vadd.f32 %v9212_v60, %v954_v12  ;;  %v7383_v60 = vld [vmem:[%s10469_s7 + $0x6d0] ss:$28 sps:$4 sm:$0xff]  }
 0x2fc   :  { %5505 = vmatprep.subr.bf16.mxu1 %v7304_v11  ;;  %5669 = vmatprep.subr.bf16.mxu0 %v7307_v14  ;;  %v7382_v11 = vld [vmem:[%s10469_s7 + $0x6cc] ss:$28 sps:$4 sm:$0xff]   ;;  %v7385_v14 = vld [vmem:[%s10469_s7 + $0x6d4] ss:$28 sps:$4 sm:$0xff]  }
 0x2fd   :  { %v7449_v12 = vld [vmem:[%s10469_s7 + $0x938] ss:$28 sps:$4 sm:$0xff]  }
 0x2ff   :  { %5506 = vmatpush1.bf16.msra.mxu1 %v7302_v17  ;;  %5670 = vmatpush1.bf16.msra.mxu0 %v7305_v18  ;;  %v7380_v17 = vld [vmem:[%s10469_s7 + $0x6c8] ss:$28 sps:$4 sm:$0xff]   ;;  %v2593_v18 = vmax.f32 %v7008_v10, 0.0 }
 0x300   :  { %5507 = vmatprep.subr.bf16.mxu1 %v7310_v21  ;;  %5671 = vmatprep.subr.bf16.mxu0 %v7313_v22  ;;  %v7388_v21 = vld [vmem:[%s10469_s7 + $0x704] ss:$28 sps:$4 sm:$0xff]   ;;  %v7391_v22 = vld [vmem:[%s10469_s7 + $0x70c] ss:$28 sps:$4 sm:$0xff]  }
 0x301   :  { %v7460_v10 = vld [vmem:[%s10469_s7 + $0x9a4] ss:$28 sps:$4 sm:$0xff]  }
 0x303   :  { %5508 = vmatpush1.bf16.msra.mxu1 %v7308_v23  ;;  %5672 = vmatpush1.bf16.msra.mxu0 %v7311_v25  ;;  %v7386_v23 = vld [vmem:[%s10469_s7 + $0x700] ss:$28 sps:$4 sm:$0xff]   ;;  %v7389_v25 = vld [vmem:[%s10469_s7 + $0x708] ss:$28 sps:$4 sm:$0xff]  }
 0x304   :  { %5509 = vmatprep.subr.bf16.mxu1 %v7316_v27  ;;  %5673 = vmatprep.subr.bf16.mxu0 %v7319_v28  ;;  %v9427_v27 = vpack.c.bf16 %v2593_v18, %v2593_v18  ;;  %v7394_v28 = vld [vmem:[%s10469_s7 + $0x73c] ss:$28 sps:$4 sm:$0xff]   ;;  %v7469_v18 = vld [vmem:[%s10469_s7 + $0x9e4] ss:$28 sps:$4 sm:$0xff]  }
 0x307   :  { %5510 = vmatpush1.bf16.msra.mxu1 %v7314_v29  ;;  %5674 = vmatpush1.bf16.msra.mxu0 %v7317_v30  ;;  %v7397_v29 = vld [vmem:[%s10469_s7 + $0x744] ss:$28 sps:$4 sm:$0xff]   ;;  %v7392_v30 = vld [vmem:[%s10469_s7 + $0x738] ss:$28 sps:$4 sm:$0xff]  }
 0x308   :  { %5511 = vmatprep.subr.bf16.mxu1 %v7322_v31  ;;  %5675 = vmatprep.subr.bf16.mxu0 %v7325_v32  ;;  %v7395_v31 = vld [vmem:[%s10469_s7 + $0x740] ss:$28 sps:$4 sm:$0xff]   ;;  %v7400_v32 = vld [vmem:[%s10469_s7 + $0x774] ss:$28 sps:$4 sm:$0xff]  }
 0x30b   :  { %5512 = vmatpush1.bf16.msra.mxu1 %v7320_v33  ;;  %5676 = vmatpush1.bf16.msra.mxu0 %v7323_v34  ;;  %v7403_v33 = vld [vmem:[%s10469_s7 + $0x77c] ss:$28 sps:$4 sm:$0xff]   ;;  %v7398_v34 = vld [vmem:[%s10469_s7 + $0x770] ss:$28 sps:$4 sm:$0xff]  }
 0x30c   :  { %5513 = vmatprep.subr.bf16.mxu1 %v7328_v35  ;;  %5677 = vmatprep.subr.bf16.mxu0 %v7331_v37  ;;  %v7401_v35 = vld [vmem:[%s10469_s7 + $0x778] ss:$28 sps:$4 sm:$0xff]   ;;  %v7406_v37 = vld [vmem:[%s10469_s7 + $0x7ac] ss:$28 sps:$4 sm:$0xff]  }
 0x30f   :  { %5514 = vmatpush1.bf16.msra.mxu1 %v7326_v38  ;;  %5678 = vmatpush1.bf16.msra.mxu0 %v7329_v39  ;;  %v7409_v38 = vld [vmem:[%s10469_s7 + $0x7b4] ss:$28 sps:$4 sm:$0xff]   ;;  %v7404_v39 = vld [vmem:[%s10469_s7 + $0x7a8] ss:$28 sps:$4 sm:$0xff]  }
 0x310   :  { %5515 = vmatprep.subr.bf16.mxu1 %v7334_v40  ;;  %5679 = vmatprep.subr.bf16.mxu0 %v7337_v42  ;;  %v7407_v40 = vld [vmem:[%s10469_s7 + $0x7b0] ss:$28 sps:$4 sm:$0xff]   ;;  %v7412_v42 = vld [vmem:[%s10469_s7 + $0x7e4] ss:$28 sps:$4 sm:$0xff]  }
 0x313   :  { %5516 = vmatpush1.bf16.msra.mxu1 %v7332_v1  ;;  %5680 = vmatpush1.bf16.msra.mxu0 %v7335_v43  ;;  %v7415_v1 = vld [vmem:[%s10469_s7 + $0x7ec] ss:$28 sps:$4 sm:$0xff]   ;;  %v7410_v43 = vld [vmem:[%s10469_s7 + $0x7e0] ss:$28 sps:$4 sm:$0xff]  }
 0x314   :  { %5517 = vmatprep.subr.bf16.mxu1 %v7340_v45  ;;  %5681 = vmatprep.subr.bf16.mxu0 %v7343_v46  ;;  %v7413_v45 = vld [vmem:[%s10469_s7 + $0x7e8] ss:$28 sps:$4 sm:$0xff]   ;;  %v7418_v46 = vld [vmem:[%s10469_s7 + $0x81c] ss:$28 sps:$4 sm:$0xff]  }
 0x317   :  { %5518 = vmatpush1.bf16.msra.mxu1 %v7338_v47  ;;  %5682 = vmatpush1.bf16.msra.mxu0 %v7341_v48  ;;  %v7421_v47 = vld [vmem:[%s10469_s7 + $0x824] ss:$28 sps:$4 sm:$0xff]   ;;  %v7416_v48 = vld [vmem:[%s10469_s7 + $0x818] ss:$28 sps:$4 sm:$0xff]  }
 0x318   :  { %5519 = vmatprep.subr.bf16.mxu1 %v7346_v49  ;;  %5683 = vmatprep.subr.bf16.mxu0 %v7349_v52  ;;  %v7419_v49 = vld [vmem:[%s10469_s7 + $0x820] ss:$28 sps:$4 sm:$0xff]   ;;  %v7424_v52 = vld [vmem:[%s10469_s7 + $0x854] ss:$28 sps:$4 sm:$0xff]  }
 0x31b   :  { %5520 = vmatpush1.bf16.msra.mxu1 %v7344_v53  ;;  %5684 = vmatpush1.bf16.msra.mxu0 %v7347_v55  ;;  %v7427_v53 = vld [vmem:[%s10469_s7 + $0x85c] ss:$28 sps:$4 sm:$0xff]   ;;  %v7422_v55 = vld [vmem:[%s10469_s7 + $0x850] ss:$28 sps:$4 sm:$0xff]  }
 0x31c   :  { %5521 = vmatprep.subr.bf16.mxu1 %v7352_v57  ;;  %5685 = vmatprep.subr.bf16.mxu0 %v7355_v26  ;;  %v7425_v57 = vld [vmem:[%s10469_s7 + $0x858] ss:$28 sps:$4 sm:$0xff]   ;;  %v7430_v26 = vld [vmem:[%s10469_s7 + $0x88c] ss:$28 sps:$4 sm:$0xff]  }
 0x31f   :  { %5522 = vmatpush1.bf16.msra.mxu1 %v7350_v58  ;;  %5686 = vmatpush1.bf16.msra.mxu0 %v7353_v59  ;;  %v7433_v58 = vld [vmem:[%s10469_s7 + $0x894] ss:$28 sps:$4 sm:$0xff]   ;;  %v7428_v59 = vld [vmem:[%s10469_s7 + $0x888] ss:$28 sps:$4 sm:$0xff]  }
 0x320   :  { %5523 = vmatprep.subr.bf16.mxu1 %v7358_v2  ;;  %5687 = vmatprep.subr.bf16.mxu0 %v7361_v61  ;;  %v7431_v2 = vld [vmem:[%s10469_s7 + $0x890] ss:$28 sps:$4 sm:$0xff]   ;;  %v7436_v61 = vld [vmem:[%s10469_s7 + $0x8c4] ss:$28 sps:$4 sm:$0xff]  }
 0x323   :  { %5524 = vmatpush1.bf16.msra.mxu1 %v7356_v24  ;;  %5688 = vmatpush1.bf16.msra.mxu0 %v7359_v62  ;;  %v7439_v24 = vld [vmem:[%s10469_s7 + $0x8cc] ss:$28 sps:$4 sm:$0xff]   ;;  %v7434_v62 = vld [vmem:[%s10469_s7 + $0x8c0] ss:$28 sps:$4 sm:$0xff]  }
 0x324   :  { %5525 = vmatprep.subr.bf16.mxu1 %v7364_v63  ;;  %5689 = vmatprep.subr.bf16.mxu0 %v7367_v0  ;;  %v7437_v63 = vld [vmem:[%s10469_s7 + $0x8c8] ss:$28 sps:$4 sm:$0xff]   ;;  %v7442_v0 = vld [vmem:[%s10469_s7 + $0x8fc] ss:$28 sps:$4 sm:$0xff]  }
 0x327   :  { %5526 = vmatpush1.bf16.msra.mxu1 %v7362_v3  ;;  %5690 = vmatpush1.bf16.msra.mxu0 %v7365_v4  ;;  %v7445_v3 = vld [vmem:[%s10469_s7 + $0x904] ss:$28 sps:$4 sm:$0xff]   ;;  %v7440_v4 = vld [vmem:[%s10469_s7 + $0x8f8] ss:$28 sps:$4 sm:$0xff]  }
 0x328   :  { %5527 = vmatprep.subr.bf16.mxu1 %v7370_v5  ;;  %5691 = vmatprep.subr.bf16.mxu0 %v7373_v6  ;;  %v7443_v5 = vld [vmem:[%s10469_s7 + $0x900] ss:$28 sps:$4 sm:$0xff]   ;;  %v7448_v6 = vld [vmem:[%s10469_s7 + $0x934] ss:$28 sps:$4 sm:$0xff]  }
 0x32b   :  { %5528 = vmatpush1.bf16.msra.mxu1 %v7368_v7  ;;  %5692 = vmatpush1.bf16.msra.mxu0 %v7371_v8  ;;  %v7451_v7 = vld [vmem:[%s10469_s7 + $0x93c] ss:$28 sps:$4 sm:$0xff]   ;;  %v7446_v8 = vld [vmem:[%s10469_s7 + $0x930] ss:$28 sps:$4 sm:$0xff]  }
 0x32c   :  { %5529 = vmatprep.subr.bf16.mxu1 %v7376_v13  ;;  %5693 = vmatprep.subr.bf16.mxu0 %v7379_v16  ;;  %v7454_v13 = vld [vmem:[%s10469_s7 + $0x96c] ss:$28 sps:$4 sm:$0xff]   ;;  %v7457_v16 = vld [vmem:[%s10469_s7 + $0x974] ss:$28 sps:$4 sm:$0xff]  }
 0x32f   :  { %5530 = vmatpush1.bf16.msra.mxu1 %v7374_v19  ;;  %5694 = vmatpush1.bf16.msra.mxu0 %v7377_v9  ;;  %v7452_v19 = vld [vmem:[%s10469_s7 + $0x968] ss:$28 sps:$4 sm:$0xff]   ;;  %v7455_v9 = vld [vmem:[%s10469_s7 + $0x970] ss:$28 sps:$4 sm:$0xff]  }
 0x330   :  { %5531 = vmatprep.subr.bf16.mxu1 %v7382_v11  ;;  %5695 = vmatprep.subr.bf16.mxu0 %v7385_v14  ;;  %v7463_v11 = vld [vmem:[%s10469_s7 + $0x9ac] ss:$28 sps:$4 sm:$0xff]   ;;  %v7458_v14 = vld [vmem:[%s10469_s7 + $0x9a0] ss:$28 sps:$4 sm:$0xff]  }
 0x333   :  { %5532 = vmatpush1.bf16.msra.mxu1 %v7380_v17  ;;  %5696 = vmatpush1.bf16.msra.mxu0 %v7383_v60  ;;  %v7461_v17 = vld [vmem:[%s10469_s7 + $0x9a8] ss:$28 sps:$4 sm:$0xff]   ;;  %v7466_v60 = vld [vmem:[%s10469_s7 + $0x9dc] ss:$28 sps:$4 sm:$0xff]  }
 0x334   :  { %5542 = vmatprep.subr.bf16.mxu1 %v7388_v21  ;;  %5706 = vmatprep.subr.bf16.mxu0 %v7391_v22  ;;  %v961_v21 = vsub.s32 4, %v8132_v36  ;;  %v7464_v22 = vld [vmem:[%s10469_s7 + $0x9d8] ss:$28 sps:$4 sm:$0xff]  }
 0x336   :  { %5534 = vmatmul.mubr.bf16.vlgmr.msra.gmra.mrb[8].mxu1 %v9427_v27  ;;  %5698 = vmatmul.mubr.bf16.vlgmr.msra.gmra.mrb[20].mxu0 %v9427_v27 }
 0x337   :  { %5543 = vmatpush1.bf16.msra.mxu1 %v7386_v23  ;;  %5707 = vmatpush1.bf16.msra.mxu0 %v7389_v25  ;;  %v7467_v23 = vld [vmem:[%s10469_s7 + $0x9e0] ss:$28 sps:$4 sm:$0xff]   ;;  %v965_v25 = vsub.s32 5, %v8132_v36 }
 0x338   :  { %5544 = vmatprep.subr.bf16.mxu1 %v7394_v28  ;;  %5708 = vmatprep.subr.bf16.mxu0 %v7397_v29  ;;  %v7472_v28 = vld [vmem:[%s10469_s7 + $0xa14] ss:$28 sps:$4 sm:$0xff]   ;;  %v7475_v29 = vld [vmem:[%s10469_s7 + $0xa1c] ss:$28 sps:$4 sm:$0xff]  }
 0x33b   :  { %5545 = vmatpush1.bf16.msra.mxu1 %v7392_v30  ;;  %5709 = vmatpush1.bf16.msra.mxu0 %v7395_v31  ;;  %v973_v30 = vsub.s32 7, %v8132_v36  ;;  %v962_v31 = vrot.slane %v9204_v56, %v961_v21 }
 0x33c   :  { %5546 = vmatprep.subr.bf16.mxu1 %v7400_v32  ;;  %5710 = vmatprep.subr.bf16.mxu0 %v7403_v33  ;;  %v7470_v32 = vld [vmem:[%s10469_s7 + $0xa10] ss:$28 sps:$4 sm:$0xff]   ;;  %v7473_v33 = vld [vmem:[%s10469_s7 + $0xa18] ss:$28 sps:$4 sm:$0xff]  }
 0x33f   :  { %5547 = vmatpush1.bf16.msra.mxu1 %v7398_v34  ;;  %5711 = vmatpush1.bf16.msra.mxu0 %v7401_v35  ;;  %v966_v34 = vrot.slane %v9204_v56, %v965_v25  ;;  %v974_v35 = vrot.slane %v9204_v56, %v973_v30  ;;  %v7523_v30 = vld [vmem:[%s10469_s7 + $0xbdc] ss:$28 sps:$4 sm:$0xff]  }
 0x340   :  { %5548 = vmatprep.subr.bf16.mxu1 %v7406_v37  ;;  %5712 = vmatprep.subr.bf16.mxu0 %v7409_v38  ;;  %v7478_v37 = vld [vmem:[%s10469_s7 + $0xa4c] ss:$28 sps:$4 sm:$0xff]   ;;  %v7481_v38 = vld [vmem:[%s10469_s7 + $0xa54] ss:$28 sps:$4 sm:$0xff]  }
 0x343   :  { %5549 = vmatpush1.bf16.msra.mxu1 %v7404_v39  ;;  %5713 = vmatpush1.bf16.msra.mxu0 %v7407_v40 }
 0x344   :  { %5550 = vmatprep.subr.bf16.mxu1 %v7412_v42  ;;  %5714 = vmatprep.subr.bf16.mxu0 %v7415_v1 }
 0x347   :  { %5551 = vmatpush1.bf16.msra.mxu1 %v7410_v43  ;;  %5715 = vmatpush1.bf16.msra.mxu0 %v7413_v45  ;;  %v7476_v43 = vld [vmem:[%s10469_s7 + $0xa48] ss:$28 sps:$4 sm:$0xff]  }
 0x348   :  { %5552 = vmatprep.subr.bf16.mxu1 %v7418_v46  ;;  %5716 = vmatprep.subr.bf16.mxu0 %v7421_v47 }
 0x34b   :  { %5553 = vmatpush1.bf16.msra.mxu1 %v7416_v48  ;;  %5717 = vmatpush1.bf16.msra.mxu0 %v7419_v49  ;;  %v7479_v48 = vld [vmem:[%s10469_s7 + $0xa50] ss:$28 sps:$4 sm:$0xff]   ;;  %v7484_v49 = vld [vmem:[%s10469_s7 + $0xa84] ss:$28 sps:$4 sm:$0xff]  }
 0x34c   :  { %5554 = vmatprep.subr.bf16.mxu1 %v7424_v52  ;;  %5718 = vmatprep.subr.bf16.mxu0 %v7427_v53 }
 0x34f   :  { %5555 = vmatpush1.bf16.msra.mxu1 %v7422_v55  ;;  %5719 = vmatpush1.bf16.msra.mxu0 %v7425_v57 }
 0x350   :  { %5556 = vmatprep.subr.bf16.mxu1 %v7430_v26  ;;  %5720 = vmatprep.subr.bf16.mxu0 %v7433_v58  ;;  %v7487_v26 = vld [vmem:[%s10469_s7 + $0xa8c] ss:$28 sps:$4 sm:$0xff]  }
 0x353   :  { %5557 = vmatpush1.bf16.msra.mxu1 %v7428_v59  ;;  %5721 = vmatpush1.bf16.msra.mxu0 %v7431_v2 }
 0x354   :  { %5558 = vmatprep.subr.bf16.mxu1 %v7436_v61  ;;  %5722 = vmatprep.subr.bf16.mxu0 %v7439_v24  ;;  %v7482_v24 = vld [vmem:[%s10469_s7 + $0xa80] ss:$28 sps:$4 sm:$0xff]  }
 0x357   :  { %5559 = vmatpush1.bf16.msra.mxu1 %v7434_v62  ;;  %5723 = vmatpush1.bf16.msra.mxu0 %v7437_v63  ;;  %v7485_v62 = vld [vmem:[%s10469_s7 + $0xa88] ss:$28 sps:$4 sm:$0xff]  }
 0x358   :  { %5560 = vmatprep.subr.bf16.mxu1 %v7442_v0  ;;  %5724 = vmatprep.subr.bf16.mxu0 %v7445_v3  ;;  %v7490_v0 = vld [vmem:[%s10469_s7 + $0xabc] ss:$28 sps:$4 sm:$0xff]   ;;  %v7493_v3 = vld [vmem:[%s10469_s7 + $0xac4] ss:$28 sps:$4 sm:$0xff]  }
 0x35b   :  { %5561 = vmatpush1.bf16.msra.mxu1 %v7440_v4  ;;  %5725 = vmatpush1.bf16.msra.mxu0 %v7443_v5  ;;  %v7488_v5 = vld [vmem:[%s10469_s7 + $0xab8] ss:$28 sps:$4 sm:$0xff]  }
 0x35c   :  { %5562 = vmatprep.subr.bf16.mxu1 %v7448_v6  ;;  %5726 = vmatprep.subr.bf16.mxu0 %v7451_v7  ;;  %v7491_v6 = vld [vmem:[%s10469_s7 + $0xac0] ss:$28 sps:$4 sm:$0xff]   ;;  %v7496_v7 = vld [vmem:[%s10469_s7 + $0xaf4] ss:$28 sps:$4 sm:$0xff]  }
 0x35f   :  { %5563 = vmatpush1.bf16.msra.mxu1 %v7446_v8  ;;  %5727 = vmatpush1.bf16.msra.mxu0 %v7449_v12  ;;  %v7499_v8 = vld [vmem:[%s10469_s7 + $0xafc] ss:$28 sps:$4 sm:$0xff]   ;;  %v7494_v12 = vld [vmem:[%s10469_s7 + $0xaf0] ss:$28 sps:$4 sm:$0xff]  }
 0x360   :  { %5564 = vmatprep.subr.bf16.mxu1 %v7454_v13  ;;  %5728 = vmatprep.subr.bf16.mxu0 %v7457_v16  ;;  %v7497_v13 = vld [vmem:[%s10469_s7 + $0xaf8] ss:$28 sps:$4 sm:$0xff]   ;;  %v7502_v16 = vld [vmem:[%s10469_s7 + $0xb2c] ss:$28 sps:$4 sm:$0xff]  }
 0x363   :  { %5565 = vmatpush1.bf16.msra.mxu1 %v7452_v19  ;;  %5729 = vmatpush1.bf16.msra.mxu0 %v7455_v9  ;;  %v7505_v19 = vld [vmem:[%s10469_s7 + $0xb34] ss:$28 sps:$4 sm:$0xff]   ;;  %v7500_v9 = vld [vmem:[%s10469_s7 + $0xb28] ss:$28 sps:$4 sm:$0xff]  }
 0x364   :  { %5566 = vmatprep.subr.bf16.mxu1 %v7460_v10  ;;  %5730 = vmatprep.subr.bf16.mxu0 %v7463_v11  ;;  %v7503_v10 = vld [vmem:[%s10469_s7 + $0xb30] ss:$28 sps:$4 sm:$0xff]   ;;  %v7508_v11 = vld [vmem:[%s10469_s7 + $0xb64] ss:$28 sps:$4 sm:$0xff]  }
 0x367   :  { %5567 = vmatpush1.bf16.msra.mxu1 %v7458_v14  ;;  %5731 = vmatpush1.bf16.msra.mxu0 %v7461_v17  ;;  %v7511_v14 = vld [vmem:[%s10469_s7 + $0xb6c] ss:$28 sps:$4 sm:$0xff]   ;;  %v7506_v17 = vld [vmem:[%s10469_s7 + $0xb60] ss:$28 sps:$4 sm:$0xff]  }
 0x368   :  { %5568 = vmatprep.subr.bf16.mxu1 %v7466_v60  ;;  %5732 = vmatprep.subr.bf16.mxu0 %v7469_v18  ;;  %v7509_v60 = vld [vmem:[%s10469_s7 + $0xb68] ss:$28 sps:$4 sm:$0xff]   ;;  %v7514_v18 = vld [vmem:[%s10469_s7 + $0xb9c] ss:$28 sps:$4 sm:$0xff]  }
 0x36b   :  { %5569 = vmatpush1.bf16.msra.mxu1 %v7464_v22  ;;  %5733 = vmatpush1.bf16.msra.mxu0 %v7467_v23  ;;  %v7517_v22 = vld [vmem:[%s10469_s7 + $0xba4] ss:$28 sps:$4 sm:$0xff]   ;;  %v7512_v23 = vld [vmem:[%s10469_s7 + $0xb98] ss:$28 sps:$4 sm:$0xff]  }
 0x36c   :  { %5570 = vmatprep.subr.bf16.mxu1 %v7472_v28  ;;  %5734 = vmatprep.subr.bf16.mxu0 %v7475_v29  ;;  %v7515_v28 = vld [vmem:[%s10469_s7 + $0xba0] ss:$28 sps:$4 sm:$0xff]   ;;  %v7520_v29 = vld [vmem:[%s10469_s7 + $0xbd4] ss:$28 sps:$4 sm:$0xff]  }
 0x36d   :  { %v2502_v39 = vpop.f32.mrb[4].mxu1 }
 0x36e   :  { %v7010_v40 = vadd.f32 %v2502_v39, %v962_v31  ;;  %v9615_v42 = vpop.f32.mrb[16].mxu0  ;;  %v2504_v1 = vpop.f32.mrb[5].mxu1  ;;  %v7518_v31 = vld [vmem:[%s10469_s7 + $0xbd0] ss:$28 sps:$4 sm:$0xff]  }
 0x36f   :  { %v7011_v45 = vadd.f32 %v2504_v1, %v966_v34  ;;  %v2586_v46 = vpop.f32.mrb[17].mxu0  ;;  %5571 = vmatpush1.bf16.msra.mxu1 %v7470_v32  ;;  %5735 = vmatpush1.bf16.msra.mxu0 %v7473_v33  ;;  %v2506_v47 = vpop.f32.mrb[6].mxu1  ;;  %v7521_v32 = vld [vmem:[%s10469_s7 + $0xbd8] ss:$28 sps:$4 sm:$0xff]   ;;  %v7526_v33 = vld [vmem:[%s10469_s7 + $0xc0c] ss:$28 sps:$4 sm:$0xff]  }
 0x370   :  { %v2595_v52 = vmax.f32 %v7010_v40, 0.0  ;;  %v7013_v53 = vadd.f32 %v2586_v46, %v974_v35  ;;  %v2588_v55 = vpop.f32.mrb[18].mxu0  ;;  %v2507_v57 = vpop.f32.mrb[7].mxu1  ;;  %5572 = vmatprep.subr.bf16.mxu1 %v7478_v37  ;;  %5736 = vmatprep.subr.bf16.mxu0 %v7481_v38  ;;  %v7529_v34 = vld [vmem:[%s10469_s7 + $0xc14] ss:$28 sps:$4 sm:$0xff]  }
 0x371   :  { %v2596_v58 = vmax.f32 %v7011_v45, 0.0  ;;  %v2589_v59 = vpop.f32.mrb[19].mxu0  ;;  %v7524_v35 = vld [vmem:[%s10469_s7 + $0xc08] ss:$28 sps:$4 sm:$0xff]   ;;  %v7527_v37 = vld [vmem:[%s10469_s7 + $0xc10] ss:$28 sps:$4 sm:$0xff]  }
 0x372   :  { %v2598_v2 = vmax.f32 %v7013_v53, 0.0  ;;  %v9637_v63 = vpack.c.bf16 %v2595_v52, %v2595_v52  ;;  %v7532_v38 = vld [vmem:[%s10469_s7 + $0xc44] ss:$28 sps:$4 sm:$0xff]   ;;  %v7535_v39 = vld [vmem:[%s10469_s7 + $0xc4c] ss:$28 sps:$4 sm:$0xff]  }
 0x373   :  { %v9629_v61 = vpack.c.bf16 %v2596_v58, %v2596_v58  ;;  %5573 = vmatpush1.bf16.msra.mxu1 %v7476_v43  ;;  %5737 = vmatpush1.bf16.msra.mxu0 %v7479_v48  ;;  %v7530_v40 = vld [vmem:[%s10469_s7 + $0xc40] ss:$28 sps:$4 sm:$0xff]   ;;  %v7533_v1 = vld [vmem:[%s10469_s7 + $0xc48] ss:$28 sps:$4 sm:$0xff]   ;;  %v7536_v46 = vld [vmem:[%s10469_s7 + $0xc78] ss:$28 sps:$4 sm:$0xff]  }
 0x374   :  { %5583 = vmatprep.subr.bf16.mxu1 %v7484_v49  ;;  %5747 = vmatprep.subr.bf16.mxu0 %v7487_v26  ;;  %v9647_v4 = vpack.c.bf16 %v2598_v2, %v2598_v2  ;;  %v7538_v43 = vld [vmem:[%s10469_s7 + $0xc7c] ss:$28 sps:$4 sm:$0xff]   ;;  %v7541_v45 = vld [vmem:[%s10469_s7 + $0xc84] ss:$28 sps:$4 sm:$0xff]   ;;  %v7544_v48 = vld [vmem:[%s10469_s7 + $0xcb4] ss:$28 sps:$4 sm:$0xff]  }
 0x375   :  { %5574 = vmatprep.mubr.bf16.mxu1 %v9629_v61  ;;  %5738 = vmatprep.mubr.bf16.mxu0 %v9629_v61  ;;  %v7539_v47 = vld [vmem:[%s10469_s7 + $0xc80] ss:$28 sps:$4 sm:$0xff]   ;;  %v7542_v52 = vld [vmem:[%s10469_s7 + $0xcb0] ss:$28 sps:$4 sm:$0xff]   ;;  %v7545_v53 = vld [vmem:[%s10469_s7 + $0xcb8] ss:$28 sps:$4 sm:$0xff]  }
 0x376   :  { %5575 = vmatmul.mubr.bf16.vlgmr.msra.gmra.mrb[8].mxu1 %v9637_v63  ;;  %5739 = vmatmul.mubr.bf16.vlgmr.msra.gmra.mrb[20].mxu0 %v9637_v63  ;;  %v7547_v49 = vld [vmem:[%s10469_s7 + $0xcbc] ss:$28 sps:$4 sm:$0xff]   ;;  %v7550_v55 = vld [vmem:[%s10469_s7 + $0xcec] ss:$28 sps:$4 sm:$0xff]   ;;  %v7553_v57 = vld [vmem:[%s10469_s7 + $0xcf4] ss:$28 sps:$4 sm:$0xff]  }
 0x377   :  { %5584 = vmatpush1.bf16.msra.mxu1 %v7482_v24  ;;  %5748 = vmatpush1.bf16.msra.mxu0 %v7485_v62  ;;  %v7548_v26 = vld [vmem:[%s10469_s7 + $0xce8] ss:$28 sps:$4 sm:$0xff]   ;;  %v7551_v58 = vld [vmem:[%s10469_s7 + $0xcf0] ss:$28 sps:$4 sm:$0xff]   ;;  %v7554_v24 = vld [vmem:[%s10469_s7 + $0xd20] ss:$28 sps:$4 sm:$0xff]  }
 0x378   :  { %5615 = vmatprep.mubr.bf16.mxu1 %v9647_v4  ;;  %5779 = vmatprep.mubr.bf16.mxu0 %v9647_v4  ;;  %v7556_v59 = vld [vmem:[%s10469_s7 + $0xd24] ss:$28 sps:$4 sm:$0xff]   ;;  %v7559_v2 = vld [vmem:[%s10469_s7 + $0xd2c] ss:$28 sps:$4 sm:$0xff]  }
 0x379   :  { %5585 = vmatprep.subr.bf16.mxu1 %v7490_v0  ;;  %5749 = vmatprep.subr.bf16.mxu0 %v7493_v3  ;;  %v7557_v62 = vld [vmem:[%s10469_s7 + $0xd28] ss:$28 sps:$4 sm:$0xff]   ;;  %v969_v0 = vsub.s32 6, %v8132_v36  ;;  %v7562_v3 = vld [vmem:[%s10469_s7 + $0xd5c] ss:$28 sps:$4 sm:$0xff]  }
 0x37b   :  { %5586 = vmatpush1.bf16.msra.mxu1 %v7488_v5  ;;  %5750 = vmatpush1.bf16.msra.mxu0 %v7491_v6  ;;  %v7565_v5 = vld [vmem:[%s10469_s7 + $0xd64] ss:$28 sps:$4 sm:$0xff]   ;;  %v7560_v6 = vld [vmem:[%s10469_s7 + $0xd58] ss:$28 sps:$4 sm:$0xff]  }
 0x37c   :  { %5587 = vmatprep.subr.bf16.mxu1 %v7496_v7  ;;  %5751 = vmatprep.subr.bf16.mxu0 %v7499_v8  ;;  %v7563_v7 = vld [vmem:[%s10469_s7 + $0xd60] ss:$28 sps:$4 sm:$0xff]   ;;  %v970_v8 = vrot.slane %v9204_v56, %v969_v0  ;;  %v7569_v56 = vld [vmem:[%s10469_s7 + $0xd98] ss:$28 sps:$4 sm:$0xff]  }
 0x37f   :  { %5588 = vmatpush1.bf16.msra.mxu1 %v7494_v12  ;;  %5752 = vmatpush1.bf16.msra.mxu0 %v7497_v13  ;;  %v7568_v12 = vld [vmem:[%s10469_s7 + $0xd94] ss:$28 sps:$4 sm:$0xff]   ;;  %v7571_v13 = vld [vmem:[%s10469_s7 + $0xd9c] ss:$28 sps:$4 sm:$0xff]  }
 0x380   :  { %5589 = vmatprep.subr.bf16.mxu1 %v7502_v16  ;;  %5753 = vmatprep.subr.bf16.mxu0 %v7505_v19  ;;  %v7566_v16 = vld [vmem:[%s10469_s7 + $0xd90] ss:$28 sps:$4 sm:$0xff]   ;;  %v7012_v19 = vadd.f32 %v9615_v42, %v970_v8  ;;  %v7623_v8 = vld [vmem:[%s10469_s7 + $0x208] ss:$28 sps:$4 sm:$0xff]  }
 0x381   :  { %v7575_v42 = vld [vmem:[%s10469_s7 + $0xdd0] ss:$28 sps:$4 sm:$0xff]  }
 0x383   :  { %5590 = vmatpush1.bf16.msra.mxu1 %v7500_v9  ;;  %5754 = vmatpush1.bf16.msra.mxu0 %v7503_v10  ;;  %v7574_v9 = vld [vmem:[%s10469_s7 + $0xdcc] ss:$28 sps:$4 sm:$0xff]   ;;  %v7577_v10 = vld [vmem:[%s10469_s7 + $0xdd4] ss:$28 sps:$4 sm:$0xff]  }
 0x384   :  { %5591 = vmatprep.subr.bf16.mxu1 %v7508_v11  ;;  %5755 = vmatprep.subr.bf16.mxu0 %v7511_v14  ;;  %v7572_v11 = vld [vmem:[%s10469_s7 + $0xdc8] ss:$28 sps:$4 sm:$0xff]   ;;  %v2597_v14 = vmax.f32 %v7012_v19, 0.0 }
 0x385   :  { %v7632_v19 = vld [vmem:[%s10469_s7 + $0x408] ss:$28 sps:$4 sm:$0xff]  }
 0x387   :  { %5592 = vmatpush1.bf16.msra.mxu1 %v7506_v17  ;;  %5756 = vmatpush1.bf16.msra.mxu0 %v7509_v60  ;;  %v7580_v17 = vld [vmem:[%s10469_s7 + $0x14] ss:$28 sps:$4 sm:$0xff]  }
 0x388   :  { %5593 = vmatprep.subr.bf16.mxu1 %v7514_v18  ;;  %5757 = vmatprep.subr.bf16.mxu0 %v7517_v22  ;;  %v7581_v60 = vld [vmem:[%s10469_s7 + $0x1d8] ss:$28 sps:$4 sm:$0xff]   ;;  %v7578_v18 = vld [vmem:[%s10469_s7 + $0x10] ss:$28 sps:$4 sm:$0xff]   ;;  %v9841_v22 = vpack.c.bf16 %v2597_v14, %v2597_v14 }
 0x389   :  { %v7640_v14 = vld [vmem:[%s10469_s7 + $0x2b4] ss:$28 sps:$4 sm:$0xff]  }
 0x38b   :  { %5594 = vmatpush1.bf16.msra.mxu1 %v7512_v23  ;;  %5758 = vmatpush1.bf16.msra.mxu0 %v7515_v28  ;;  %v7582_v23 = vld [vmem:[%s10469_s7 + $0x18] ss:$28 sps:$4 sm:$0xff]   ;;  %v7585_v28 = vld [vmem:[%s10469_s7 + $0x4c] ss:$28 sps:$4 sm:$0xff]  }
 0x38c   :  { %5595 = vmatprep.subr.bf16.mxu1 %v7520_v29  ;;  %5759 = vmatprep.subr.bf16.mxu0 %v7523_v30  ;;  %v7586_v29 = vld [vmem:[%s10469_s7 + $0x210] ss:$28 sps:$4 sm:$0xff]   ;;  %v7583_v30 = vld [vmem:[%s10469_s7 + $0x48] ss:$28 sps:$4 sm:$0xff]  }
 0x38f   :  { %5596 = vmatpush1.bf16.msra.mxu1 %v7518_v31  ;;  %5760 = vmatpush1.bf16.msra.mxu0 %v7521_v32  ;;  %v7587_v31 = vld [vmem:[%s10469_s7 + $0x50] ss:$28 sps:$4 sm:$0xff]   ;;  %v7590_v32 = vld [vmem:[%s10469_s7 + $0x84] ss:$28 sps:$4 sm:$0xff]  }
 0x390   :  { %5597 = vmatprep.subr.bf16.mxu1 %v7526_v33  ;;  %5761 = vmatprep.subr.bf16.mxu0 %v7529_v34  ;;  %v7591_v33 = vld [vmem:[%s10469_s7 + $0x248] ss:$28 sps:$4 sm:$0xff]   ;;  %v7588_v34 = vld [vmem:[%s10469_s7 + $0x80] ss:$28 sps:$4 sm:$0xff]  }
 0x393   :  { %5598 = vmatpush1.bf16.msra.mxu1 %v7524_v35  ;;  %5762 = vmatpush1.bf16.msra.mxu0 %v7527_v37  ;;  %v7595_v35 = vld [vmem:[%s10469_s7 + $0xbc] ss:$28 sps:$4 sm:$0xff]  }
 0x394   :  { %5599 = vmatprep.subr.bf16.mxu1 %v7532_v38  ;;  %5763 = vmatprep.subr.bf16.mxu0 %v7535_v39  ;;  %v7596_v37 = vld [vmem:[%s10469_s7 + $0x280] ss:$28 sps:$4 sm:$0xff]   ;;  %v7593_v38 = vld [vmem:[%s10469_s7 + $0xb8] ss:$28 sps:$4 sm:$0xff]  }
 0x395   :  { %v7597_v39 = vld [vmem:[%s10469_s7 + $0xc0] ss:$28 sps:$4 sm:$0xff]  }
 0x397   :  { %5600 = vmatpush1.bf16.msra.mxu1 %v7530_v40  ;;  %5764 = vmatpush1.bf16.msra.mxu0 %v7533_v1  ;;  %v7600_v40 = vld [vmem:[%s10469_s7 + $0xf4] ss:$28 sps:$4 sm:$0xff]  }
 0x398   :  { %5601 = vmatprep.subr.bf16.mxu1 %v7538_v43  ;;  %5765 = vmatprep.subr.bf16.mxu0 %v7541_v45  ;;  %v7601_v1 = vld [vmem:[%s10469_s7 + $0x2b8] ss:$28 sps:$4 sm:$0xff]   ;;  %v7598_v43 = vld [vmem:[%s10469_s7 + $0xf0] ss:$28 sps:$4 sm:$0xff]  }
 0x399   :  { %v7602_v45 = vld [vmem:[%s10469_s7 + $0xf8] ss:$28 sps:$4 sm:$0xff]  }
 0x39b   :  { %5602 = vmatpush1.bf16.msra.mxu1 %v7536_v46  ;;  %5766 = vmatpush1.bf16.msra.mxu0 %v7539_v47  ;;  %v7605_v46 = vld [vmem:[%s10469_s7 + $0x12c] ss:$28 sps:$4 sm:$0xff]  }
 0x39c   :  { %5603 = vmatprep.subr.bf16.mxu1 %v7544_v48  ;;  %5767 = vmatprep.subr.bf16.mxu0 %v7547_v49  ;;  %v7606_v47 = vld [vmem:[%s10469_s7 + $0x2f0] ss:$28 sps:$4 sm:$0xff]   ;;  %v7603_v48 = vld [vmem:[%s10469_s7 + $0x128] ss:$28 sps:$4 sm:$0xff]  }
 0x39d   :  { %v7607_v49 = vld [vmem:[%s10469_s7 + $0x130] ss:$28 sps:$4 sm:$0xff]  }
 0x39f   :  { %5604 = vmatpush1.bf16.msra.mxu1 %v7542_v52  ;;  %5768 = vmatpush1.bf16.msra.mxu0 %v7545_v53  ;;  %v7610_v52 = vld [vmem:[%s10469_s7 + $0x164] ss:$28 sps:$4 sm:$0xff]  }
 0x3a0   :  { %5605 = vmatprep.subr.bf16.mxu1 %v7550_v55  ;;  %5769 = vmatprep.subr.bf16.mxu0 %v7553_v57  ;;  %v7611_v53 = vld [vmem:[%s10469_s7 + $0x328] ss:$28 sps:$4 sm:$0xff]   ;;  %v7608_v55 = vld [vmem:[%s10469_s7 + $0x160] ss:$28 sps:$4 sm:$0xff]  }
 0x3a1   :  { %v7612_v57 = vld [vmem:[%s10469_s7 + $0x168] ss:$28 sps:$4 sm:$0xff]  }
 0x3a3   :  { %5606 = vmatpush1.bf16.msra.mxu1 %v7548_v26  ;;  %5770 = vmatpush1.bf16.msra.mxu0 %v7551_v58  ;;  %v7615_v26 = vld [vmem:[%s10469_s7 + $0x19c] ss:$28 sps:$4 sm:$0xff]  }
 0x3a4   :  { %5607 = vmatprep.subr.bf16.mxu1 %v7556_v59  ;;  %5771 = vmatprep.subr.bf16.mxu0 %v7559_v2  ;;  %v7616_v58 = vld [vmem:[%s10469_s7 + $0x360] ss:$28 sps:$4 sm:$0xff]   ;;  %v7613_v59 = vld [vmem:[%s10469_s7 + $0x198] ss:$28 sps:$4 sm:$0xff]  }
 0x3a5   :  { %v7617_v2 = vld [vmem:[%s10469_s7 + $0x1a0] ss:$28 sps:$4 sm:$0xff]  }
 0x3a7   :  { %5608 = vmatpush1.bf16.msra.mxu1 %v7554_v24  ;;  %5772 = vmatpush1.bf16.msra.mxu0 %v7557_v62  ;;  %v7620_v24 = vld [vmem:[%s10469_s7 + $0x1d4] ss:$28 sps:$4 sm:$0xff]  }
 0x3a8   :  { %5609 = vmatprep.subr.bf16.mxu1 %v7562_v3  ;;  %5773 = vmatprep.subr.bf16.mxu0 %v7565_v5  ;;  %v7621_v62 = vld [vmem:[%s10469_s7 + $0x558] ss:$28 sps:$4 sm:$0xff]   ;;  %v7618_v3 = vld [vmem:[%s10469_s7 + $0x1d0] ss:$28 sps:$4 sm:$0xff]  }
 0x3a9   :  { %v7622_v5 = vld [vmem:[%s10469_s7 + $0x398] ss:$28 sps:$4 sm:$0xff]  }
 0x3ab   :  { %5610 = vmatpush1.bf16.msra.mxu1 %v7560_v6  ;;  %5774 = vmatpush1.bf16.msra.mxu0 %v7563_v7  ;;  %v7625_v6 = vld [vmem:[%s10469_s7 + $0x20c] ss:$28 sps:$4 sm:$0xff]  }
 0x3ac   :  { %5611 = vmatprep.subr.bf16.mxu1 %v7568_v12  ;;  %5775 = vmatprep.subr.bf16.mxu0 %v7571_v13  ;;  %v7626_v7 = vld [vmem:[%s10469_s7 + $0x590] ss:$28 sps:$4 sm:$0xff]   ;;  %v7630_v13 = vld [vmem:[%s10469_s7 + $0x244] ss:$28 sps:$4 sm:$0xff]  }
 0x3ad   :  { %v7627_v12 = vld [vmem:[%s10469_s7 + $0x3d0] ss:$28 sps:$4 sm:$0xff]  }
 0x3af   :  { %5612 = vmatpush1.bf16.msra.mxu1 %v7566_v16  ;;  %5776 = vmatpush1.bf16.msra.mxu0 %v7569_v56  ;;  %v7631_v16 = vld [vmem:[%s10469_s7 + $0x5c8] ss:$28 sps:$4 sm:$0xff]   ;;  %v7628_v56 = vld [vmem:[%s10469_s7 + $0x240] ss:$28 sps:$4 sm:$0xff]  }
 0x3b0   :  { %5613 = vmatprep.subr.bf16.mxu1 %v7574_v9  ;;  %5777 = vmatprep.subr.bf16.mxu0 %v7577_v10  ;;  %v7635_v9 = vld [vmem:[%s10469_s7 + $0x27c] ss:$28 sps:$4 sm:$0xff]  }
 0x3b1   :  { %v7636_v10 = vld [vmem:[%s10469_s7 + $0x600] ss:$28 sps:$4 sm:$0xff]  }
 0x3b3   :  { %5614 = vmatpush1.bf16.msra.mxu1 %v7572_v11  ;;  %5778 = vmatpush1.bf16.msra.mxu0 %v7575_v42  ;;  %v7633_v11 = vld [vmem:[%s10469_s7 + $0x278] ss:$28 sps:$4 sm:$0xff]   ;;  %v7637_v42 = vld [vmem:[%s10469_s7 + $0x440] ss:$28 sps:$4 sm:$0xff]  }
 0x3b4   :  { %5788 = vmatprep.subr.bf16.mxu1 %v7580_v17  ;;  %6918 = vmatprep.subr.bf16.mxu0 %v7581_v60  ;;  %v7641_v17 = vld [vmem:[%s10469_s7 + $0x638] ss:$28 sps:$4 sm:$0xff]   ;;  %v7638_v60 = vld [vmem:[%s10469_s7 + $0x2b0] ss:$28 sps:$4 sm:$0xff]  }
 0x3b6   :  { %5616 = vmatmul.mubr.bf16.vlgmr.msra.gmra.mrb[8].mxu1 %v9841_v22  ;;  %5780 = vmatmul.mubr.bf16.vlgmr.msra.gmra.mrb[20].mxu0 %v9841_v22 }
 0x3b7   :  { %5789 = vmatpush1.bf16.msra.mxu1 %v7578_v18  ;;  %5820 = vmatprep.mubr.bf16.mxu1 %v9214_v50  ;;  %v7642_v18 = vld [vmem:[%s10469_s7 + $0x478] ss:$28 sps:$4 sm:$0xff]  }
 0x3b8   :  { %6919 = vmatpush3.bf16.msra.mxu0 %v7582_v23  ;;  %5984 = vmatprep.mubr.bf16.mxu0 %v9214_v50  ;;  %v7592_v50 = vld [vmem:[%s10469_s7 + $0x88] ss:$28 sps:$4 sm:$0xff]  }
 0x3b9   :  { %5790 = vmatprep.subr.bf16.mxu1 %v7585_v28  ;;  %6920 = vmatprep.subr.bf16.mxu0 %v7586_v29  ;;  %v7645_v23 = vld [vmem:[%s10469_s7 + $0x2ec] ss:$28 sps:$4 sm:$0xff]  }
 0x3ba   :  { %v7646_v28 = vld [vmem:[%s10469_s7 + $0x670] ss:$28 sps:$4 sm:$0xff]   ;;  %v7643_v29 = vld [vmem:[%s10469_s7 + $0x2e8] ss:$28 sps:$4 sm:$0xff]  }
 0x3bb   :  { %5791 = vmatpush1.bf16.msra.mxu1 %v7583_v30  ;;  %v7647_v30 = vld [vmem:[%s10469_s7 + $0x4b0] ss:$28 sps:$4 sm:$0xff]  }
 0x3bc   :  { %6921 = vmatpush3.bf16.msra.mxu0 %v7587_v31  ;;  %5792 = vmatprep.subr.bf16.mxu1 %v7590_v32  ;;  %v7650_v31 = vld [vmem:[%s10469_s7 + $0x324] ss:$28 sps:$4 sm:$0xff]  }
 0x3bd   :  { %6922 = vmatprep.subr.bf16.mxu0 %v7591_v33  ;;  %v7651_v32 = vld [vmem:[%s10469_s7 + $0x6a8] ss:$28 sps:$4 sm:$0xff]   ;;  %v7648_v33 = vld [vmem:[%s10469_s7 + $0x320] ss:$28 sps:$4 sm:$0xff]  }
 0x3bf   :  { %5793 = vmatpush1.bf16.msra.mxu1 %v7588_v34  ;;  %v7652_v34 = vld [vmem:[%s10469_s7 + $0x4e8] ss:$28 sps:$4 sm:$0xff]  }
 0x3c0   :  { %6923 = vmatpush3.bf16.msra.mxu0 %v7592_v50  ;;  %5794 = vmatprep.subr.bf16.mxu1 %v7595_v35  ;;  %v7655_v50 = vld [vmem:[%s10469_s7 + $0x35c] ss:$28 sps:$4 sm:$0xff]  }
 0x3c1   :  { %6924 = vmatprep.subr.bf16.mxu0 %v7596_v37  ;;  %v7656_v35 = vld [vmem:[%s10469_s7 + $0x6e0] ss:$28 sps:$4 sm:$0xff]   ;;  %v7653_v37 = vld [vmem:[%s10469_s7 + $0x358] ss:$28 sps:$4 sm:$0xff]  }
 0x3c3   :  { %5795 = vmatpush1.bf16.msra.mxu1 %v7593_v38  ;;  %v7657_v38 = vld [vmem:[%s10469_s7 + $0x520] ss:$28 sps:$4 sm:$0xff]  }
 0x3c4   :  { %6925 = vmatpush3.bf16.msra.mxu0 %v7597_v39  ;;  %5796 = vmatprep.subr.bf16.mxu1 %v7600_v40  ;;  %v7660_v39 = vld [vmem:[%s10469_s7 + $0x394] ss:$28 sps:$4 sm:$0xff]  }
 0x3c5   :  { %6926 = vmatprep.subr.bf16.mxu0 %v7601_v1  ;;  %v7661_v40 = vld [vmem:[%s10469_s7 + $0x8d8] ss:$28 sps:$4 sm:$0xff]   ;;  %v7658_v1 = vld [vmem:[%s10469_s7 + $0x390] ss:$28 sps:$4 sm:$0xff]  }
 0x3c7   :  { %5797 = vmatpush1.bf16.msra.mxu1 %v7598_v43  ;;  %v7662_v43 = vld [vmem:[%s10469_s7 + $0x718] ss:$28 sps:$4 sm:$0xff]  }
 0x3c8   :  { %6927 = vmatpush3.bf16.msra.mxu0 %v7602_v45  ;;  %5798 = vmatprep.subr.bf16.mxu1 %v7605_v46  ;;  %v7665_v45 = vld [vmem:[%s10469_s7 + $0x3cc] ss:$28 sps:$4 sm:$0xff]  }
 0x3c9   :  { %6928 = vmatprep.subr.bf16.mxu0 %v7606_v47  ;;  %v7666_v46 = vld [vmem:[%s10469_s7 + $0x910] ss:$28 sps:$4 sm:$0xff]   ;;  %v7663_v47 = vld [vmem:[%s10469_s7 + $0x3c8] ss:$28 sps:$4 sm:$0xff]  }
 0x3cb   :  { %5799 = vmatpush1.bf16.msra.mxu1 %v7603_v48  ;;  %v7667_v48 = vld [vmem:[%s10469_s7 + $0x750] ss:$28 sps:$4 sm:$0xff]  }
 0x3cc   :  { %6929 = vmatpush3.bf16.msra.mxu0 %v7607_v49  ;;  %5800 = vmatprep.subr.bf16.mxu1 %v7610_v52  ;;  %v7671_v49 = vld [vmem:[%s10469_s7 + $0x948] ss:$28 sps:$4 sm:$0xff]  }
 0x3cd   :  { %6930 = vmatprep.subr.bf16.mxu0 %v7611_v53  ;;  %v7672_v52 = vld [vmem:[%s10469_s7 + $0x788] ss:$28 sps:$4 sm:$0xff]   ;;  %v7675_v53 = vld [vmem:[%s10469_s7 + $0x43c] ss:$28 sps:$4 sm:$0xff]  }
 0x3cf   :  { %5801 = vmatpush1.bf16.msra.mxu1 %v7608_v55  ;;  %v7676_v55 = vld [vmem:[%s10469_s7 + $0x980] ss:$28 sps:$4 sm:$0xff]  }
 0x3d0   :  { %6931 = vmatpush3.bf16.msra.mxu0 %v7612_v57  ;;  %5802 = vmatprep.subr.bf16.mxu1 %v7615_v26  ;;  %v7673_v57 = vld [vmem:[%s10469_s7 + $0x438] ss:$28 sps:$4 sm:$0xff]   ;;  %v7677_v26 = vld [vmem:[%s10469_s7 + $0x7c0] ss:$28 sps:$4 sm:$0xff]  }
 0x3d1   :  { %6932 = vmatprep.subr.bf16.mxu0 %v7616_v58  ;;  %v7680_v58 = vld [vmem:[%s10469_s7 + $0x474] ss:$28 sps:$4 sm:$0xff]  }
 0x3d3   :  { %5803 = vmatpush1.bf16.msra.mxu1 %v7613_v59  ;;  %v7681_v59 = vld [vmem:[%s10469_s7 + $0x9b8] ss:$28 sps:$4 sm:$0xff]  }
 0x3d4   :  { %6933 = vmatpush3.bf16.msra.mxu0 %v7617_v2  ;;  %5804 = vmatprep.subr.bf16.mxu1 %v7620_v24  ;;  %v7678_v2 = vld [vmem:[%s10469_s7 + $0x470] ss:$28 sps:$4 sm:$0xff]   ;;  %v7682_v24 = vld [vmem:[%s10469_s7 + $0x7f8] ss:$28 sps:$4 sm:$0xff]  }
 0x3d5   :  { %6940 = vmatprep.subr.bf16.mxu0 %v7621_v62  ;;  %v7685_v62 = vld [vmem:[%s10469_s7 + $0x4ac] ss:$28 sps:$4 sm:$0xff]  }
 0x3d7   :  { %5985 = vmatmul.mubr.bf16.vlgmr.msra.gmra.mrb[24].mxu0 %v9222_v15  ;;  %5805 = vmatpush1.bf16.msra.mxu1 %v7618_v3  ;;  %v7686_v3 = vld [vmem:[%s10469_s7 + $0x9f0] ss:$28 sps:$4 sm:$0xff]  }
 0x3d8   :  { %6941 = vmatpush3.bf16.msra.mxu0 %v7622_v5  ;;  %6024 = vmatprep.mubr.bf16.mxu0 %v9232_v20  ;;  %v7683_v5 = vld [vmem:[%s10469_s7 + $0x4a8] ss:$28 sps:$4 sm:$0xff]  }
 0x3d9   :  { %5806 = vmatprep.subr.bf16.mxu1 %v7625_v6  ;;  %6942 = vmatprep.subr.bf16.mxu0 %v7626_v7  ;;  %v7687_v6 = vld [vmem:[%s10469_s7 + $0x830] ss:$28 sps:$4 sm:$0xff]   ;;  %v7690_v7 = vld [vmem:[%s10469_s7 + $0x4e4] ss:$28 sps:$4 sm:$0xff]  }
 0x3db   :  { %5807 = vmatpush1.bf16.msra.mxu1 %v7623_v8  ;;  %v7691_v8 = vld [vmem:[%s10469_s7 + $0xa28] ss:$28 sps:$4 sm:$0xff]  }
 0x3dc   :  { %6943 = vmatpush3.bf16.msra.mxu0 %v7627_v12  ;;  %5808 = vmatprep.subr.bf16.mxu1 %v7630_v13  ;;  %v7688_v12 = vld [vmem:[%s10469_s7 + $0x4e0] ss:$28 sps:$4 sm:$0xff]   ;;  %v7692_v13 = vld [vmem:[%s10469_s7 + $0x868] ss:$28 sps:$4 sm:$0xff]  }
 0x3dd   :  { %6944 = vmatprep.subr.bf16.mxu0 %v7631_v16  ;;  %v7695_v16 = vld [vmem:[%s10469_s7 + $0x51c] ss:$28 sps:$4 sm:$0xff]  }
 0x3df   :  { %5809 = vmatpush1.bf16.msra.mxu1 %v7628_v56  ;;  %v7696_v56 = vld [vmem:[%s10469_s7 + $0xa60] ss:$28 sps:$4 sm:$0xff]  }
 0x3e0   :  { %6945 = vmatpush3.bf16.msra.mxu0 %v7632_v19  ;;  %5810 = vmatprep.subr.bf16.mxu1 %v7635_v9  ;;  %v7693_v19 = vld [vmem:[%s10469_s7 + $0x518] ss:$28 sps:$4 sm:$0xff]   ;;  %v7697_v9 = vld [vmem:[%s10469_s7 + $0x8a0] ss:$28 sps:$4 sm:$0xff]  }
 0x3e1   :  { %6946 = vmatprep.subr.bf16.mxu0 %v7636_v10  ;;  %v7700_v10 = vld [vmem:[%s10469_s7 + $0x554] ss:$28 sps:$4 sm:$0xff]  }
 0x3e3   :  { %5811 = vmatpush1.bf16.msra.mxu1 %v7633_v11  ;;  %v7701_v11 = vld [vmem:[%s10469_s7 + $0xc58] ss:$28 sps:$4 sm:$0xff]  }
 0x3e4   :  { %6947 = vmatpush3.bf16.msra.mxu0 %v7637_v42  ;;  %5812 = vmatprep.subr.bf16.mxu1 %v7640_v14  ;;  %v7698_v42 = vld [vmem:[%s10469_s7 + $0x550] ss:$28 sps:$4 sm:$0xff]   ;;  %v7702_v14 = vld [vmem:[%s10469_s7 + $0xa98] ss:$28 sps:$4 sm:$0xff]  }
 0x3e5   :  { %6948 = vmatprep.subr.bf16.mxu0 %v7641_v17  ;;  %v7705_v17 = vld [vmem:[%s10469_s7 + $0x58c] ss:$28 sps:$4 sm:$0xff]  }
 0x3e7   :  { %5813 = vmatpush1.bf16.msra.mxu1 %v7638_v60  ;;  %v7706_v60 = vld [vmem:[%s10469_s7 + $0xc90] ss:$28 sps:$4 sm:$0xff]  }
 0x3e8   :  { %6949 = vmatpush3.bf16.msra.mxu0 %v7642_v18  ;;  %5814 = vmatprep.subr.bf16.mxu1 %v7645_v23  ;;  %v7703_v18 = vld [vmem:[%s10469_s7 + $0x588] ss:$28 sps:$4 sm:$0xff]   ;;  %v7707_v23 = vld [vmem:[%s10469_s7 + $0xad0] ss:$28 sps:$4 sm:$0xff]  }
 0x3e9   :  { %6950 = vmatprep.subr.bf16.mxu0 %v7646_v28  ;;  %v7710_v28 = vld [vmem:[%s10469_s7 + $0x5c4] ss:$28 sps:$4 sm:$0xff]  }
 0x3eb   :  { %5815 = vmatpush1.bf16.msra.mxu1 %v7643_v29  ;;  %v7711_v29 = vld [vmem:[%s10469_s7 + $0xcc8] ss:$28 sps:$4 sm:$0xff]  }
 0x3ec   :  { %6951 = vmatpush3.bf16.msra.mxu0 %v7647_v30  ;;  %5816 = vmatprep.subr.bf16.mxu1 %v7650_v31  ;;  %v7708_v30 = vld [vmem:[%s10469_s7 + $0x5c0] ss:$28 sps:$4 sm:$0xff]   ;;  %v7712_v31 = vld [vmem:[%s10469_s7 + $0xb08] ss:$28 sps:$4 sm:$0xff]  }
 0x3ed   :  { %6952 = vmatprep.subr.bf16.mxu0 %v7651_v32  ;;  %v7715_v32 = vld [vmem:[%s10469_s7 + $0x5fc] ss:$28 sps:$4 sm:$0xff]  }
 0x3ef   :  { %5817 = vmatpush1.bf16.msra.mxu1 %v7648_v33  ;;  %v7716_v33 = vld [vmem:[%s10469_s7 + $0xd00] ss:$28 sps:$4 sm:$0xff]  }
 0x3f0   :  { %6953 = vmatpush3.bf16.msra.mxu0 %v7652_v34  ;;  %5818 = vmatprep.subr.bf16.mxu1 %v7655_v50  ;;  %v7713_v34 = vld [vmem:[%s10469_s7 + $0x5f8] ss:$28 sps:$4 sm:$0xff]   ;;  %v7717_v50 = vld [vmem:[%s10469_s7 + $0xb40] ss:$28 sps:$4 sm:$0xff]  }
 0x3f1   :  { %6954 = vmatprep.subr.bf16.mxu0 %v7656_v35  ;;  %v7720_v35 = vld [vmem:[%s10469_s7 + $0x634] ss:$28 sps:$4 sm:$0xff]  }
 0x3f3   :  { %5819 = vmatpush1.bf16.msra.mxu1 %v7653_v37  ;;  %v7721_v37 = vld [vmem:[%s10469_s7 + $0xd38] ss:$28 sps:$4 sm:$0xff]  }
 0x3f4   :  { %6955 = vmatpush3.bf16.msra.mxu0 %v7657_v38  ;;  %5829 = vmatprep.subr.bf16.mxu1 %v7660_v39  ;;  %v7718_v38 = vld [vmem:[%s10469_s7 + $0x630] ss:$28 sps:$4 sm:$0xff]   ;;  %v7722_v39 = vld [vmem:[%s10469_s7 + $0xb78] ss:$28 sps:$4 sm:$0xff]  }
 0x3f5   :  { %6962 = vmatprep.subr.bf16.mxu0 %v7661_v40  ;;  %v7725_v40 = vld [vmem:[%s10469_s7 + $0x66c] ss:$28 sps:$4 sm:$0xff]  }
 0x3f6   :  { %5821 = vmatmul.mubr.bf16.vlgmr.msra.gmra.mrb[12].mxu1 %v9222_v15  ;;  %v7670_v15 = vld [vmem:[%s10469_s7 + $0x404] ss:$28 sps:$4 sm:$0xff]  }
 0x3f7   :  { %6025 = vmatmul.mubr.bf16.vlgmr.msra.gmra.mrb[28].mxu0 %v9427_v27  ;;  %5830 = vmatpush1.bf16.msra.mxu1 %v7658_v1  ;;  %v7726_v1 = vld [vmem:[%s10469_s7 + $0xd70] ss:$28 sps:$4 sm:$0xff]  }
 0x3f8   :  { %5861 = vmatprep.mubr.bf16.mxu1 %v9232_v20  ;;  %6963 = vmatpush3.bf16.msra.mxu0 %v7662_v43  ;;  %v7668_v20 = vld [vmem:[%s10469_s7 + $0x400] ss:$28 sps:$4 sm:$0xff]   ;;  %v7723_v43 = vld [vmem:[%s10469_s7 + $0x668] ss:$28 sps:$4 sm:$0xff]  }
 0x3f9   :  { %6064 = vmatprep.mubr.bf16.mxu0 %v9629_v61  ;;  %5831 = vmatprep.subr.bf16.mxu1 %v7665_v45  ;;  %v7727_v45 = vld [vmem:[%s10469_s7 + $0xbb0] ss:$28 sps:$4 sm:$0xff]  }
 0x3fa   :  { %6964 = vmatprep.subr.bf16.mxu0 %v7666_v46  ;;  %v7730_v46 = vld [vmem:[%s10469_s7 + $0x6a4] ss:$28 sps:$4 sm:$0xff]  }
 0x3fb   :  { %5832 = vmatpush1.bf16.msra.mxu1 %v7663_v47  ;;  %v7731_v47 = vld [vmem:[%s10469_s7 + $0xda8] ss:$28 sps:$4 sm:$0xff]  }
 0x3fc   :  { %6965 = vmatpush3.bf16.msra.mxu0 %v7667_v48  ;;  %5833 = vmatprep.subr.bf16.mxu1 %v7670_v15  ;;  %v7728_v48 = vld [vmem:[%s10469_s7 + $0x6a0] ss:$28 sps:$4 sm:$0xff]   ;;  %v7732_v15 = vld [vmem:[%s10469_s7 + $0xbe8] ss:$28 sps:$4 sm:$0xff]  }
 0x3fd   :  { %6966 = vmatprep.subr.bf16.mxu0 %v7671_v49  ;;  %v7735_v49 = vld [vmem:[%s10469_s7 + $0x6dc] ss:$28 sps:$4 sm:$0xff]  }
 0x3ff   :  { %5834 = vmatpush1.bf16.msra.mxu1 %v7668_v20  ;;  %v7736_v20 = vld [vmem:[%s10469_s7 + $0xde0] ss:$28 sps:$4 sm:$0xff]  }
 0x400   :  { %6967 = vmatpush3.bf16.msra.mxu0 %v7672_v52  ;;  %5835 = vmatprep.subr.bf16.mxu1 %v7675_v53  ;;  %v7733_v52 = vld [vmem:[%s10469_s7 + $0x6d8] ss:$28 sps:$4 sm:$0xff]   ;;  %v7737_v53 = vld [vmem:[%s10469_s7 + $0xc20] ss:$28 sps:$4 sm:$0xff]  }
 0x401   :  { %6968 = vmatprep.subr.bf16.mxu0 %v7676_v55  ;;  %v7740_v55 = vld [vmem:[%s10469_s7 + $0x714] ss:$28 sps:$4 sm:$0xff]  }
 0x403   :  { %5836 = vmatpush1.bf16.msra.mxu1 %v7673_v57  ;;  %v7738_v57 = vld [vmem:[%s10469_s7 + $0x710] ss:$28 sps:$4 sm:$0xff]  }
 0x404   :  { %6969 = vmatpush3.bf16.msra.mxu0 %v7677_v26  ;;  %5837 = vmatprep.subr.bf16.mxu1 %v7680_v58  ;;  %v7743_v26 = vld [vmem:[%s10469_s7 + $0x74c] ss:$28 sps:$4 sm:$0xff]  }
 0x405   :  { %6970 = vmatprep.subr.bf16.mxu0 %v7681_v59  ;;  %v7741_v58 = vld [vmem:[%s10469_s7 + $0x748] ss:$28 sps:$4 sm:$0xff]  }
 0x406   :  { %v7746_v59 = vld [vmem:[%s10469_s7 + $0x784] ss:$28 sps:$4 sm:$0xff]  }
 0x407   :  { %5838 = vmatpush1.bf16.msra.mxu1 %v7678_v2  ;;  %v7744_v2 = vld [vmem:[%s10469_s7 + $0x780] ss:$28 sps:$4 sm:$0xff]  }
 0x408   :  { %6971 = vmatpush3.bf16.msra.mxu0 %v7682_v24  ;;  %5839 = vmatprep.subr.bf16.mxu1 %v7685_v62  ;;  %v7752_v24 = vld [vmem:[%s10469_s7 + $0x7f4] ss:$28 sps:$4 sm:$0xff]  }
 0x409   :  { %6972 = vmatprep.subr.bf16.mxu0 %v7686_v3  ;;  %v7750_v62 = vld [vmem:[%s10469_s7 + $0x7f0] ss:$28 sps:$4 sm:$0xff]  }
 0x40a   :  { %v7755_v3 = vld [vmem:[%s10469_s7 + $0x82c] ss:$28 sps:$4 sm:$0xff]  }
 0x40b   :  { %5840 = vmatpush1.bf16.msra.mxu1 %v7683_v5  ;;  %v7753_v5 = vld [vmem:[%s10469_s7 + $0x828] ss:$28 sps:$4 sm:$0xff]  }
 0x40c   :  { %6973 = vmatpush3.bf16.msra.mxu0 %v7687_v6  ;;  %5841 = vmatprep.subr.bf16.mxu1 %v7690_v7  ;;  %v7758_v6 = vld [vmem:[%s10469_s7 + $0x864] ss:$28 sps:$4 sm:$0xff]  }
 0x40d   :  { %6974 = vmatprep.subr.bf16.mxu0 %v7691_v8  ;;  %v7756_v7 = vld [vmem:[%s10469_s7 + $0x860] ss:$28 sps:$4 sm:$0xff]  }
 0x40e   :  { %v7761_v8 = vld [vmem:[%s10469_s7 + $0x89c] ss:$28 sps:$4 sm:$0xff]  }
 0x40f   :  { %5842 = vmatpush1.bf16.msra.mxu1 %v7688_v12  ;;  %v7759_v12 = vld [vmem:[%s10469_s7 + $0x898] ss:$28 sps:$4 sm:$0xff]  }
 0x410   :  { %6975 = vmatpush3.bf16.msra.mxu0 %v7692_v13  ;;  %5843 = vmatprep.subr.bf16.mxu1 %v7695_v16  ;;  %v7764_v13 = vld [vmem:[%s10469_s7 + $0x8d4] ss:$28 sps:$4 sm:$0xff]  }
 0x411   :  { %6976 = vmatprep.subr.bf16.mxu0 %v7696_v56  ;;  %v7762_v16 = vld [vmem:[%s10469_s7 + $0x8d0] ss:$28 sps:$4 sm:$0xff]  }
 0x412   :  { %v7767_v56 = vld [vmem:[%s10469_s7 + $0x90c] ss:$28 sps:$4 sm:$0xff]  }
 0x413   :  { %5844 = vmatpush1.bf16.msra.mxu1 %v7693_v19  ;;  %v7765_v19 = vld [vmem:[%s10469_s7 + $0x908] ss:$28 sps:$4 sm:$0xff]  }
 0x414   :  { %6977 = vmatpush3.bf16.msra.mxu0 %v7697_v9  ;;  %5845 = vmatprep.subr.bf16.mxu1 %v7700_v10  ;;  %v7770_v9 = vld [vmem:[%s10469_s7 + $0x944] ss:$28 sps:$4 sm:$0xff]  }
 0x415   :  { %6984 = vmatprep.subr.bf16.mxu0 %v7701_v11  ;;  %v7768_v10 = vld [vmem:[%s10469_s7 + $0x940] ss:$28 sps:$4 sm:$0xff]  }
 0x416   :  { %v7773_v11 = vld [vmem:[%s10469_s7 + $0x97c] ss:$28 sps:$4 sm:$0xff]  }
 0x417   :  { %6065 = vmatmul.mubr.bf16.vlgmr.msra.gmra.mrb[32].mxu0 %v9637_v63  ;;  %5846 = vmatpush1.bf16.msra.mxu1 %v7698_v42  ;;  %v7771_v42 = vld [vmem:[%s10469_s7 + $0x978] ss:$28 sps:$4 sm:$0xff]  }
 0x418   :  { %6985 = vmatpush3.bf16.msra.mxu0 %v7702_v14  ;;  %6104 = vmatprep.mubr.bf16.mxu0 %v9647_v4  ;;  %v7776_v14 = vld [vmem:[%s10469_s7 + $0x9b4] ss:$28 sps:$4 sm:$0xff]  }
 0x419   :  { %5847 = vmatprep.subr.bf16.mxu1 %v7705_v17  ;;  %6986 = vmatprep.subr.bf16.mxu0 %v7706_v60  ;;  %v7774_v17 = vld [vmem:[%s10469_s7 + $0x9b0] ss:$28 sps:$4 sm:$0xff]  }
 0x41a   :  { %v7779_v60 = vld [vmem:[%s10469_s7 + $0x9ec] ss:$28 sps:$4 sm:$0xff]  }
 0x41b   :  { %5848 = vmatpush1.bf16.msra.mxu1 %v7703_v18  ;;  %v7777_v18 = vld [vmem:[%s10469_s7 + $0x9e8] ss:$28 sps:$4 sm:$0xff]  }
 0x41c   :  { %6987 = vmatpush3.bf16.msra.mxu0 %v7707_v23  ;;  %5849 = vmatprep.subr.bf16.mxu1 %v7710_v28  ;;  %v7782_v23 = vld [vmem:[%s10469_s7 + $0xa24] ss:$28 sps:$4 sm:$0xff]  }
 0x41d   :  { %6988 = vmatprep.subr.bf16.mxu0 %v7711_v29  ;;  %v7780_v28 = vld [vmem:[%s10469_s7 + $0xa20] ss:$28 sps:$4 sm:$0xff]  }
 0x41e   :  { %v7785_v29 = vld [vmem:[%s10469_s7 + $0xa5c] ss:$28 sps:$4 sm:$0xff]  }
 0x41f   :  { %5850 = vmatpush1.bf16.msra.mxu1 %v7708_v30  ;;  %v7783_v30 = vld [vmem:[%s10469_s7 + $0xa58] ss:$28 sps:$4 sm:$0xff]  }
 0x420   :  { %6989 = vmatpush3.bf16.msra.mxu0 %v7712_v31  ;;  %5851 = vmatprep.subr.bf16.mxu1 %v7715_v32  ;;  %v7788_v31 = vld [vmem:[%s10469_s7 + $0xa94] ss:$28 sps:$4 sm:$0xff]  }
 0x421   :  { %6990 = vmatprep.subr.bf16.mxu0 %v7716_v33  ;;  %v7786_v32 = vld [vmem:[%s10469_s7 + $0xa90] ss:$28 sps:$4 sm:$0xff]  }
 0x422   :  { %v7791_v33 = vld [vmem:[%s10469_s7 + $0xacc] ss:$28 sps:$4 sm:$0xff]  }
 0x423   :  { %5852 = vmatpush1.bf16.msra.mxu1 %v7713_v34  ;;  %v7789_v34 = vld [vmem:[%s10469_s7 + $0xac8] ss:$28 sps:$4 sm:$0xff]  }
 0x424   :  { %6991 = vmatpush3.bf16.msra.mxu0 %v7717_v50  ;;  %5853 = vmatprep.subr.bf16.mxu1 %v7720_v35  ;;  %v7794_v50 = vld [vmem:[%s10469_s7 + $0xb04] ss:$28 sps:$4 sm:$0xff]  }
 0x425   :  { %6992 = vmatprep.subr.bf16.mxu0 %v7721_v37  ;;  %v7792_v35 = vld [vmem:[%s10469_s7 + $0xb00] ss:$28 sps:$4 sm:$0xff]   ;;  %v7800_v37 = vld [vmem:[%s10469_s7 + $0xb74] ss:$28 sps:$4 sm:$0xff]  }
 0x427   :  { %5854 = vmatpush1.bf16.msra.mxu1 %v7718_v38  ;;  %v7798_v38 = vld [vmem:[%s10469_s7 + $0xb70] ss:$28 sps:$4 sm:$0xff]  }
 0x428   :  { %6993 = vmatpush3.bf16.msra.mxu0 %v7722_v39  ;;  %5855 = vmatprep.subr.bf16.mxu1 %v7725_v40  ;;  %v10364_v39 = vld [vmem:[%s10470_s8] sm:$0x7f]  ;;  %v7803_v40 = vld [vmem:[%s10469_s7 + $0xbac] ss:$28 sps:$4 sm:$0xff]  }
 0x429   :  { %6994 = vmatprep.subr.bf16.mxu0 %v7726_v1  ;;  %v3124_v1 = vrot.slane %v10364_v39, %v8141_v41 }
 0x42b   :  { %5856 = vmatpush1.bf16.msra.mxu1 %v7723_v43  ;;  %v3132_v43 = vrot.slane %v10364_v39, %v8582_v51 }
 0x42c   :  { %6995 = vmatpush3.bf16.msra.mxu0 %v7727_v45  ;;  %5857 = vmatprep.subr.bf16.mxu1 %v7730_v46  ;;  %v3128_v45 = vrot.slane %v10364_v39, %v8147_v44  ;;  %v3136_v46 = vrot.slane %v10364_v39, %v8585_v54  ;;  %v7804_v54 = vld [vmem:[%s10469_s7 + $0xbe0] ss:$28 sps:$4 sm:$0xff]  }
 0x42d   :  { %6996 = vmatprep.subr.bf16.mxu0 %v7731_v47  ;;  %v7801_v47 = vld [vmem:[%s10469_s7 + $0xba8] ss:$28 sps:$4 sm:$0xff]  }
 0x42f   :  { %5858 = vmatpush1.bf16.msra.mxu1 %v7728_v48  ;;  %v7806_v48 = vld [vmem:[%s10469_s7 + $0xbe4] ss:$28 sps:$4 sm:$0xff]  }
 0x430   :  { %6997 = vmatpush3.bf16.msra.mxu0 %v7732_v15  ;;  %5859 = vmatprep.subr.bf16.mxu1 %v7735_v49 }
 0x431   :  { %6998 = vmatprep.subr.bf16.mxu0 %v7736_v20 }
 0x433   :  { %5860 = vmatpush1.bf16.msra.mxu1 %v7733_v52 }
 0x434   :  { %6999 = vmatpush3.bf16.msra.mxu0 %v7737_v53  ;;  %5870 = vmatprep.subr.bf16.mxu1 %v7740_v55 }
 0x436   :  { %5862 = vmatmul.mubr.bf16.vlgmr.msra.gmra.mrb[12].mxu1 %v9427_v27  ;;  %v7749_v27 = vld [vmem:[%s10469_s7 + $0x7bc] ss:$28 sps:$4 sm:$0xff]  }
 0x437   :  { %6105 = vmatmul.mubr.bf16.vlgmr.msra.gmra.mrb[36].mxu0 %v9841_v22  ;;  %5871 = vmatpush1.bf16.msra.mxu1 %v7738_v57 }
 0x438   :  { %5902 = vmatprep.mubr.bf16.mxu1 %v9629_v61  ;;  %5872 = vmatprep.subr.bf16.mxu1 %v7743_v26  ;;  %v7747_v61 = vld [vmem:[%s10469_s7 + $0x7b8] ss:$28 sps:$4 sm:$0xff]  }
 0x43b   :  { %5873 = vmatpush1.bf16.msra.mxu1 %v7741_v58 }
 0x43c   :  { %5874 = vmatprep.subr.bf16.mxu1 %v7746_v59  ;;  %v7809_v59 = vld [vmem:[%s10469_s7 + $0xc1c] ss:$28 sps:$4 sm:$0xff]  }
 0x43f   :  { %5875 = vmatpush1.bf16.msra.mxu1 %v7744_v2  ;;  %v7807_v2 = vld [vmem:[%s10469_s7 + $0xc18] ss:$28 sps:$4 sm:$0xff]  }
 0x440   :  { %5876 = vmatprep.subr.bf16.mxu1 %v7749_v27  ;;  %v7812_v27 = vld [vmem:[%s10469_s7 + $0xc54] ss:$28 sps:$4 sm:$0xff]  }
 0x443   :  { %5877 = vmatpush1.bf16.msra.mxu1 %v7747_v61  ;;  %v7810_v61 = vld [vmem:[%s10469_s7 + $0xc50] ss:$28 sps:$4 sm:$0xff]  }
 0x444   :  { %5878 = vmatprep.subr.bf16.mxu1 %v7752_v24  ;;  %v7815_v24 = vld [vmem:[%s10469_s7 + $0xc8c] ss:$28 sps:$4 sm:$0xff]  }
 0x447   :  { %5879 = vmatpush1.bf16.msra.mxu1 %v7750_v62  ;;  %v7813_v62 = vld [vmem:[%s10469_s7 + $0xc88] ss:$28 sps:$4 sm:$0xff]  }
 0x448   :  { %5880 = vmatprep.subr.bf16.mxu1 %v7755_v3  ;;  %v7818_v3 = vld [vmem:[%s10469_s7 + $0xcc4] ss:$28 sps:$4 sm:$0xff]  }
 0x44b   :  { %5881 = vmatpush1.bf16.msra.mxu1 %v7753_v5  ;;  %v7816_v5 = vld [vmem:[%s10469_s7 + $0xcc0] ss:$28 sps:$4 sm:$0xff]  }
 0x44c   :  { %5882 = vmatprep.subr.bf16.mxu1 %v7758_v6  ;;  %v7821_v6 = vld [vmem:[%s10469_s7 + $0xcfc] ss:$28 sps:$4 sm:$0xff]  }
 0x44f   :  { %5883 = vmatpush1.bf16.msra.mxu1 %v7756_v7  ;;  %v7819_v7 = vld [vmem:[%s10469_s7 + $0xcf8] ss:$28 sps:$4 sm:$0xff]  }
 0x450   :  { %5884 = vmatprep.subr.bf16.mxu1 %v7761_v8  ;;  %v7824_v8 = vld [vmem:[%s10469_s7 + $0xd34] ss:$28 sps:$4 sm:$0xff]  }
 0x453   :  { %5885 = vmatpush1.bf16.msra.mxu1 %v7759_v12  ;;  %v7822_v12 = vld [vmem:[%s10469_s7 + $0xd30] ss:$28 sps:$4 sm:$0xff]  }
 0x454   :  { %5886 = vmatprep.subr.bf16.mxu1 %v7764_v13  ;;  %v7827_v13 = vld [vmem:[%s10469_s7 + $0xd6c] ss:$28 sps:$4 sm:$0xff]  }
 0x457   :  { %5887 = vmatpush1.bf16.msra.mxu1 %v7762_v16  ;;  %v7825_v16 = vld [vmem:[%s10469_s7 + $0xd68] ss:$28 sps:$4 sm:$0xff]  }
 0x458   :  { %5888 = vmatprep.subr.bf16.mxu1 %v7767_v56  ;;  %v7830_v56 = vld [vmem:[%s10469_s7 + $0xda4] ss:$28 sps:$4 sm:$0xff]  }
 0x45b   :  { %5889 = vmatpush1.bf16.msra.mxu1 %v7765_v19 }
 0x45c   :  { %5890 = vmatprep.subr.bf16.mxu1 %v7770_v9 }
 0x45f   :  { %5891 = vmatpush1.bf16.msra.mxu1 %v7768_v10  ;;  %v7828_v10 = vld [vmem:[%s10469_s7 + $0xda0] ss:$28 sps:$4 sm:$0xff]  }
 0x460   :  { %5892 = vmatprep.subr.bf16.mxu1 %v7773_v11 }
 0x463   :  { %5893 = vmatpush1.bf16.msra.mxu1 %v7771_v42 }
 0x464   :  { %5894 = vmatprep.subr.bf16.mxu1 %v7776_v14  ;;  %v7833_v14 = vld [vmem:[%s10469_s7 + $0xddc] ss:$28 sps:$4 sm:$0xff]  }
 0x467   :  { %5895 = vmatpush1.bf16.msra.mxu1 %v7774_v17 }
 0x468   :  { %5896 = vmatprep.subr.bf16.mxu1 %v7779_v60  ;;  %v7831_v60 = vld [vmem:[%s10469_s7 + $0xdd8] ss:$28 sps:$4 sm:$0xff]  }
 0x46b   :  { %5897 = vmatpush1.bf16.msra.mxu1 %v7777_v18  ;;  %v3148_v18 = vrot.slane %v10364_v39, %v969_v0 }
 0x46c   :  { %5898 = vmatprep.subr.bf16.mxu1 %v7782_v23 }
 0x46f   :  { %5899 = vmatpush1.bf16.msra.mxu1 %v7780_v28 }
 0x470   :  { %5900 = vmatprep.subr.bf16.mxu1 %v7785_v29 }
 0x473   :  { %5901 = vmatpush1.bf16.msra.mxu1 %v7783_v30 }
 0x474   :  { %5911 = vmatprep.subr.bf16.mxu1 %v7788_v31 }
 0x476   :  { %5903 = vmatmul.mubr.bf16.vlgmr.msra.gmra.mrb[12].mxu1 %v9637_v63  ;;  %v7797_v63 = vld [vmem:[%s10469_s7 + $0xb3c] ss:$28 sps:$4 sm:$0xff]  }
 0x477   :  { %5912 = vmatpush1.bf16.msra.mxu1 %v7786_v32  ;;  %5943 = vmatprep.mubr.bf16.mxu1 %v9647_v4  ;;  %v7795_v4 = vld [vmem:[%s10469_s7 + $0xb38] ss:$28 sps:$4 sm:$0xff]   ;;  %s7859_s7 = smov [#allocation2]  }
 0x478   :  { %5913 = vmatprep.subr.bf16.mxu1 %v7791_v33  ;;  %s6126_s19 = sshll.u32 %s7859_s7, 4  ;;  %s6127_s19 = int_to_ptr.vmem [resolvable:$true] %s6126_s19 }
 0x479   :  { %s7834_s20 = scalar_lea.vmem %s6127_s19, 896  ;;  %p7839_p1 = scmp.lt.s32.totalorder %s6127_s19, %s6127_s19 }
 0x47a   :  { %p7835_p0 = scmp.ne.s32.totalorder %s6127_s19, %s7834_s20  ;;  %p7840_p2 = scmp.lt.s32.totalorder %s7834_s20, %s7834_s20 }
 0x47b   :  { %5914 = vmatpush1.bf16.msra.mxu1 %v7789_v34 }
 0x47c   :  { %5915 = vmatprep.subr.bf16.mxu1 %v7794_v50  ;;  %p7841_p3 = por %p7840_p2, %p7839_p1 }
 0x47e   :  { %p7842_p4 = pnand %p7841_p3, %p7835_p0 }
 0x47f   :  { %5916 = vmatpush1.bf16.msra.mxu1 %v7792_v35 }
 0x480   :  { %5917 = vmatprep.subr.bf16.mxu1 %v7797_v63 }
 0x483   :  { %5918 = vmatpush1.bf16.msra.mxu1 %v7795_v4 }
 0x484   :  { %5919 = vmatprep.subr.bf16.mxu1 %v7800_v37 }
 0x487   :  { %5920 = vmatpush1.bf16.msra.mxu1 %v7798_v38 }
 0x488   :  { %5921 = vmatprep.subr.bf16.mxu1 %v7803_v40 }
 0x489   :  { %v5617_v41 = vpop.f32.mrb[8].mxu1  ;;  %v5781_v15 = vpop.f32.mrb[20].mxu0 }
 0x48a   :  { %v7014_v49 = vadd.f32 %v5617_v41, %v3124_v1  ;;  %v7016_v51 = vadd.f32 %v5781_v15, %v3132_v43  ;;  %v5619_v20 = vpop.f32.mrb[9].mxu1  ;;  %v5783_v52 = vpop.f32.mrb[21].mxu0 }
 0x48b   :  { %v7015_v53 = vadd.f32 %v5619_v20, %v3128_v45  ;;  %v7017_v44 = vadd.f32 %v5783_v52, %v3136_v46  ;;  %v5621_v55 = vpop.f32.mrb[10].mxu1  ;;  %v5785_v57 = vpop.f32.mrb[22].mxu0  ;;  %5922 = vmatpush1.bf16.msra.mxu1 %v7801_v47  ;;  %v3140_v45 = vrot.slane %v10364_v39, %v961_v21  ;;  %v3144_v46 = vrot.slane %v10364_v39, %v965_v25 }
 0x48c   :  { %6112 = vst [vmem:[#allocation2] sm:$0xff] %v7014_v49  ;;  %6114 = vst [vmem:[#allocation2 + $0x10] sm:$0xff] %v7016_v51  ;;  %v5622_v26 = vpop.f32.mrb[11].mxu1  ;;  %v5786_v58 = vpop.f32.mrb[23].mxu0  ;;  %5923 = vmatprep.subr.bf16.mxu1 %v7806_v48 }
 0x48d   :  { %6113 = vst [vmem:[#allocation2 + $0x8] sm:$0xff] %v7015_v53  ;;  %6115 = vst [vmem:[#allocation2 + $0x18] sm:$0xff] %v7017_v44 }
 0x48f   :  { %5924 = vmatpush1.bf16.msra.mxu1 %v7804_v54 }
 0x490   :  { %5925 = vmatprep.subr.bf16.mxu1 %v7809_v59 }
 0x493   :  { %5926 = vmatpush1.bf16.msra.mxu1 %v7807_v2 }
 0x494   :  { %5927 = vmatprep.subr.bf16.mxu1 %v7812_v27 }
 0x497   :  { %5928 = vmatpush1.bf16.msra.mxu1 %v7810_v61 }
 0x498   :  { %5929 = vmatprep.subr.bf16.mxu1 %v7815_v24 }
 0x49b   :  { %5930 = vmatpush1.bf16.msra.mxu1 %v7813_v62 }
 0x49c   :  { %5931 = vmatprep.subr.bf16.mxu1 %v7818_v3 }
 0x49f   :  { %5932 = vmatpush1.bf16.msra.mxu1 %v7816_v5 }
 0x4a0   :  { %5933 = vmatprep.subr.bf16.mxu1 %v7821_v6 }
 0x4a3   :  { %5934 = vmatpush1.bf16.msra.mxu1 %v7819_v7 }
 0x4a4   :  { %5935 = vmatprep.subr.bf16.mxu1 %v7824_v8 }
 0x4a7   :  { %5936 = vmatpush1.bf16.msra.mxu1 %v7822_v12 }
 0x4a8   :  { %5937 = vmatprep.subr.bf16.mxu1 %v7827_v13 }
 0x4aa   :  { %v6934_v19 = vpop.f32.mrb[24].mxu0 }
 0x4ab   :  { %v6935_v9 = vpop.f32.mrb[25].mxu0  ;;  %5938 = vmatpush1.bf16.msra.mxu1 %v7825_v16 }
 0x4ac   :  { %v6936_v11 = vadd.f32 %v6935_v9, %v6934_v19  ;;  %v6937_v42 = vpop.f32.mrb[26].mxu0  ;;  %5939 = vmatprep.subr.bf16.mxu1 %v7830_v56 }
 0x4ad   :  { %v6938_v17 = vpop.f32.mrb[27].mxu0 }
 0x4ae   :  { %v5987_v29 = vadd.f32 %v6936_v11, %v3148_v18 }
 0x4af   :  { %5940 = vmatpush1.bf16.msra.mxu1 %v7828_v10 }
 0x4b0   :  { %5941 = vmatprep.subr.bf16.mxu1 %v7833_v14 }
 0x4b3   :  { %5942 = vmatpush1.bf16.msra.mxu1 %v7831_v60 }
 0x4b6   :  { %5944 = vmatmul.mubr.bf16.vlgmr.msra.gmra.mrb[12].mxu1 %v9841_v22 }
 0x4ca   :  { %v6956_v23 = vpop.f32.mrb[28].mxu0 }
 0x4cb   :  { %v6957_v28 = vpop.f32.mrb[29].mxu0 }
 0x4cc   :  { %v6958_v30 = vadd.f32 %v6957_v28, %v6956_v23  ;;  %v6959_v31 = vpop.f32.mrb[30].mxu0 }
 0x4cd   :  { %v6960_v32 = vpop.f32.mrb[31].mxu0 }
 0x4ce   :  { %v6027_v33 = vadd.f32 %v6958_v30, %v5987_v29 }
 0x4ea   :  { %v6978_v34 = vpop.f32.mrb[32].mxu0 }
 0x4eb   :  { %v6979_v50 = vpop.f32.mrb[33].mxu0 }
 0x4ec   :  { %v6980_v35 = vadd.f32 %v6979_v50, %v6978_v34  ;;  %v6981_v63 = vpop.f32.mrb[34].mxu0 }
 0x4ed   :  { %v6982_v4 = vpop.f32.mrb[35].mxu0 }
 0x4ee   :  { %v6067_v37 = vadd.f32 %v6980_v35, %v6027_v33 }
 0x50a   :  { %v7000_v38 = vpop.f32.mrb[36].mxu0 }
 0x50b   :  { %v7001_v40 = vpop.f32.mrb[37].mxu0 }
 0x50c   :  { %v7002_v22 = vadd.f32 %v7001_v40, %v7000_v38  ;;  %v7003_v1 = vpop.f32.mrb[38].mxu0 }
 0x50d   :  { %v7004_v43 = vpop.f32.mrb[39].mxu0 }
 0x50e   :  { %v6107_v0 = vadd.f32 %v7002_v22, %v6067_v37 }
 0x510   :  { %6119 = vst.msk [vmem:[#allocation2 + $0x30] sm:$0xff] %vm6118_vm0, %v6107_v0 }
 0x589   :  { %v5945_v47 = vpop.f32.mrb[12].mxu1 }
 0x58a   :  { %v7018_v48 = vadd.f32 %v5945_v47, %v3140_v45  ;;  %v5947_v41 = vpop.f32.mrb[13].mxu1 }
 0x58b   :  { %v7019_v15 = vadd.f32 %v5947_v41, %v3144_v46  ;;  %v5949_v49 = vpop.f32.mrb[14].mxu1 }
 0x58c   :  { %6116 = vst [vmem:[#allocation2 + $0x20] sm:$0xff] %v7018_v48  ;;  %v5950_v51 = vpop.f32.mrb[15].mxu1 }
 0x58d   :  { %6117 = vst [vmem:[#allocation2 + $0x28] sm:$0xff] %v7019_v15 }
 0x58e   :  { %7845 = shalt.err (!%p7842_p4)
}
 0x58f   :  { %s7846_s23 = scalar_lea.hbm %s10471_s9, 896 }
 0x590   :  { %p7847_p5 = scmp.ne.s32.totalorder %s10471_s9, %s7846_s23  ;;  %p7850_p6 = scmp.lt.u32.totalorder %s7846_s23, %s10471_s9 }
 0x592   :  { %p7852_p7 = pnand %p7850_p6, %p7847_p5 }
 0x594   :  { %7855 = shalt.err (!%p7852_p7)
}
 0x595   :  { %6129 = dma.vmem_to_hbm [thread:$0]  %s6127_s19, 896, %s10471_s9, [#allocation3]  }
 0x596   :  { %7856 = dma.done.wait [#allocation3], 896  }
 0x597   :  { %7857 = vsyncadd [#allocation3], 4294966400 }
 0x598   :  { %6133 = vsyncpa [#allocation3], 1 }

</bundles_post_ra>
